<compile_context>
chip_gen: v7x
topology: tpu7x:2x2x1
jax: 0.10.0
libtpu: 0.0.40
codegen_flags: <defaults>
</compile_context>

<pallas_src>
import jax
import jax.numpy as jnp
from jax.experimental import pallas as pl
from jax.experimental.pallas import tpu as pltpu

_VMEM_LIMIT = 32 * 1024 * 1024  # valid on v5e / v6e / v7x


# ----------------------------------------------------------------------------
# In-kernel helpers
# ----------------------------------------------------------------------------
def _gelu_erf(x):
    """Exact-erf GELU.  erf via Abramowitz-Stegun 7.1.26 (|err| < 1.5e-7) so it
    lowers in Mosaic with only exp/mul/add/select (no erf primitive needed)."""
    z = x * 0.7071067811865476
    az = jnp.abs(z)
    t = 1.0 / (1.0 + 0.3275911 * az)
    poly = ((((1.061405429 * t - 1.453152027) * t + 1.421413741) * t
             - 0.284496736) * t + 0.254829592) * t
    erf_abs = 1.0 - poly * jnp.exp(-az * az)
    erf = jnp.where(z >= 0.0, erf_abs, -erf_abs)
    return 0.5 * x * (1.0 + erf)


# ----------------------------------------------------------------------------
# Fused Conv1d kernel: K-tap in-kernel "im2col" accumulation + bias (+ReLU)
# ----------------------------------------------------------------------------
def _make_conv_kernel(K, T_out, relu):
    def kernel(xp_ref, w_ref, b_ref, o_ref):
        xp = xp_ref[...][0]                       # (Tp, Cin) f32
        w = w_ref[...]                            # (K, Cin, Cout) bf16
        acc = jnp.dot(xp[0:T_out].astype(jnp.bfloat16), w[0],
                      preferred_element_type=jnp.float32)
        for k in range(1, K):                     # static unroll, K <= 3
            acc = acc + jnp.dot(xp[k:k + T_out].astype(jnp.bfloat16), w[k],
                                preferred_element_type=jnp.float32)
        acc = acc + b_ref[...]
        if relu:
            acc = jnp.maximum(acc, 0.0)
        o_ref[...] = acc[None]
    return kernel


def conv1d(x_tc, w_oik, b, stride=1, pad=1, relu=False):
    """nn.Conv1d semantics, channels-last.  x_tc: (B, T, Cin), w_oik: (Cout, Cin, K)."""
    B, T, Cin = x_tc.shape
    Cout, _, K = w_oik.shape
    T_out = (T + 2 * pad - K) // stride + 1
    xp = jnp.pad(x_tc, ((0, 0), (pad, pad), (0, 0)))
    wf = jnp.transpose(w_oik, (2, 1, 0))          # (K, Cin, Cout)
    if stride > 1:
        # Rewrite the strided conv as a stride-1 conv over (T/s, s*Cin):
        #   out[t] = sum_j xp2[t+j] @ w2[j],  xp2 = xp.reshape(.., Tp/s, s*Cin)
        assert K % stride == 0
        extra = (-xp.shape[1]) % stride
        if extra:
            xp = jnp.pad(xp, ((0, 0), (0, extra), (0, 0)))
        xp = xp.reshape(B, xp.shape[1] // stride, stride * Cin)
        wf = wf.reshape(K // stride, stride * Cin, Cout)
        K_eff, C_eff = K // stride, stride * Cin
    else:
        K_eff, C_eff = K, Cin
    Tp = xp.shape[1]
    wf = wf.astype(jnp.bfloat16)                  # bf16 MXU operands
    return pl.pallas_call(
        _make_conv_kernel(K_eff, T_out, relu),
        out_shape=jax.ShapeDtypeStruct((B, T_out, Cout), jnp.float32),
        grid=(B,),
        in_specs=[pl.BlockSpec((1, Tp, C_eff), lambda bb: (bb, 0, 0)),
                  pl.BlockSpec((K_eff, C_eff, Cout), lambda bb: (0, 0, 0)),
                  pl.BlockSpec((1, Cout), lambda bb: (0, 0))],
        out_specs=pl.BlockSpec((1, T_out, Cout), lambda bb: (bb, 0, 0)),
        compiler_params=pltpu.CompilerParams(
            dimension_semantics=("parallel",),
            vmem_limit_bytes=_VMEM_LIMIT),
    )(xp, wf, b.reshape(1, Cout))


# ----------------------------------------------------------------------------
# Fully fused ConvNext block kernel:
#   dwconv(7) + LayerNorm + pwconv1 + GELU + pwconv2 + residual, one launch.
# ----------------------------------------------------------------------------
def _make_block_kernel(K, T, pad):
    def kernel(xp_ref, dww_ref, dwb_ref, g_ref, be_ref,
               w1_ref, b1_ref, w2_ref, b2_ref, o_ref):
        xp = xp_ref[...][0]                       # (Tp, C) f32  (zero padded)
        dw = dww_ref[...]                         # (K, C) f32
        # depthwise 7-tap conv (cross-correlation, like nn.Conv1d groups=dim)
        y = xp[0:T] * dw[0:1]
        for k in range(1, K):
            y = y + xp[k:k + T] * dw[k:k + 1]
        y = y + dwb_ref[...]
        # LayerNorm over channels (biased variance, eps=1e-5) - f32
        mean = jnp.mean(y, axis=-1, keepdims=True)
        yc = y - mean
        var = jnp.mean(yc * yc, axis=-1, keepdims=True)
        xn = yc * jax.lax.rsqrt(var + 1e-5) * g_ref[...] + be_ref[...]
        # pointwise expansion: (T, C) @ (C, 4C) on the MXU, bf16 ops / f32 acc.
        # The (T, 4C) expansion activation lives only in VMEM/vregs.
        h = jnp.dot(xn.astype(jnp.bfloat16), w1_ref[...],
                    preferred_element_type=jnp.float32) + b1_ref[...]
        h = _gelu_erf(h)
        # pointwise reduction + bias + residual (residual = unpadded input)
        out = jnp.dot(h.astype(jnp.bfloat16), w2_ref[...],
                      preferred_element_type=jnp.float32) + b2_ref[...]
        o_ref[...] = (out + xp[pad:pad + T])[None]
    return kernel


def convnext_block(x_tc, p):
    """ConvNextBlock1D forward, one pallas_call.  x_tc: (B, T, C)."""
    B, T, C = x_tc.shape
    K = p['dw_w'].shape[0]
    pad = K // 2
    H = p['w1'].shape[1]
    xp = jnp.pad(x_tc, ((0, 0), (pad, pad), (0, 0)))
    Tp = T + 2 * pad
    return pl.pallas_call(
        _make_block_kernel(K, T, pad),
        out_shape=jax.ShapeDtypeStruct((B, T, C), jnp.float32),
        grid=(B,),
        in_specs=[pl.BlockSpec((1, Tp, C), lambda bb: (bb, 0, 0)),
                  pl.BlockSpec((K, C), lambda bb: (0, 0)),
                  pl.BlockSpec((1, C), lambda bb: (0, 0)),
                  pl.BlockSpec((1, C), lambda bb: (0, 0)),
                  pl.BlockSpec((1, C), lambda bb: (0, 0)),
                  pl.BlockSpec((C, H), lambda bb: (0, 0)),
                  pl.BlockSpec((1, H), lambda bb: (0, 0)),
                  pl.BlockSpec((H, C), lambda bb: (0, 0)),
                  pl.BlockSpec((1, C), lambda bb: (0, 0))],
        out_specs=pl.BlockSpec((1, T, C), lambda bb: (bb, 0, 0)),
        compiler_params=pltpu.CompilerParams(
            dimension_semantics=("parallel",),
            vmem_limit_bytes=_VMEM_LIMIT),
    )(xp, p['dw_w'], p['dw_b'].reshape(1, C), p['ln_g'].reshape(1, C),
      p['ln_b'].reshape(1, C), p['w1'].astype(jnp.bfloat16),
      p['b1'].reshape(1, H), p['w2'].astype(jnp.bfloat16),
      p['b2'].reshape(1, C))


# ----------------------------------------------------------------------------
# Fused VAE head: fc_mu + fc_logvar + reparameterize + fc_decode, one launch.
# ----------------------------------------------------------------------------
def _vae_head_kernel(hf_ref, wmu_ref, bmu_ref, wlv_ref, blv_ref,
                     wd_ref, bd_ref, eps_ref, mu_ref, lv_ref, hd_ref):
    hf = hf_ref[...].astype(jnp.bfloat16)
    mu = jnp.dot(hf, wmu_ref[...], preferred_element_type=jnp.float32) + bmu_ref[...]
    lv = jnp.dot(hf, wlv_ref[...], preferred_element_type=jnp.float32) + blv_ref[...]
    z = mu + eps_ref[...] * jnp.exp(0.5 * lv)
    hd = jnp.dot(z.astype(jnp.bfloat16), wd_ref[...],
                 preferred_element_type=jnp.float32) + bd_ref[...]
    mu_ref[...] = mu
    lv_ref[...] = lv
    hd_ref[...] = hd


def vae_head(hf, params, eps):
    B, F = hf.shape
    L = params['fc_mu_w'].shape[1]
    return pl.pallas_call(
        _vae_head_kernel,
        out_shape=(jax.ShapeDtypeStruct((B, L), jnp.float32),
                   jax.ShapeDtypeStruct((B, L), jnp.float32),
                   jax.ShapeDtypeStruct((B, F), jnp.float32)),
        grid=(1,),
        in_specs=[pl.BlockSpec((B, F), lambda i: (0, 0)),
                  pl.BlockSpec((F, L), lambda i: (0, 0)),
                  pl.BlockSpec((1, L), lambda i: (0, 0)),
                  pl.BlockSpec((F, L), lambda i: (0, 0)),
                  pl.BlockSpec((1, L), lambda i: (0, 0)),
                  pl.BlockSpec((L, F), lambda i: (0, 0)),
                  pl.BlockSpec((1, F), lambda i: (0, 0)),
                  pl.BlockSpec((B, L), lambda i: (0, 0))],
        out_specs=(pl.BlockSpec((B, L), lambda i: (0, 0)),
                   pl.BlockSpec((B, L), lambda i: (0, 0)),
                   pl.BlockSpec((B, F), lambda i: (0, 0))),
        compiler_params=pltpu.CompilerParams(vmem_limit_bytes=_VMEM_LIMIT),
    )(hf, params['fc_mu_w'].astype(jnp.bfloat16), params['fc_mu_b'].reshape(1, L),
      params['fc_logvar_w'].astype(jnp.bfloat16), params['fc_logvar_b'].reshape(1, L),
      params['fc_dec_w'].astype(jnp.bfloat16), params['fc_dec_b'].reshape(1, F),
      eps)


# ----------------------------------------------------------------------------
# Plain-JAX glue (tiny ops with no benefit from a kernel at these shapes)
# ----------------------------------------------------------------------------
def upsample_nearest(x_tc, scale):
    # torch nn.Upsample(scale_factor=s, mode='nearest') == repeat along T
    return jnp.repeat(x_tc, scale, axis=1)


def upsample_linear(x_tc, T_dst):
    # torch F.interpolate(mode='linear', align_corners=False)
    B, T_src, C = x_tc.shape
    scale = T_src / T_dst
    i = jnp.arange(T_dst, dtype=jnp.float32)
    src = jnp.clip((i + 0.5) * scale - 0.5, 0.0, T_src - 1)
    i0 = jnp.floor(src).astype(jnp.int32)
    i1 = jnp.minimum(i0 + 1, T_src - 1)
    w1 = (src - i0.astype(jnp.float32))[None, :, None]
    return x_tc[:, i0, :] * (1.0 - w1) + x_tc[:, i1, :] * w1


# ----------------------------------------------------------------------------
# Parameters (deterministic, synthetic).  Note: to load real PyTorch weights,
# the depthwise weight must be reshaped from (dim, 1, K) -> (K, dim) and
# nn.Linear weights transposed to (in, out); the synthetic init already uses
# those conventions.
# ----------------------------------------------------------------------------
def _normal(key, shape, scale=0.02):
    return scale * jax.random.normal(key, shape, dtype=jnp.float32)


def init_convnext_block(key, dim, expansion=4, ksize=7):
    ks = jax.random.split(key, 6)
    return dict(
        dw_w=_normal(ks[0], (ksize, dim)),
        dw_b=_normal(ks[1], (dim,)),
        ln_g=jnp.ones((dim,), jnp.float32),
        ln_b=jnp.zeros((dim,), jnp.float32),
        w1=_normal(ks[2], (dim, expansion * dim)),
        b1=_normal(ks[3], (expansion * dim,)),
        w2=_normal(ks[4], (expansion * dim, dim)),
        b2=_normal(ks[5], (dim,)),
    )


def init_params(key, cfg):
    D, W, E, L = cfg['input_dim'], cfg['width'], cfg['enc_ch'], cfg['latent_dim']
    down_t, stride_t, depth = cfg['down_t'], cfg['stride_t'], cfg['depth']
    flat = E * cfg['T_out']
    keys = jax.random.split(key, 64)
    it = iter(keys)
    nk = lambda: next(it)
    p = {}
    p['enc_in_w'] = _normal(nk(), (W, D, 3)); p['enc_in_b'] = _normal(nk(), (W,))
    p['enc_down'] = []
    for _ in range(down_t):
        p['enc_down'].append(dict(
            conv_w=_normal(nk(), (W, W, stride_t * 2)),
            conv_b=_normal(nk(), (W,)),
            blocks=[init_convnext_block(nk(), W) for _ in range(depth)]))
    p['enc_out_w'] = _normal(nk(), (E, W, 3)); p['enc_out_b'] = _normal(nk(), (E,))
    p['fc_mu_w'] = _normal(nk(), (flat, L)); p['fc_mu_b'] = _normal(nk(), (L,))
    p['fc_logvar_w'] = _normal(nk(), (flat, L)); p['fc_logvar_b'] = _normal(nk(), (L,))
    p['fc_dec_w'] = _normal(nk(), (L, flat)); p['fc_dec_b'] = _normal(nk(), (flat,))
    p['dec_in_w'] = _normal(nk(), (W, E, 3)); p['dec_in_b'] = _normal(nk(), (W,))
    p['dec_up'] = []
    for _ in range(down_t):
        p['dec_up'].append(dict(blocks=[init_convnext_block(nk(), W) for _ in range(depth)]))
    p['dec_mid_w'] = _normal(nk(), (W, W, 3)); p['dec_mid_b'] = _normal(nk(), (W,))
    p['dec_out_w'] = _normal(nk(), (D, W, 3)); p['dec_out_b'] = _normal(nk(), (D,))
    return p


# ----------------------------------------------------------------------------
# Full forward: (recon, mu, logvar) -- mask=None path (masked_frame unused)
# ----------------------------------------------------------------------------
def convnext_vae_forward(params, x, eps, cfg):
    B, T, D = x.shape
    assert T == cfg['T_in']
    down_t, stride_t = cfg['down_t'], cfg['stride_t']
    enc_ch, T_out = cfg['enc_ch'], cfg['T_out']

    # ---------------- Encoder ----------------
    h = conv1d(x, params['enc_in_w'], params['enc_in_b'], stride=1, pad=1, relu=True)
    for i in range(down_t):
        d = params['enc_down'][i]
        h = conv1d(h, d['conv_w'], d['conv_b'],
                   stride=stride_t, pad=stride_t // 2, relu=False)
        for blk in d['blocks']:
            h = convnext_block(h, blk)
    h = conv1d(h, params['enc_out_w'], params['enc_out_b'], stride=1, pad=1, relu=False)

    # torch: h is (B, C, T_out) then .view(B, -1)  (channel-major flatten)
    hf = jnp.transpose(h, (0, 2, 1)).reshape(B, enc_ch * T_out)

    # fused fc_mu / fc_logvar / reparameterize / fc_decode
    mu, logvar, hd = vae_head(hf, params, eps)

    # ---------------- Decoder ----------------
    hd = jnp.transpose(hd.reshape(B, enc_ch, T_out), (0, 2, 1))   # to channels-last

    h = conv1d(hd, params['dec_in_w'], params['dec_in_b'], stride=1, pad=1, relu=True)
    for i in range(down_t):
        for blk in params['dec_up'][i]['blocks']:
            h = convnext_block(h, blk)
        h = upsample_nearest(h, stride_t)
    h = conv1d(h, params['dec_mid_w'], params['dec_mid_b'], stride=1, pad=1, relu=True)
    h = conv1d(h, params['dec_out_w'], params['dec_out_b'], stride=1, pad=1, relu=False)
    h = upsample_linear(h, cfg['T_in'])          # linear, align_corners=False

    recon = h   # torch permutes back to (B, T, input_dim); already channels-last
    return recon, mu, logvar


# ----------------------------------------------------------------------------
if __name__ == "__main__":
    cfg = dict(input_dim=8, width=32, enc_ch=32, latent_dim=16, T_in=16,
               down_t=2, stride_t=2, depth=1)
    # replicate the T_out arithmetic from ConvNextVAE.__init__
    T_cur = cfg['T_in']
    for _ in range(cfg['down_t']):
        filt, stride, pad = cfg['stride_t'] * 2, cfg['stride_t'], cfg['stride_t'] // 2
        T_cur = (T_cur + 2 * pad - filt) // stride + 1
    cfg['T_out'] = T_cur

    key = jax.random.PRNGKey(0)
    k_param, k_x, k_eps = jax.random.split(key, 3)
    params = init_params(k_param, cfg)
    x = jax.random.normal(k_x, (2, cfg['T_in'], cfg['input_dim']), dtype=jnp.float32)
    eps = jax.random.normal(k_eps, (2, cfg['latent_dim']), dtype=jnp.float32)

    fwd = jax.jit(lambda p, xx, ee: convnext_vae_forward(p, xx, ee, cfg))
    recon, mu, logvar = fwd(params, x, eps)
    jax.block_until_ready((recon, mu, logvar))

    assert recon.shape == (2, cfg['T_in'], cfg['input_dim'])
    assert mu.shape == (2, cfg['latent_dim'])
    assert logvar.shape == (2, cfg['latent_dim'])
    assert bool(jnp.all(jnp.isfinite(recon)))
    assert bool(jnp.all(jnp.isfinite(mu))) and bool(jnp.all(jnp.isfinite(logvar)))
    print("KERNEL_OK")
</pallas_src>

<mosaic_0001>
module attributes {stable_mosaic.version = 11 : i64} {
  func.func @kernel(%arg0: i32, %arg1: memref<1x18x8xf32, #tpu.memory_space<vmem>>, %arg2: memref<3x8x32xbf16, #tpu.memory_space<vmem>>, %arg3: memref<1x32xf32, #tpu.memory_space<vmem>>, %arg4: memref<1x16x32xf32, #tpu.memory_space<vmem>>) attributes {dimension_semantics = [#tpu.dimension_semantics<parallel>], iteration_bounds = array<i64: 2>, scalar_prefetch = 0 : i64, scratch_operands = 0 : i64, tpu.core_type = #tpu.core_type<tc>, window_params = [{transform_indices = @transform_0, window_bounds = array<i64: 1, 18, 8>}, {pipeline_mode = #tpu.pipeline_mode<synchronous>, transform_indices = @transform_1, window_bounds = array<i64: 3, 8, 32>}, {pipeline_mode = #tpu.pipeline_mode<synchronous>, transform_indices = @transform_2, window_bounds = array<i64: 1, 32>}, {transform_indices = @transform_3, window_bounds = array<i64: 1, 16, 32>}]} {
    %c0 = arith.constant 0 : index
    %c0_0 = arith.constant 0 : index
    %c0_1 = arith.constant 0 : index
    %0 = vector.load %arg1[%c0, %c0_0, %c0_1] : memref<1x18x8xf32, #tpu.memory_space<vmem>>, vector<1x18x8xf32>
    %1 = vector.shape_cast %0 : vector<1x18x8xf32> to vector<18x8xf32>
    %c0_2 = arith.constant 0 : index
    %c0_3 = arith.constant 0 : index
    %c0_4 = arith.constant 0 : index
    %2 = vector.load %arg2[%c0_2, %c0_3, %c0_4] : memref<3x8x32xbf16, #tpu.memory_space<vmem>>, vector<3x8x32xbf16>
    %3 = vector.extract_strided_slice %1 {offsets = [0, 0], sizes = [16, 8], strides = [1, 1]} : vector<18x8xf32> to vector<16x8xf32>
    %4 = arith.truncf %3 : vector<16x8xf32> to vector<16x8xbf16>
    %5 = vector.extract_strided_slice %2 {offsets = [0, 0, 0], sizes = [1, 8, 32], strides = [1, 1, 1]} : vector<3x8x32xbf16> to vector<1x8x32xbf16>
    %6 = vector.shape_cast %5 : vector<1x8x32xbf16> to vector<8x32xbf16>
    %cst = arith.constant dense<0.000000e+00> : vector<16x32xf32>
    %7 = tpu.matmul %4, %6, %cst {dimension_numbers = #tpu.dot_dimension_numbers<[1], [0], [0], [1], [0, 0, 1, 1], [], []>} : vector<16x8xbf16>, vector<8x32xbf16>, vector<16x32xf32> -> vector<16x32xf32>
    %8 = vector.extract_strided_slice %1 {offsets = [1, 0], sizes = [16, 8], strides = [1, 1]} : vector<18x8xf32> to vector<16x8xf32>
    %9 = arith.truncf %8 : vector<16x8xf32> to vector<16x8xbf16>
    %10 = vector.extract_strided_slice %2 {offsets = [1, 0, 0], sizes = [1, 8, 32], strides = [1, 1, 1]} : vector<3x8x32xbf16> to vector<1x8x32xbf16>
    %11 = vector.shape_cast %10 : vector<1x8x32xbf16> to vector<8x32xbf16>
    %cst_5 = arith.constant dense<0.000000e+00> : vector<16x32xf32>
    %12 = tpu.matmul %9, %11, %cst_5 {dimension_numbers = #tpu.dot_dimension_numbers<[1], [0], [0], [1], [0, 0, 1, 1], [], []>} : vector<16x8xbf16>, vector<8x32xbf16>, vector<16x32xf32> -> vector<16x32xf32>
    %13 = arith.addf %7, %12 : vector<16x32xf32>
    %14 = vector.extract_strided_slice %1 {offsets = [2, 0], sizes = [16, 8], strides = [1, 1]} : vector<18x8xf32> to vector<16x8xf32>
    %15 = arith.truncf %14 : vector<16x8xf32> to vector<16x8xbf16>
    %16 = vector.extract_strided_slice %2 {offsets = [2, 0, 0], sizes = [1, 8, 32], strides = [1, 1, 1]} : vector<3x8x32xbf16> to vector<1x8x32xbf16>
    %17 = vector.shape_cast %16 : vector<1x8x32xbf16> to vector<8x32xbf16>
    %cst_6 = arith.constant dense<0.000000e+00> : vector<16x32xf32>
    %18 = tpu.matmul %15, %17, %cst_6 {dimension_numbers = #tpu.dot_dimension_numbers<[1], [0], [0], [1], [0, 0, 1, 1], [], []>} : vector<16x8xbf16>, vector<8x32xbf16>, vector<16x32xf32> -> vector<16x32xf32>
    %19 = arith.addf %13, %18 : vector<16x32xf32>
    %c0_7 = arith.constant 0 : index
    %c0_8 = arith.constant 0 : index
    %20 = vector.load %arg3[%c0_7, %c0_8] : memref<1x32xf32, #tpu.memory_space<vmem>>, vector<1x32xf32>
    %21 = vector.broadcast %20 : vector<1x32xf32> to vector<16x32xf32>
    %22 = arith.addf %19, %21 : vector<16x32xf32>
    %cst_9 = arith.constant 0.000000e+00 : f32
    %23 = vector.broadcast %cst_9 : f32 to vector<16x32xf32>
    %24 = arith.maximumf %22, %23 : vector<16x32xf32>
    %25 = vector.shape_cast %24 : vector<16x32xf32> to vector<1x16x32xf32>
    %c0_10 = arith.constant 0 : index
    %c0_11 = arith.constant 0 : index
    %c0_12 = arith.constant 0 : index
    %26 = vector.load %arg4[%c0_10, %c0_11, %c0_12] : memref<1x16x32xf32, #tpu.memory_space<vmem>>, vector<1x16x32xf32>
    tpu.vector_store %arg4[%c0_10, %c0_11, %c0_12], %25 {strides = array<i32>} : memref<1x16x32xf32, #tpu.memory_space<vmem>>, vector<1x16x32xf32>,
    return
  }
  func.func @transform_0(%arg0: i32) -> (i32, i32, i32) {
    %c0_i32 = arith.constant 0 : i32
    %c0_i32_0 = arith.constant 0 : i32
    %c0_i32_1 = arith.constant 0 : i32
    return %arg0, %c0_i32, %c0_i32_0 : i32, i32, i32
  }
  func.func @transform_1(%arg0: i32) -> (i32, i32, i32) {
    %c0_i32 = arith.constant 0 : i32
    %c0_i32_0 = arith.constant 0 : i32
    %c0_i32_1 = arith.constant 0 : i32
    %c0_i32_2 = arith.constant 0 : i32
    return %c0_i32, %c0_i32_0, %c0_i32_1 : i32, i32, i32
  }
  func.func @transform_2(%arg0: i32) -> (i32, i32) {
    %c0_i32 = arith.constant 0 : i32
    %c0_i32_0 = arith.constant 0 : i32
    %c0_i32_1 = arith.constant 0 : i32
    return %c0_i32, %c0_i32_0 : i32, i32
  }
  func.func @transform_3(%arg0: i32) -> (i32, i32, i32) {
    %c0_i32 = arith.constant 0 : i32
    %c0_i32_0 = arith.constant 0 : i32
    %c0_i32_1 = arith.constant 0 : i32
    return %arg0, %c0_i32, %c0_i32_0 : i32, i32, i32
  }
}

module attributes {stable_mosaic.version = 11 : i64} {
  func.func @kernel(%arg0: i32, %arg1: memref<1x9x64xf32, #tpu.memory_space<vmem>>, %arg2: memref<2x64x32xbf16, #tpu.memory_space<vmem>>, %arg3: memref<1x32xf32, #tpu.memory_space<vmem>>, %arg4: memref<1x8x32xf32, #tpu.memory_space<vmem>>) attributes {dimension_semantics = [#tpu.dimension_semantics<parallel>], iteration_bounds = array<i64: 2>, scalar_prefetch = 0 : i64, scratch_operands = 0 : i64, tpu.core_type = #tpu.core_type<tc>, window_params = [{transform_indices = @transform_0, window_bounds = array<i64: 1, 9, 64>}, {pipeline_mode = #tpu.pipeline_mode<synchronous>, transform_indices = @transform_1, window_bounds = array<i64: 2, 64, 32>}, {pipeline_mode = #tpu.pipeline_mode<synchronous>, transform_indices = @transform_2, window_bounds = array<i64: 1, 32>}, {transform_indices = @transform_3, window_bounds = array<i64: 1, 8, 32>}]} {
    %c0 = arith.constant 0 : index
    %c0_0 = arith.constant 0 : index
    %c0_1 = arith.constant 0 : index
    %0 = vector.load %arg1[%c0, %c0_0, %c0_1] : memref<1x9x64xf32, #tpu.memory_space<vmem>>, vector<1x9x64xf32>
    %1 = vector.shape_cast %0 : vector<1x9x64xf32> to vector<9x64xf32>
    %c0_2 = arith.constant 0 : index
    %c0_3 = arith.constant 0 : index
    %c0_4 = arith.constant 0 : index
    %2 = vector.load %arg2[%c0_2, %c0_3, %c0_4] : memref<2x64x32xbf16, #tpu.memory_space<vmem>>, vector<2x64x32xbf16>
    %3 = vector.extract_strided_slice %1 {offsets = [0, 0], sizes = [8, 64], strides = [1, 1]} : vector<9x64xf32> to vector<8x64xf32>
    %4 = arith.truncf %3 : vector<8x64xf32> to vector<8x64xbf16>
    %5 = vector.extract_strided_slice %2 {offsets = [0, 0, 0], sizes = [1, 64, 32], strides = [1, 1, 1]} : vector<2x64x32xbf16> to vector<1x64x32xbf16>
    %6 = vector.shape_cast %5 : vector<1x64x32xbf16> to vector<64x32xbf16>
    %cst = arith.constant dense<0.000000e+00> : vector<8x32xf32>
    %7 = tpu.matmul %4, %6, %cst {dimension_numbers = #tpu.dot_dimension_numbers<[1], [0], [0], [1], [0, 0, 1, 1], [], []>} : vector<8x64xbf16>, vector<64x32xbf16>, vector<8x32xf32> -> vector<8x32xf32>
    %8 = vector.extract_strided_slice %1 {offsets = [1, 0], sizes = [8, 64], strides = [1, 1]} : vector<9x64xf32> to vector<8x64xf32>
    %9 = arith.truncf %8 : vector<8x64xf32> to vector<8x64xbf16>
    %10 = vector.extract_strided_slice %2 {offsets = [1, 0, 0], sizes = [1, 64, 32], strides = [1, 1, 1]} : vector<2x64x32xbf16> to vector<1x64x32xbf16>
    %11 = vector.shape_cast %10 : vector<1x64x32xbf16> to vector<64x32xbf16>
    %cst_5 = arith.constant dense<0.000000e+00> : vector<8x32xf32>
    %12 = tpu.matmul %9, %11, %cst_5 {dimension_numbers = #tpu.dot_dimension_numbers<[1], [0], [0], [1], [0, 0, 1, 1], [], []>} : vector<8x64xbf16>, vector<64x32xbf16>, vector<8x32xf32> -> vector<8x32xf32>
    %13 = arith.addf %7, %12 : vector<8x32xf32>
    %c0_6 = arith.constant 0 : index
    %c0_7 = arith.constant 0 : index
    %14 = vector.load %arg3[%c0_6, %c0_7] : memref<1x32xf32, #tpu.memory_space<vmem>>, vector<1x32xf32>
    %15 = vector.broadcast %14 : vector<1x32xf32> to vector<8x32xf32>
    %16 = arith.addf %13, %15 : vector<8x32xf32>
    %17 = vector.shape_cast %16 : vector<8x32xf32> to vector<1x8x32xf32>
    %c0_8 = arith.constant 0 : index
    %c0_9 = arith.constant 0 : index
    %c0_10 = arith.constant 0 : index
    %18 = vector.load %arg4[%c0_8, %c0_9, %c0_10] : memref<1x8x32xf32, #tpu.memory_space<vmem>>, vector<1x8x32xf32>
    tpu.vector_store %arg4[%c0_8, %c0_9, %c0_10], %17 {strides = array<i32>} : memref<1x8x32xf32, #tpu.memory_space<vmem>>, vector<1x8x32xf32>,
    return
  }
  func.func @transform_0(%arg0: i32) -> (i32, i32, i32) {
    %c0_i32 = arith.constant 0 : i32
    %c0_i32_0 = arith.constant 0 : i32
    %c0_i32_1 = arith.constant 0 : i32
    return %arg0, %c0_i32, %c0_i32_0 : i32, i32, i32
  }
  func.func @transform_1(%arg0: i32) -> (i32, i32, i32) {
    %c0_i32 = arith.constant 0 : i32
    %c0_i32_0 = arith.constant 0 : i32
    %c0_i32_1 = arith.constant 0 : i32
    %c0_i32_2 = arith.constant 0 : i32
    return %c0_i32, %c0_i32_0, %c0_i32_1 : i32, i32, i32
  }
  func.func @transform_2(%arg0: i32) -> (i32, i32) {
    %c0_i32 = arith.constant 0 : i32
    %c0_i32_0 = arith.constant 0 : i32
    %c0_i32_1 = arith.constant 0 : i32
    return %c0_i32, %c0_i32_0 : i32, i32
  }
  func.func @transform_3(%arg0: i32) -> (i32, i32, i32) {
    %c0_i32 = arith.constant 0 : i32
    %c0_i32_0 = arith.constant 0 : i32
    %c0_i32_1 = arith.constant 0 : i32
    return %arg0, %c0_i32, %c0_i32_0 : i32, i32, i32
  }
}

module attributes {stable_mosaic.version = 11 : i64} {
  func.func @kernel(%arg0: i32, %arg1: memref<1x14x32xf32, #tpu.memory_space<vmem>>, %arg2: memref<7x32xf32, #tpu.memory_space<vmem>>, %arg3: memref<1x32xf32, #tpu.memory_space<vmem>>, %arg4: memref<1x32xf32, #tpu.memory_space<vmem>>, %arg5: memref<1x32xf32, #tpu.memory_space<vmem>>, %arg6: memref<32x128xbf16, #tpu.memory_space<vmem>>, %arg7: memref<1x128xf32, #tpu.memory_space<vmem>>, %arg8: memref<128x32xbf16, #tpu.memory_space<vmem>>, %arg9: memref<1x32xf32, #tpu.memory_space<vmem>>, %arg10: memref<1x8x32xf32, #tpu.memory_space<vmem>>) attributes {dimension_semantics = [#tpu.dimension_semantics<parallel>], iteration_bounds = array<i64: 2>, scalar_prefetch = 0 : i64, scratch_operands = 0 : i64, tpu.core_type = #tpu.core_type<tc>, window_params = [{transform_indices = @transform_0, window_bounds = array<i64: 1, 14, 32>}, {pipeline_mode = #tpu.pipeline_mode<synchronous>, transform_indices = @transform_1, window_bounds = array<i64: 7, 32>}, {pipeline_mode = #tpu.pipeline_mode<synchronous>, transform_indices = @transform_2, window_bounds = array<i64: 1, 32>}, {pipeline_mode = #tpu.pipeline_mode<synchronous>, transform_indices = @transform_3, window_bounds = array<i64: 1, 32>}, {pipeline_mode = #tpu.pipeline_mode<synchronous>, transform_indices = @transform_4, window_bounds = array<i64: 1, 32>}, {pipeline_mode = #tpu.pipeline_mode<synchronous>, transform_indices = @transform_5, window_bounds = array<i64: 32, 128>}, {pipeline_mode = #tpu.pipeline_mode<synchronous>, transform_indices = @transform_6, window_bounds = array<i64: 1, 128>}, {pipeline_mode = #tpu.pipeline_mode<synchronous>, transform_indices = @transform_7, window_bounds = array<i64: 128, 32>}, {pipeline_mode = #tpu.pipeline_mode<synchronous>, transform_indices = @transform_8, window_bounds = array<i64: 1, 32>}, {transform_indices = @transform_9, window_bounds = array<i64: 1, 8, 32>}]} {
    %c0 = arith.constant 0 : index
    %c0_0 = arith.constant 0 : index
    %c0_1 = arith.constant 0 : index
    %0 = vector.load %arg1[%c0, %c0_0, %c0_1] : memref<1x14x32xf32, #tpu.memory_space<vmem>>, vector<1x14x32xf32>
    %1 = vector.shape_cast %0 : vector<1x14x32xf32> to vector<14x32xf32>
    %c0_2 = arith.constant 0 : index
    %c0_3 = arith.constant 0 : index
    %2 = vector.load %arg2[%c0_2, %c0_3] : memref<7x32xf32, #tpu.memory_space<vmem>>, vector<7x32xf32>
    %3 = vector.extract_strided_slice %1 {offsets = [0, 0], sizes = [8, 32], strides = [1, 1]} : vector<14x32xf32> to vector<8x32xf32>
    %4 = vector.extract_strided_slice %2 {offsets = [0, 0], sizes = [1, 32], strides = [1, 1]} : vector<7x32xf32> to vector<1x32xf32>
    %5 = vector.broadcast %4 : vector<1x32xf32> to vector<8x32xf32>
    %6 = arith.mulf %3, %5 : vector<8x32xf32>
    %7 = vector.extract_strided_slice %1 {offsets = [1, 0], sizes = [8, 32], strides = [1, 1]} : vector<14x32xf32> to vector<8x32xf32>
    %8 = vector.extract_strided_slice %2 {offsets = [1, 0], sizes = [1, 32], strides = [1, 1]} : vector<7x32xf32> to vector<1x32xf32>
    %9 = vector.broadcast %8 : vector<1x32xf32> to vector<8x32xf32>
    %10 = arith.mulf %7, %9 : vector<8x32xf32>
    %11 = arith.addf %6, %10 : vector<8x32xf32>
    %12 = vector.extract_strided_slice %1 {offsets = [2, 0], sizes = [8, 32], strides = [1, 1]} : vector<14x32xf32> to vector<8x32xf32>
    %13 = vector.extract_strided_slice %2 {offsets = [2, 0], sizes = [1, 32], strides = [1, 1]} : vector<7x32xf32> to vector<1x32xf32>
    %14 = vector.broadcast %13 : vector<1x32xf32> to vector<8x32xf32>
    %15 = arith.mulf %12, %14 : vector<8x32xf32>
    %16 = arith.addf %11, %15 : vector<8x32xf32>
    %17 = vector.extract_strided_slice %1 {offsets = [3, 0], sizes = [8, 32], strides = [1, 1]} : vector<14x32xf32> to vector<8x32xf32>
    %18 = vector.extract_strided_slice %2 {offsets = [3, 0], sizes = [1, 32], strides = [1, 1]} : vector<7x32xf32> to vector<1x32xf32>
    %19 = vector.broadcast %18 : vector<1x32xf32> to vector<8x32xf32>
    %20 = arith.mulf %17, %19 : vector<8x32xf32>
    %21 = arith.addf %16, %20 : vector<8x32xf32>
    %22 = vector.extract_strided_slice %1 {offsets = [4, 0], sizes = [8, 32], strides = [1, 1]} : vector<14x32xf32> to vector<8x32xf32>
    %23 = vector.extract_strided_slice %2 {offsets = [4, 0], sizes = [1, 32], strides = [1, 1]} : vector<7x32xf32> to vector<1x32xf32>
    %24 = vector.broadcast %23 : vector<1x32xf32> to vector<8x32xf32>
    %25 = arith.mulf %22, %24 : vector<8x32xf32>
    %26 = arith.addf %21, %25 : vector<8x32xf32>
    %27 = vector.extract_strided_slice %1 {offsets = [5, 0], sizes = [8, 32], strides = [1, 1]} : vector<14x32xf32> to vector<8x32xf32>
    %28 = vector.extract_strided_slice %2 {offsets = [5, 0], sizes = [1, 32], strides = [1, 1]} : vector<7x32xf32> to vector<1x32xf32>
    %29 = vector.broadcast %28 : vector<1x32xf32> to vector<8x32xf32>
    %30 = arith.mulf %27, %29 : vector<8x32xf32>
    %31 = arith.addf %26, %30 : vector<8x32xf32>
    %32 = vector.extract_strided_slice %1 {offsets = [6, 0], sizes = [8, 32], strides = [1, 1]} : vector<14x32xf32> to vector<8x32xf32>
    %33 = vector.extract_strided_slice %2 {offsets = [6, 0], sizes = [1, 32], strides = [1, 1]} : vector<7x32xf32> to vector<1x32xf32>
    %34 = vector.broadcast %33 : vector<1x32xf32> to vector<8x32xf32>
    %35 = arith.mulf %32, %34 : vector<8x32xf32>
    %36 = arith.addf %31, %35 : vector<8x32xf32>
    %c0_4 = arith.constant 0 : index
    %c0_5 = arith.constant 0 : index
    %37 = vector.load %arg3[%c0_4, %c0_5] : memref<1x32xf32, #tpu.memory_space<vmem>>, vector<1x32xf32>
    %38 = vector.broadcast %37 : vector<1x32xf32> to vector<8x32xf32>
    %39 = arith.addf %36, %38 : vector<8x32xf32>
    %cst = arith.constant dense<0.000000e+00> : vector<8xf32>
    %40 = vector.multi_reduction <add>, %39, %cst [1] : vector<8x32xf32> to vector<8xf32>
    %41 = vector.shape_cast %40 : vector<8xf32> to vector<8x1xf32>
    %cst_6 = arith.constant 3.200000e+01 : f32
    %42 = vector.broadcast %cst_6 : f32 to vector<8x1xf32>
    %43 = arith.divf %41, %42 : vector<8x1xf32>
    %44 = vector.broadcast %43 : vector<8x1xf32> to vector<8x32xf32>
    %45 = arith.subf %39, %44 : vector<8x32xf32>
    %46 = arith.mulf %45, %45 : vector<8x32xf32>
    %cst_7 = arith.constant dense<0.000000e+00> : vector<8xf32>
    %47 = vector.multi_reduction <add>, %46, %cst_7 [1] : vector<8x32xf32> to vector<8xf32>
    %48 = vector.shape_cast %47 : vector<8xf32> to vector<8x1xf32>
    %cst_8 = arith.constant 3.200000e+01 : f32
    %49 = vector.broadcast %cst_8 : f32 to vector<8x1xf32>
    %50 = arith.divf %48, %49 : vector<8x1xf32>
    %cst_9 = arith.constant 9.99999974E-6 : f32
    %51 = vector.broadcast %cst_9 : f32 to vector<8x1xf32>
    %52 = arith.addf %50, %51 : vector<8x1xf32>
    %53 = math.rsqrt %52 : vector<8x1xf32>
    %54 = vector.broadcast %53 : vector<8x1xf32> to vector<8x32xf32>
    %55 = arith.mulf %45, %54 : vector<8x32xf32>
    %c0_10 = arith.constant 0 : index
    %c0_11 = arith.constant 0 : index
    %56 = vector.load %arg4[%c0_10, %c0_11] : memref<1x32xf32, #tpu.memory_space<vmem>>, vector<1x32xf32>
    %57 = vector.broadcast %56 : vector<1x32xf32> to vector<8x32xf32>
    %58 = arith.mulf %55, %57 : vector<8x32xf32>
    %c0_12 = arith.constant 0 : index
    %c0_13 = arith.constant 0 : index
    %59 = vector.load %arg5[%c0_12, %c0_13] : memref<1x32xf32, #tpu.memory_space<vmem>>, vector<1x32xf32>
    %60 = vector.broadcast %59 : vector<1x32xf32> to vector<8x32xf32>
    %61 = arith.addf %58, %60 : vector<8x32xf32>
    %62 = arith.truncf %61 : vector<8x32xf32> to vector<8x32xbf16>
    %c0_14 = arith.constant 0 : index
    %c0_15 = arith.constant 0 : index
    %63 = vector.load %arg6[%c0_14, %c0_15] : memref<32x128xbf16, #tpu.memory_space<vmem>>, vector<32x128xbf16>
    %cst_16 = arith.constant dense<0.000000e+00> : vector<8x128xf32>
    %64 = tpu.matmul %62, %63, %cst_16 {dimension_numbers = #tpu.dot_dimension_numbers<[1], [0], [0], [1], [0, 0, 1, 1], [], []>} : vector<8x32xbf16>, vector<32x128xbf16>, vector<8x128xf32> -> vector<8x128xf32>
    %c0_17 = arith.constant 0 : index
    %c0_18 = arith.constant 0 : index
    %65 = vector.load %arg7[%c0_17, %c0_18] : memref<1x128xf32, #tpu.memory_space<vmem>>, vector<1x128xf32>
    %66 = vector.broadcast %65 : vector<1x128xf32> to vector<8x128xf32>
    %67 = arith.addf %64, %66 : vector<8x128xf32>
    %cst_19 = arith.constant 0.707106769 : f32
    %68 = vector.broadcast %cst_19 : f32 to vector<8x128xf32>
    %69 = arith.mulf %67, %68 : vector<8x128xf32>
    %70 = math.absf %69 : vector<8x128xf32>
    %cst_20 = arith.constant 0.327591091 : f32
    %71 = vector.broadcast %cst_20 : f32 to vector<8x128xf32>
    %72 = arith.mulf %71, %70 : vector<8x128xf32>
    %cst_21 = arith.constant 1.000000e+00 : f32
    %73 = vector.broadcast %cst_21 : f32 to vector<8x128xf32>
    %74 = arith.addf %73, %72 : vector<8x128xf32>
    %cst_22 = arith.constant 1.000000e+00 : f32
    %75 = vector.broadcast %cst_22 : f32 to vector<8x128xf32>
    %76 = arith.divf %75, %74 : vector<8x128xf32>
    %cst_23 = arith.constant 1.06140542 : f32
    %77 = vector.broadcast %cst_23 : f32 to vector<8x128xf32>
    %78 = arith.mulf %77, %76 : vector<8x128xf32>
    %cst_24 = arith.constant 1.45315206 : f32
    %79 = vector.broadcast %cst_24 : f32 to vector<8x128xf32>
    %80 = arith.subf %78, %79 : vector<8x128xf32>
    %81 = arith.mulf %80, %76 : vector<8x128xf32>
    %cst_25 = arith.constant 1.42141378 : f32
    %82 = vector.broadcast %cst_25 : f32 to vector<8x128xf32>
    %83 = arith.addf %81, %82 : vector<8x128xf32>
    %84 = arith.mulf %83, %76 : vector<8x128xf32>
    %cst_26 = arith.constant 0.284496725 : f32
    %85 = vector.broadcast %cst_26 : f32 to vector<8x128xf32>
    %86 = arith.subf %84, %85 : vector<8x128xf32>
    %87 = arith.mulf %86, %76 : vector<8x128xf32>
    %cst_27 = arith.constant 0.254829586 : f32
    %88 = vector.broadcast %cst_27 : f32 to vector<8x128xf32>
    %89 = arith.addf %87, %88 : vector<8x128xf32>
    %90 = arith.mulf %89, %76 : vector<8x128xf32>
    %cst_28 = arith.constant 0.000000e+00 : f32
    %91 = vector.broadcast %cst_28 : f32 to vector<8x128xf32>
    %92 = arith.subf %91, %70 : vector<8x128xf32>
    %93 = arith.mulf %92, %70 : vector<8x128xf32>
    %94 = math.exp %93 : vector<8x128xf32>
    %95 = arith.mulf %90, %94 : vector<8x128xf32>
    %cst_29 = arith.constant 1.000000e+00 : f32
    %96 = vector.broadcast %cst_29 : f32 to vector<8x128xf32>
    %97 = arith.subf %96, %95 : vector<8x128xf32>
    %cst_30 = arith.constant 0.000000e+00 : f32
    %98 = vector.broadcast %cst_30 : f32 to vector<8x128xf32>
    %99 = arith.cmpf oge, %69, %98 : vector<8x128xf32>
    %cst_31 = arith.constant 0.000000e+00 : f32
    %100 = vector.broadcast %cst_31 : f32 to vector<8x128xf32>
    %101 = arith.subf %100, %97 : vector<8x128xf32>
    %102 = arith.select %99, %97, %101 : vector<8x128xi1>, vector<8x128xf32>
    %cst_32 = arith.constant 5.000000e-01 : f32
    %103 = vector.broadcast %cst_32 : f32 to vector<8x128xf32>
    %104 = arith.mulf %103, %67 : vector<8x128xf32>
    %cst_33 = arith.constant 1.000000e+00 : f32
    %105 = vector.broadcast %cst_33 : f32 to vector<8x128xf32>
    %106 = arith.addf %105, %102 : vector<8x128xf32>
    %107 = arith.mulf %104, %106 : vector<8x128xf32>
    %108 = arith.truncf %107 : vector<8x128xf32> to vector<8x128xbf16>
    %c0_34 = arith.constant 0 : index
    %c0_35 = arith.constant 0 : index
    %109 = vector.load %arg8[%c0_34, %c0_35] : memref<128x32xbf16, #tpu.memory_space<vmem>>, vector<128x32xbf16>
    %cst_36 = arith.constant dense<0.000000e+00> : vector<8x32xf32>
    %110 = tpu.matmul %108, %109, %cst_36 {dimension_numbers = #tpu.dot_dimension_numbers<[1], [0], [0], [1], [0, 0, 1, 1], [], []>} : vector<8x128xbf16>, vector<128x32xbf16>, vector<8x32xf32> -> vector<8x32xf32>
    %c0_37 = arith.constant 0 : index
    %c0_38 = arith.constant 0 : index
    %111 = vector.load %arg9[%c0_37, %c0_38] : memref<1x32xf32, #tpu.memory_space<vmem>>, vector<1x32xf32>
    %112 = vector.broadcast %111 : vector<1x32xf32> to vector<8x32xf32>
    %113 = arith.addf %110, %112 : vector<8x32xf32>
    %114 = vector.extract_strided_slice %1 {offsets = [3, 0], sizes = [8, 32], strides = [1, 1]} : vector<14x32xf32> to vector<8x32xf32>
    %115 = arith.addf %113, %114 : vector<8x32xf32>
    %116 = vector.shape_cast %115 : vector<8x32xf32> to vector<1x8x32xf32>
    %c0_39 = arith.constant 0 : index
    %c0_40 = arith.constant 0 : index
    %c0_41 = arith.constant 0 : index
    %117 = vector.load %arg10[%c0_39, %c0_40, %c0_41] : memref<1x8x32xf32, #tpu.memory_space<vmem>>, vector<1x8x32xf32>
    tpu.vector_store %arg10[%c0_39, %c0_40, %c0_41], %116 {strides = array<i32>} : memref<1x8x32xf32, #tpu.memory_space<vmem>>, vector<1x8x32xf32>,
    return
  }
  func.func @transform_0(%arg0: i32) -> (i32, i32, i32) {
    %c0_i32 = arith.constant 0 : i32
    %c0_i32_0 = arith.constant 0 : i32
    %c0_i32_1 = arith.constant 0 : i32
    return %arg0, %c0_i32, %c0_i32_0 : i32, i32, i32
  }
  func.func @transform_1(%arg0: i32) -> (i32, i32) {
    %c0_i32 = arith.constant 0 : i32
    %c0_i32_0 = arith.constant 0 : i32
    %c0_i32_1 = arith.constant 0 : i32
    return %c0_i32, %c0_i32_0 : i32, i32
  }
  func.func @transform_2(%arg0: i32) -> (i32, i32) {
    %c0_i32 = arith.constant 0 : i32
    %c0_i32_0 = arith.constant 0 : i32
    %c0_i32_1 = arith.constant 0 : i32
    return %c0_i32, %c0_i32_0 : i32, i32
  }
  func.func @transform_3(%arg0: i32) -> (i32, i32) {
    %c0_i32 = arith.constant 0 : i32
    %c0_i32_0 = arith.constant 0 : i32
    %c0_i32_1 = arith.constant 0 : i32
    return %c0_i32, %c0_i32_0 : i32, i32
  }
  func.func @transform_4(%arg0: i32) -> (i32, i32) {
    %c0_i32 = arith.constant 0 : i32
    %c0_i32_0 = arith.constant 0 : i32
    %c0_i32_1 = arith.constant 0 : i32
    return %c0_i32, %c0_i32_0 : i32, i32
  }
  func.func @transform_5(%arg0: i32) -> (i32, i32) {
    %c0_i32 = arith.constant 0 : i32
    %c0_i32_0 = arith.constant 0 : i32
    %c0_i32_1 = arith.constant 0 : i32
    return %c0_i32, %c0_i32_0 : i32, i32
  }
  func.func @transform_6(%arg0: i32) -> (i32, i32) {
    %c0_i32 = arith.constant 0 : i32
    %c0_i32_0 = arith.constant 0 : i32
    %c0_i32_1 = arith.constant 0 : i32
    return %c0_i32, %c0_i32_0 : i32, i32
  }
  func.func @transform_7(%arg0: i32) -> (i32, i32) {
    %c0_i32 = arith.constant 0 : i32
    %c0_i32_0 = arith.constant 0 : i32
    %c0_i32_1 = arith.constant 0 : i32
    return %c0_i32, %c0_i32_0 : i32, i32
  }
  func.func @transform_8(%arg0: i32) -> (i32, i32) {
    %c0_i32 = arith.constant 0 : i32
    %c0_i32_0 = arith.constant 0 : i32
    %c0_i32_1 = arith.constant 0 : i32
    return %c0_i32, %c0_i32_0 : i32, i32
  }
  func.func @transform_9(%arg0: i32) -> (i32, i32, i32) {
    %c0_i32 = arith.constant 0 : i32
    %c0_i32_0 = arith.constant 0 : i32
    %c0_i32_1 = arith.constant 0 : i32
    return %arg0, %c0_i32, %c0_i32_0 : i32, i32, i32
  }
}

module attributes {stable_mosaic.version = 11 : i64} {
  func.func @kernel(%arg0: i32, %arg1: memref<1x5x64xf32, #tpu.memory_space<vmem>>, %arg2: memref<2x64x32xbf16, #tpu.memory_space<vmem>>, %arg3: memref<1x32xf32, #tpu.memory_space<vmem>>, %arg4: memref<1x4x32xf32, #tpu.memory_space<vmem>>) attributes {dimension_semantics = [#tpu.dimension_semantics<parallel>], iteration_bounds = array<i64: 2>, scalar_prefetch = 0 : i64, scratch_operands = 0 : i64, tpu.core_type = #tpu.core_type<tc>, window_params = [{transform_indices = @transform_0, window_bounds = array<i64: 1, 5, 64>}, {pipeline_mode = #tpu.pipeline_mode<synchronous>, transform_indices = @transform_1, window_bounds = array<i64: 2, 64, 32>}, {pipeline_mode = #tpu.pipeline_mode<synchronous>, transform_indices = @transform_2, window_bounds = array<i64: 1, 32>}, {transform_indices = @transform_3, window_bounds = array<i64: 1, 4, 32>}]} {
    %c0 = arith.constant 0 : index
    %c0_0 = arith.constant 0 : index
    %c0_1 = arith.constant 0 : index
    %0 = vector.load %arg1[%c0, %c0_0, %c0_1] : memref<1x5x64xf32, #tpu.memory_space<vmem>>, vector<1x5x64xf32>
    %1 = vector.shape_cast %0 : vector<1x5x64xf32> to vector<5x64xf32>
    %c0_2 = arith.constant 0 : index
    %c0_3 = arith.constant 0 : index
    %c0_4 = arith.constant 0 : index
    %2 = vector.load %arg2[%c0_2, %c0_3, %c0_4] : memref<2x64x32xbf16, #tpu.memory_space<vmem>>, vector<2x64x32xbf16>
    %3 = vector.extract_strided_slice %1 {offsets = [0, 0], sizes = [4, 64], strides = [1, 1]} : vector<5x64xf32> to vector<4x64xf32>
    %4 = arith.truncf %3 : vector<4x64xf32> to vector<4x64xbf16>
    %5 = vector.extract_strided_slice %2 {offsets = [0, 0, 0], sizes = [1, 64, 32], strides = [1, 1, 1]} : vector<2x64x32xbf16> to vector<1x64x32xbf16>
    %6 = vector.shape_cast %5 : vector<1x64x32xbf16> to vector<64x32xbf16>
    %cst = arith.constant dense<0.000000e+00> : vector<4x32xf32>
    %7 = tpu.matmul %4, %6, %cst {dimension_numbers = #tpu.dot_dimension_numbers<[1], [0], [0], [1], [0, 0, 1, 1], [], []>} : vector<4x64xbf16>, vector<64x32xbf16>, vector<4x32xf32> -> vector<4x32xf32>
    %8 = vector.extract_strided_slice %1 {offsets = [1, 0], sizes = [4, 64], strides = [1, 1]} : vector<5x64xf32> to vector<4x64xf32>
    %9 = arith.truncf %8 : vector<4x64xf32> to vector<4x64xbf16>
    %10 = vector.extract_strided_slice %2 {offsets = [1, 0, 0], sizes = [1, 64, 32], strides = [1, 1, 1]} : vector<2x64x32xbf16> to vector<1x64x32xbf16>
    %11 = vector.shape_cast %10 : vector<1x64x32xbf16> to vector<64x32xbf16>
    %cst_5 = arith.constant dense<0.000000e+00> : vector<4x32xf32>
    %12 = tpu.matmul %9, %11, %cst_5 {dimension_numbers = #tpu.dot_dimension_numbers<[1], [0], [0], [1], [0, 0, 1, 1], [], []>} : vector<4x64xbf16>, vector<64x32xbf16>, vector<4x32xf32> -> vector<4x32xf32>
    %13 = arith.addf %7, %12 : vector<4x32xf32>
    %c0_6 = arith.constant 0 : index
    %c0_7 = arith.constant 0 : index
    %14 = vector.load %arg3[%c0_6, %c0_7] : memref<1x32xf32, #tpu.memory_space<vmem>>, vector<1x32xf32>
    %15 = vector.broadcast %14 : vector<1x32xf32> to vector<4x32xf32>
    %16 = arith.addf %13, %15 : vector<4x32xf32>
    %17 = vector.shape_cast %16 : vector<4x32xf32> to vector<1x4x32xf32>
    %c0_8 = arith.constant 0 : index
    %c0_9 = arith.constant 0 : index
    %c0_10 = arith.constant 0 : index
    %18 = vector.load %arg4[%c0_8, %c0_9, %c0_10] : memref<1x4x32xf32, #tpu.memory_space<vmem>>, vector<1x4x32xf32>
    tpu.vector_store %arg4[%c0_8, %c0_9, %c0_10], %17 {strides = array<i32>} : memref<1x4x32xf32, #tpu.memory_space<vmem>>, vector<1x4x32xf32>,
    return
  }
  func.func @transform_0(%arg0: i32) -> (i32, i32, i32) {
    %c0_i32 = arith.constant 0 : i32
    %c0_i32_0 = arith.constant 0 : i32
    %c0_i32_1 = arith.constant 0 : i32
    return %arg0, %c0_i32, %c0_i32_0 : i32, i32, i32
  }
  func.func @transform_1(%arg0: i32) -> (i32, i32, i32) {
    %c0_i32 = arith.constant 0 : i32
    %c0_i32_0 = arith.constant 0 : i32
    %c0_i32_1 = arith.constant 0 : i32
    %c0_i32_2 = arith.constant 0 : i32
    return %c0_i32, %c0_i32_0, %c0_i32_1 : i32, i32, i32
  }
  func.func @transform_2(%arg0: i32) -> (i32, i32) {
    %c0_i32 = arith.constant 0 : i32
    %c0_i32_0 = arith.constant 0 : i32
    %c0_i32_1 = arith.constant 0 : i32
    return %c0_i32, %c0_i32_0 : i32, i32
  }
  func.func @transform_3(%arg0: i32) -> (i32, i32, i32) {
    %c0_i32 = arith.constant 0 : i32
    %c0_i32_0 = arith.constant 0 : i32
    %c0_i32_1 = arith.constant 0 : i32
    return %arg0, %c0_i32, %c0_i32_0 : i32, i32, i32
  }
}

module attributes {stable_mosaic.version = 11 : i64} {
  func.func @kernel(%arg0: i32, %arg1: memref<1x10x32xf32, #tpu.memory_space<vmem>>, %arg2: memref<7x32xf32, #tpu.memory_space<vmem>>, %arg3: memref<1x32xf32, #tpu.memory_space<vmem>>, %arg4: memref<1x32xf32, #tpu.memory_space<vmem>>, %arg5: memref<1x32xf32, #tpu.memory_space<vmem>>, %arg6: memref<32x128xbf16, #tpu.memory_space<vmem>>, %arg7: memref<1x128xf32, #tpu.memory_space<vmem>>, %arg8: memref<128x32xbf16, #tpu.memory_space<vmem>>, %arg9: memref<1x32xf32, #tpu.memory_space<vmem>>, %arg10: memref<1x4x32xf32, #tpu.memory_space<vmem>>) attributes {dimension_semantics = [#tpu.dimension_semantics<parallel>], iteration_bounds = array<i64: 2>, scalar_prefetch = 0 : i64, scratch_operands = 0 : i64, tpu.core_type = #tpu.core_type<tc>, window_params = [{transform_indices = @transform_0, window_bounds = array<i64: 1, 10, 32>}, {pipeline_mode = #tpu.pipeline_mode<synchronous>, transform_indices = @transform_1, window_bounds = array<i64: 7, 32>}, {pipeline_mode = #tpu.pipeline_mode<synchronous>, transform_indices = @transform_2, window_bounds = array<i64: 1, 32>}, {pipeline_mode = #tpu.pipeline_mode<synchronous>, transform_indices = @transform_3, window_bounds = array<i64: 1, 32>}, {pipeline_mode = #tpu.pipeline_mode<synchronous>, transform_indices = @transform_4, window_bounds = array<i64: 1, 32>}, {pipeline_mode = #tpu.pipeline_mode<synchronous>, transform_indices = @transform_5, window_bounds = array<i64: 32, 128>}, {pipeline_mode = #tpu.pipeline_mode<synchronous>, transform_indices = @transform_6, window_bounds = array<i64: 1, 128>}, {pipeline_mode = #tpu.pipeline_mode<synchronous>, transform_indices = @transform_7, window_bounds = array<i64: 128, 32>}, {pipeline_mode = #tpu.pipeline_mode<synchronous>, transform_indices = @transform_8, window_bounds = array<i64: 1, 32>}, {transform_indices = @transform_9, window_bounds = array<i64: 1, 4, 32>}]} {
    %c0 = arith.constant 0 : index
    %c0_0 = arith.constant 0 : index
    %c0_1 = arith.constant 0 : index
    %0 = vector.load %arg1[%c0, %c0_0, %c0_1] : memref<1x10x32xf32, #tpu.memory_space<vmem>>, vector<1x10x32xf32>
    %1 = vector.shape_cast %0 : vector<1x10x32xf32> to vector<10x32xf32>
    %c0_2 = arith.constant 0 : index
    %c0_3 = arith.constant 0 : index
    %2 = vector.load %arg2[%c0_2, %c0_3] : memref<7x32xf32, #tpu.memory_space<vmem>>, vector<7x32xf32>
    %3 = vector.extract_strided_slice %1 {offsets = [0, 0], sizes = [4, 32], strides = [1, 1]} : vector<10x32xf32> to vector<4x32xf32>
    %4 = vector.extract_strided_slice %2 {offsets = [0, 0], sizes = [1, 32], strides = [1, 1]} : vector<7x32xf32> to vector<1x32xf32>
    %5 = vector.broadcast %4 : vector<1x32xf32> to vector<4x32xf32>
    %6 = arith.mulf %3, %5 : vector<4x32xf32>
    %7 = vector.extract_strided_slice %1 {offsets = [1, 0], sizes = [4, 32], strides = [1, 1]} : vector<10x32xf32> to vector<4x32xf32>
    %8 = vector.extract_strided_slice %2 {offsets = [1, 0], sizes = [1, 32], strides = [1, 1]} : vector<7x32xf32> to vector<1x32xf32>
    %9 = vector.broadcast %8 : vector<1x32xf32> to vector<4x32xf32>
    %10 = arith.mulf %7, %9 : vector<4x32xf32>
    %11 = arith.addf %6, %10 : vector<4x32xf32>
    %12 = vector.extract_strided_slice %1 {offsets = [2, 0], sizes = [4, 32], strides = [1, 1]} : vector<10x32xf32> to vector<4x32xf32>
    %13 = vector.extract_strided_slice %2 {offsets = [2, 0], sizes = [1, 32], strides = [1, 1]} : vector<7x32xf32> to vector<1x32xf32>
    %14 = vector.broadcast %13 : vector<1x32xf32> to vector<4x32xf32>
    %15 = arith.mulf %12, %14 : vector<4x32xf32>
    %16 = arith.addf %11, %15 : vector<4x32xf32>
    %17 = vector.extract_strided_slice %1 {offsets = [3, 0], sizes = [4, 32], strides = [1, 1]} : vector<10x32xf32> to vector<4x32xf32>
    %18 = vector.extract_strided_slice %2 {offsets = [3, 0], sizes = [1, 32], strides = [1, 1]} : vector<7x32xf32> to vector<1x32xf32>
    %19 = vector.broadcast %18 : vector<1x32xf32> to vector<4x32xf32>
    %20 = arith.mulf %17, %19 : vector<4x32xf32>
    %21 = arith.addf %16, %20 : vector<4x32xf32>
    %22 = vector.extract_strided_slice %1 {offsets = [4, 0], sizes = [4, 32], strides = [1, 1]} : vector<10x32xf32> to vector<4x32xf32>
    %23 = vector.extract_strided_slice %2 {offsets = [4, 0], sizes = [1, 32], strides = [1, 1]} : vector<7x32xf32> to vector<1x32xf32>
    %24 = vector.broadcast %23 : vector<1x32xf32> to vector<4x32xf32>
    %25 = arith.mulf %22, %24 : vector<4x32xf32>
    %26 = arith.addf %21, %25 : vector<4x32xf32>
    %27 = vector.extract_strided_slice %1 {offsets = [5, 0], sizes = [4, 32], strides = [1, 1]} : vector<10x32xf32> to vector<4x32xf32>
    %28 = vector.extract_strided_slice %2 {offsets = [5, 0], sizes = [1, 32], strides = [1, 1]} : vector<7x32xf32> to vector<1x32xf32>
    %29 = vector.broadcast %28 : vector<1x32xf32> to vector<4x32xf32>
    %30 = arith.mulf %27, %29 : vector<4x32xf32>
    %31 = arith.addf %26, %30 : vector<4x32xf32>
    %32 = vector.extract_strided_slice %1 {offsets = [6, 0], sizes = [4, 32], strides = [1, 1]} : vector<10x32xf32> to vector<4x32xf32>
    %33 = vector.extract_strided_slice %2 {offsets = [6, 0], sizes = [1, 32], strides = [1, 1]} : vector<7x32xf32> to vector<1x32xf32>
    %34 = vector.broadcast %33 : vector<1x32xf32> to vector<4x32xf32>
    %35 = arith.mulf %32, %34 : vector<4x32xf32>
    %36 = arith.addf %31, %35 : vector<4x32xf32>
    %c0_4 = arith.constant 0 : index
    %c0_5 = arith.constant 0 : index
    %37 = vector.load %arg3[%c0_4, %c0_5] : memref<1x32xf32, #tpu.memory_space<vmem>>, vector<1x32xf32>
    %38 = vector.broadcast %37 : vector<1x32xf32> to vector<4x32xf32>
    %39 = arith.addf %36, %38 : vector<4x32xf32>
    %cst = arith.constant dense<0.000000e+00> : vector<4xf32>
    %40 = vector.multi_reduction <add>, %39, %cst [1] : vector<4x32xf32> to vector<4xf32>
    %41 = vector.shape_cast %40 : vector<4xf32> to vector<4x1xf32>
    %cst_6 = arith.constant 3.200000e+01 : f32
    %42 = vector.broadcast %cst_6 : f32 to vector<4x1xf32>
    %43 = arith.divf %41, %42 : vector<4x1xf32>
    %44 = vector.broadcast %43 : vector<4x1xf32> to vector<4x32xf32>
    %45 = arith.subf %39, %44 : vector<4x32xf32>
    %46 = arith.mulf %45, %45 : vector<4x32xf32>
    %cst_7 = arith.constant dense<0.000000e+00> : vector<4xf32>
    %47 = vector.multi_reduction <add>, %46, %cst_7 [1] : vector<4x32xf32> to vector<4xf32>
    %48 = vector.shape_cast %47 : vector<4xf32> to vector<4x1xf32>
    %cst_8 = arith.constant 3.200000e+01 : f32
    %49 = vector.broadcast %cst_8 : f32 to vector<4x1xf32>
    %50 = arith.divf %48, %49 : vector<4x1xf32>
    %cst_9 = arith.constant 9.99999974E-6 : f32
    %51 = vector.broadcast %cst_9 : f32 to vector<4x1xf32>
    %52 = arith.addf %50, %51 : vector<4x1xf32>
    %53 = math.rsqrt %52 : vector<4x1xf32>
    %54 = vector.broadcast %53 : vector<4x1xf32> to vector<4x32xf32>
    %55 = arith.mulf %45, %54 : vector<4x32xf32>
    %c0_10 = arith.constant 0 : index
    %c0_11 = arith.constant 0 : index
    %56 = vector.load %arg4[%c0_10, %c0_11] : memref<1x32xf32, #tpu.memory_space<vmem>>, vector<1x32xf32>
    %57 = vector.broadcast %56 : vector<1x32xf32> to vector<4x32xf32>
    %58 = arith.mulf %55, %57 : vector<4x32xf32>
    %c0_12 = arith.constant 0 : index
    %c0_13 = arith.constant 0 : index
    %59 = vector.load %arg5[%c0_12, %c0_13] : memref<1x32xf32, #tpu.memory_space<vmem>>, vector<1x32xf32>
    %60 = vector.broadcast %59 : vector<1x32xf32> to vector<4x32xf32>
    %61 = arith.addf %58, %60 : vector<4x32xf32>
    %62 = arith.truncf %61 : vector<4x32xf32> to vector<4x32xbf16>
    %c0_14 = arith.constant 0 : index
    %c0_15 = arith.constant 0 : index
    %63 = vector.load %arg6[%c0_14, %c0_15] : memref<32x128xbf16, #tpu.memory_space<vmem>>, vector<32x128xbf16>
    %cst_16 = arith.constant dense<0.000000e+00> : vector<4x128xf32>
    %64 = tpu.matmul %62, %63, %cst_16 {dimension_numbers = #tpu.dot_dimension_numbers<[1], [0], [0], [1], [0, 0, 1, 1], [], []>} : vector<4x32xbf16>, vector<32x128xbf16>, vector<4x128xf32> -> vector<4x128xf32>
    %c0_17 = arith.constant 0 : index
    %c0_18 = arith.constant 0 : index
    %65 = vector.load %arg7[%c0_17, %c0_18] : memref<1x128xf32, #tpu.memory_space<vmem>>, vector<1x128xf32>
    %66 = vector.broadcast %65 : vector<1x128xf32> to vector<4x128xf32>
    %67 = arith.addf %64, %66 : vector<4x128xf32>
    %cst_19 = arith.constant 0.707106769 : f32
    %68 = vector.broadcast %cst_19 : f32 to vector<4x128xf32>
    %69 = arith.mulf %67, %68 : vector<4x128xf32>
    %70 = math.absf %69 : vector<4x128xf32>
    %cst_20 = arith.constant 0.327591091 : f32
    %71 = vector.broadcast %cst_20 : f32 to vector<4x128xf32>
    %72 = arith.mulf %71, %70 : vector<4x128xf32>
    %cst_21 = arith.constant 1.000000e+00 : f32
    %73 = vector.broadcast %cst_21 : f32 to vector<4x128xf32>
    %74 = arith.addf %73, %72 : vector<4x128xf32>
    %cst_22 = arith.constant 1.000000e+00 : f32
    %75 = vector.broadcast %cst_22 : f32 to vector<4x128xf32>
    %76 = arith.divf %75, %74 : vector<4x128xf32>
    %cst_23 = arith.constant 1.06140542 : f32
    %77 = vector.broadcast %cst_23 : f32 to vector<4x128xf32>
    %78 = arith.mulf %77, %76 : vector<4x128xf32>
    %cst_24 = arith.constant 1.45315206 : f32
    %79 = vector.broadcast %cst_24 : f32 to vector<4x128xf32>
    %80 = arith.subf %78, %79 : vector<4x128xf32>
    %81 = arith.mulf %80, %76 : vector<4x128xf32>
    %cst_25 = arith.constant 1.42141378 : f32
    %82 = vector.broadcast %cst_25 : f32 to vector<4x128xf32>
    %83 = arith.addf %81, %82 : vector<4x128xf32>
    %84 = arith.mulf %83, %76 : vector<4x128xf32>
    %cst_26 = arith.constant 0.284496725 : f32
    %85 = vector.broadcast %cst_26 : f32 to vector<4x128xf32>
    %86 = arith.subf %84, %85 : vector<4x128xf32>
    %87 = arith.mulf %86, %76 : vector<4x128xf32>
    %cst_27 = arith.constant 0.254829586 : f32
    %88 = vector.broadcast %cst_27 : f32 to vector<4x128xf32>
    %89 = arith.addf %87, %88 : vector<4x128xf32>
    %90 = arith.mulf %89, %76 : vector<4x128xf32>
    %cst_28 = arith.constant 0.000000e+00 : f32
    %91 = vector.broadcast %cst_28 : f32 to vector<4x128xf32>
    %92 = arith.subf %91, %70 : vector<4x128xf32>
    %93 = arith.mulf %92, %70 : vector<4x128xf32>
    %94 = math.exp %93 : vector<4x128xf32>
    %95 = arith.mulf %90, %94 : vector<4x128xf32>
    %cst_29 = arith.constant 1.000000e+00 : f32
    %96 = vector.broadcast %cst_29 : f32 to vector<4x128xf32>
    %97 = arith.subf %96, %95 : vector<4x128xf32>
    %cst_30 = arith.constant 0.000000e+00 : f32
    %98 = vector.broadcast %cst_30 : f32 to vector<4x128xf32>
    %99 = arith.cmpf oge, %69, %98 : vector<4x128xf32>
    %cst_31 = arith.constant 0.000000e+00 : f32
    %100 = vector.broadcast %cst_31 : f32 to vector<4x128xf32>
    %101 = arith.subf %100, %97 : vector<4x128xf32>
    %102 = arith.select %99, %97, %101 : vector<4x128xi1>, vector<4x128xf32>
    %cst_32 = arith.constant 5.000000e-01 : f32
    %103 = vector.broadcast %cst_32 : f32 to vector<4x128xf32>
    %104 = arith.mulf %103, %67 : vector<4x128xf32>
    %cst_33 = arith.constant 1.000000e+00 : f32
    %105 = vector.broadcast %cst_33 : f32 to vector<4x128xf32>
    %106 = arith.addf %105, %102 : vector<4x128xf32>
    %107 = arith.mulf %104, %106 : vector<4x128xf32>
    %108 = arith.truncf %107 : vector<4x128xf32> to vector<4x128xbf16>
    %c0_34 = arith.constant 0 : index
    %c0_35 = arith.constant 0 : index
    %109 = vector.load %arg8[%c0_34, %c0_35] : memref<128x32xbf16, #tpu.memory_space<vmem>>, vector<128x32xbf16>
    %cst_36 = arith.constant dense<0.000000e+00> : vector<4x32xf32>
    %110 = tpu.matmul %108, %109, %cst_36 {dimension_numbers = #tpu.dot_dimension_numbers<[1], [0], [0], [1], [0, 0, 1, 1], [], []>} : vector<4x128xbf16>, vector<128x32xbf16>, vector<4x32xf32> -> vector<4x32xf32>
    %c0_37 = arith.constant 0 : index
    %c0_38 = arith.constant 0 : index
    %111 = vector.load %arg9[%c0_37, %c0_38] : memref<1x32xf32, #tpu.memory_space<vmem>>, vector<1x32xf32>
    %112 = vector.broadcast %111 : vector<1x32xf32> to vector<4x32xf32>
    %113 = arith.addf %110, %112 : vector<4x32xf32>
    %114 = vector.extract_strided_slice %1 {offsets = [3, 0], sizes = [4, 32], strides = [1, 1]} : vector<10x32xf32> to vector<4x32xf32>
    %115 = arith.addf %113, %114 : vector<4x32xf32>
    %116 = vector.shape_cast %115 : vector<4x32xf32> to vector<1x4x32xf32>
    %c0_39 = arith.constant 0 : index
    %c0_40 = arith.constant 0 : index
    %c0_41 = arith.constant 0 : index
    %117 = vector.load %arg10[%c0_39, %c0_40, %c0_41] : memref<1x4x32xf32, #tpu.memory_space<vmem>>, vector<1x4x32xf32>
    tpu.vector_store %arg10[%c0_39, %c0_40, %c0_41], %116 {strides = array<i32>} : memref<1x4x32xf32, #tpu.memory_space<vmem>>, vector<1x4x32xf32>,
    return
  }
  func.func @transform_0(%arg0: i32) -> (i32, i32, i32) {
    %c0_i32 = arith.constant 0 : i32
    %c0_i32_0 = arith.constant 0 : i32
    %c0_i32_1 = arith.constant 0 : i32
    return %arg0, %c0_i32, %c0_i32_0 : i32, i32, i32
  }
  func.func @transform_1(%arg0: i32) -> (i32, i32) {
    %c0_i32 = arith.constant 0 : i32
    %c0_i32_0 = arith.constant 0 : i32
    %c0_i32_1 = arith.constant 0 : i32
    return %c0_i32, %c0_i32_0 : i32, i32
  }
  func.func @transform_2(%arg0: i32) -> (i32, i32) {
    %c0_i32 = arith.constant 0 : i32
    %c0_i32_0 = arith.constant 0 : i32
    %c0_i32_1 = arith.constant 0 : i32
    return %c0_i32, %c0_i32_0 : i32, i32
  }
  func.func @transform_3(%arg0: i32) -> (i32, i32) {
    %c0_i32 = arith.constant 0 : i32
    %c0_i32_0 = arith.constant 0 : i32
    %c0_i32_1 = arith.constant 0 : i32
    return %c0_i32, %c0_i32_0 : i32, i32
  }
  func.func @transform_4(%arg0: i32) -> (i32, i32) {
    %c0_i32 = arith.constant 0 : i32
    %c0_i32_0 = arith.constant 0 : i32
    %c0_i32_1 = arith.constant 0 : i32
    return %c0_i32, %c0_i32_0 : i32, i32
  }
  func.func @transform_5(%arg0: i32) -> (i32, i32) {
    %c0_i32 = arith.constant 0 : i32
    %c0_i32_0 = arith.constant 0 : i32
    %c0_i32_1 = arith.constant 0 : i32
    return %c0_i32, %c0_i32_0 : i32, i32
  }
  func.func @transform_6(%arg0: i32) -> (i32, i32) {
    %c0_i32 = arith.constant 0 : i32
    %c0_i32_0 = arith.constant 0 : i32
    %c0_i32_1 = arith.constant 0 : i32
    return %c0_i32, %c0_i32_0 : i32, i32
  }
  func.func @transform_7(%arg0: i32) -> (i32, i32) {
    %c0_i32 = arith.constant 0 : i32
    %c0_i32_0 = arith.constant 0 : i32
    %c0_i32_1 = arith.constant 0 : i32
    return %c0_i32, %c0_i32_0 : i32, i32
  }
  func.func @transform_8(%arg0: i32) -> (i32, i32) {
    %c0_i32 = arith.constant 0 : i32
    %c0_i32_0 = arith.constant 0 : i32
    %c0_i32_1 = arith.constant 0 : i32
    return %c0_i32, %c0_i32_0 : i32, i32
  }
  func.func @transform_9(%arg0: i32) -> (i32, i32, i32) {
    %c0_i32 = arith.constant 0 : i32
    %c0_i32_0 = arith.constant 0 : i32
    %c0_i32_1 = arith.constant 0 : i32
    return %arg0, %c0_i32, %c0_i32_0 : i32, i32, i32
  }
}

module attributes {stable_mosaic.version = 11 : i64} {
  func.func @kernel(%arg0: i32, %arg1: memref<1x6x32xf32, #tpu.memory_space<vmem>>, %arg2: memref<3x32x32xbf16, #tpu.memory_space<vmem>>, %arg3: memref<1x32xf32, #tpu.memory_space<vmem>>, %arg4: memref<1x4x32xf32, #tpu.memory_space<vmem>>) attributes {dimension_semantics = [#tpu.dimension_semantics<parallel>], iteration_bounds = array<i64: 2>, scalar_prefetch = 0 : i64, scratch_operands = 0 : i64, tpu.core_type = #tpu.core_type<tc>, window_params = [{transform_indices = @transform_0, window_bounds = array<i64: 1, 6, 32>}, {pipeline_mode = #tpu.pipeline_mode<synchronous>, transform_indices = @transform_1, window_bounds = array<i64: 3, 32, 32>}, {pipeline_mode = #tpu.pipeline_mode<synchronous>, transform_indices = @transform_2, window_bounds = array<i64: 1, 32>}, {transform_indices = @transform_3, window_bounds = array<i64: 1, 4, 32>}]} {
    %c0 = arith.constant 0 : index
    %c0_0 = arith.constant 0 : index
    %c0_1 = arith.constant 0 : index
    %0 = vector.load %arg1[%c0, %c0_0, %c0_1] : memref<1x6x32xf32, #tpu.memory_space<vmem>>, vector<1x6x32xf32>
    %1 = vector.shape_cast %0 : vector<1x6x32xf32> to vector<6x32xf32>
    %c0_2 = arith.constant 0 : index
    %c0_3 = arith.constant 0 : index
    %c0_4 = arith.constant 0 : index
    %2 = vector.load %arg2[%c0_2, %c0_3, %c0_4] : memref<3x32x32xbf16, #tpu.memory_space<vmem>>, vector<3x32x32xbf16>
    %3 = vector.extract_strided_slice %1 {offsets = [0, 0], sizes = [4, 32], strides = [1, 1]} : vector<6x32xf32> to vector<4x32xf32>
    %4 = arith.truncf %3 : vector<4x32xf32> to vector<4x32xbf16>
    %5 = vector.extract_strided_slice %2 {offsets = [0, 0, 0], sizes = [1, 32, 32], strides = [1, 1, 1]} : vector<3x32x32xbf16> to vector<1x32x32xbf16>
    %6 = vector.shape_cast %5 : vector<1x32x32xbf16> to vector<32x32xbf16>
    %cst = arith.constant dense<0.000000e+00> : vector<4x32xf32>
    %7 = tpu.matmul %4, %6, %cst {dimension_numbers = #tpu.dot_dimension_numbers<[1], [0], [0], [1], [0, 0, 1, 1], [], []>} : vector<4x32xbf16>, vector<32x32xbf16>, vector<4x32xf32> -> vector<4x32xf32>
    %8 = vector.extract_strided_slice %1 {offsets = [1, 0], sizes = [4, 32], strides = [1, 1]} : vector<6x32xf32> to vector<4x32xf32>
    %9 = arith.truncf %8 : vector<4x32xf32> to vector<4x32xbf16>
    %10 = vector.extract_strided_slice %2 {offsets = [1, 0, 0], sizes = [1, 32, 32], strides = [1, 1, 1]} : vector<3x32x32xbf16> to vector<1x32x32xbf16>
    %11 = vector.shape_cast %10 : vector<1x32x32xbf16> to vector<32x32xbf16>
    %cst_5 = arith.constant dense<0.000000e+00> : vector<4x32xf32>
    %12 = tpu.matmul %9, %11, %cst_5 {dimension_numbers = #tpu.dot_dimension_numbers<[1], [0], [0], [1], [0, 0, 1, 1], [], []>} : vector<4x32xbf16>, vector<32x32xbf16>, vector<4x32xf32> -> vector<4x32xf32>
    %13 = arith.addf %7, %12 : vector<4x32xf32>
    %14 = vector.extract_strided_slice %1 {offsets = [2, 0], sizes = [4, 32], strides = [1, 1]} : vector<6x32xf32> to vector<4x32xf32>
    %15 = arith.truncf %14 : vector<4x32xf32> to vector<4x32xbf16>
    %16 = vector.extract_strided_slice %2 {offsets = [2, 0, 0], sizes = [1, 32, 32], strides = [1, 1, 1]} : vector<3x32x32xbf16> to vector<1x32x32xbf16>
    %17 = vector.shape_cast %16 : vector<1x32x32xbf16> to vector<32x32xbf16>
    %cst_6 = arith.constant dense<0.000000e+00> : vector<4x32xf32>
    %18 = tpu.matmul %15, %17, %cst_6 {dimension_numbers = #tpu.dot_dimension_numbers<[1], [0], [0], [1], [0, 0, 1, 1], [], []>} : vector<4x32xbf16>, vector<32x32xbf16>, vector<4x32xf32> -> vector<4x32xf32>
    %19 = arith.addf %13, %18 : vector<4x32xf32>
    %c0_7 = arith.constant 0 : index
    %c0_8 = arith.constant 0 : index
    %20 = vector.load %arg3[%c0_7, %c0_8] : memref<1x32xf32, #tpu.memory_space<vmem>>, vector<1x32xf32>
    %21 = vector.broadcast %20 : vector<1x32xf32> to vector<4x32xf32>
    %22 = arith.addf %19, %21 : vector<4x32xf32>
    %23 = vector.shape_cast %22 : vector<4x32xf32> to vector<1x4x32xf32>
    %c0_9 = arith.constant 0 : index
    %c0_10 = arith.constant 0 : index
    %c0_11 = arith.constant 0 : index
    %24 = vector.load %arg4[%c0_9, %c0_10, %c0_11] : memref<1x4x32xf32, #tpu.memory_space<vmem>>, vector<1x4x32xf32>
    tpu.vector_store %arg4[%c0_9, %c0_10, %c0_11], %23 {strides = array<i32>} : memref<1x4x32xf32, #tpu.memory_space<vmem>>, vector<1x4x32xf32>,
    return
  }
  func.func @transform_0(%arg0: i32) -> (i32, i32, i32) {
    %c0_i32 = arith.constant 0 : i32
    %c0_i32_0 = arith.constant 0 : i32
    %c0_i32_1 = arith.constant 0 : i32
    return %arg0, %c0_i32, %c0_i32_0 : i32, i32, i32
  }
  func.func @transform_1(%arg0: i32) -> (i32, i32, i32) {
    %c0_i32 = arith.constant 0 : i32
    %c0_i32_0 = arith.constant 0 : i32
    %c0_i32_1 = arith.constant 0 : i32
    %c0_i32_2 = arith.constant 0 : i32
    return %c0_i32, %c0_i32_0, %c0_i32_1 : i32, i32, i32
  }
  func.func @transform_2(%arg0: i32) -> (i32, i32) {
    %c0_i32 = arith.constant 0 : i32
    %c0_i32_0 = arith.constant 0 : i32
    %c0_i32_1 = arith.constant 0 : i32
    return %c0_i32, %c0_i32_0 : i32, i32
  }
  func.func @transform_3(%arg0: i32) -> (i32, i32, i32) {
    %c0_i32 = arith.constant 0 : i32
    %c0_i32_0 = arith.constant 0 : i32
    %c0_i32_1 = arith.constant 0 : i32
    return %arg0, %c0_i32, %c0_i32_0 : i32, i32, i32
  }
}

module attributes {stable_mosaic.version = 11 : i64} {
  func.func @_vae_head_kernel(%arg0: i32, %arg1: memref<2x128xf32, #tpu.memory_space<vmem>>, %arg2: memref<128x16xbf16, #tpu.memory_space<vmem>>, %arg3: memref<1x16xf32, #tpu.memory_space<vmem>>, %arg4: memref<128x16xbf16, #tpu.memory_space<vmem>>, %arg5: memref<1x16xf32, #tpu.memory_space<vmem>>, %arg6: memref<16x128xbf16, #tpu.memory_space<vmem>>, %arg7: memref<1x128xf32, #tpu.memory_space<vmem>>, %arg8: memref<2x16xf32, #tpu.memory_space<vmem>>, %arg9: memref<2x16xf32, #tpu.memory_space<vmem>>, %arg10: memref<2x16xf32, #tpu.memory_space<vmem>>, %arg11: memref<2x128xf32, #tpu.memory_space<vmem>>) attributes {dimension_semantics = [#tpu.dimension_semantics<arbitrary>], iteration_bounds = array<i64: 1>, scalar_prefetch = 0 : i64, scratch_operands = 0 : i64, tpu.core_type = #tpu.core_type<tc>, window_params = [{pipeline_mode = #tpu.pipeline_mode<synchronous>, transform_indices = @transform_0, window_bounds = array<i64: 2, 128>}, {pipeline_mode = #tpu.pipeline_mode<synchronous>, transform_indices = @transform_1, window_bounds = array<i64: 128, 16>}, {pipeline_mode = #tpu.pipeline_mode<synchronous>, transform_indices = @transform_2, window_bounds = array<i64: 1, 16>}, {pipeline_mode = #tpu.pipeline_mode<synchronous>, transform_indices = @transform_3, window_bounds = array<i64: 128, 16>}, {pipeline_mode = #tpu.pipeline_mode<synchronous>, transform_indices = @transform_4, window_bounds = array<i64: 1, 16>}, {pipeline_mode = #tpu.pipeline_mode<synchronous>, transform_indices = @transform_5, window_bounds = array<i64: 16, 128>}, {pipeline_mode = #tpu.pipeline_mode<synchronous>, transform_indices = @transform_6, window_bounds = array<i64: 1, 128>}, {pipeline_mode = #tpu.pipeline_mode<synchronous>, transform_indices = @transform_7, window_bounds = array<i64: 2, 16>}, {pipeline_mode = #tpu.pipeline_mode<synchronous>, transform_indices = @transform_8, window_bounds = array<i64: 2, 16>}, {pipeline_mode = #tpu.pipeline_mode<synchronous>, transform_indices = @transform_9, window_bounds = array<i64: 2, 16>}, {pipeline_mode = #tpu.pipeline_mode<synchronous>, transform_indices = @transform_10, window_bounds = array<i64: 2, 128>}]} {
    %c0 = arith.constant 0 : index
    %c0_0 = arith.constant 0 : index
    %0 = vector.load %arg1[%c0, %c0_0] : memref<2x128xf32, #tpu.memory_space<vmem>>, vector<2x128xf32>
    %1 = arith.truncf %0 : vector<2x128xf32> to vector<2x128xbf16>
    %c0_1 = arith.constant 0 : index
    %c0_2 = arith.constant 0 : index
    %2 = vector.load %arg2[%c0_1, %c0_2] : memref<128x16xbf16, #tpu.memory_space<vmem>>, vector<128x16xbf16>
    %cst = arith.constant dense<0.000000e+00> : vector<2x16xf32>
    %3 = tpu.matmul %1, %2, %cst {dimension_numbers = #tpu.dot_dimension_numbers<[1], [0], [0], [1], [0, 0, 1, 1], [], []>} : vector<2x128xbf16>, vector<128x16xbf16>, vector<2x16xf32> -> vector<2x16xf32>
    %c0_3 = arith.constant 0 : index
    %c0_4 = arith.constant 0 : index
    %4 = vector.load %arg3[%c0_3, %c0_4] : memref<1x16xf32, #tpu.memory_space<vmem>>, vector<1x16xf32>
    %5 = vector.broadcast %4 : vector<1x16xf32> to vector<2x16xf32>
    %6 = arith.addf %3, %5 : vector<2x16xf32>
    %c0_5 = arith.constant 0 : index
    %c0_6 = arith.constant 0 : index
    %7 = vector.load %arg4[%c0_5, %c0_6] : memref<128x16xbf16, #tpu.memory_space<vmem>>, vector<128x16xbf16>
    %cst_7 = arith.constant dense<0.000000e+00> : vector<2x16xf32>
    %8 = tpu.matmul %1, %7, %cst_7 {dimension_numbers = #tpu.dot_dimension_numbers<[1], [0], [0], [1], [0, 0, 1, 1], [], []>} : vector<2x128xbf16>, vector<128x16xbf16>, vector<2x16xf32> -> vector<2x16xf32>
    %c0_8 = arith.constant 0 : index
    %c0_9 = arith.constant 0 : index
    %9 = vector.load %arg5[%c0_8, %c0_9] : memref<1x16xf32, #tpu.memory_space<vmem>>, vector<1x16xf32>
    %10 = vector.broadcast %9 : vector<1x16xf32> to vector<2x16xf32>
    %11 = arith.addf %8, %10 : vector<2x16xf32>
    %c0_10 = arith.constant 0 : index
    %c0_11 = arith.constant 0 : index
    %12 = vector.load %arg8[%c0_10, %c0_11] : memref<2x16xf32, #tpu.memory_space<vmem>>, vector<2x16xf32>
    %cst_12 = arith.constant 5.000000e-01 : f32
    %13 = vector.broadcast %cst_12 : f32 to vector<2x16xf32>
    %14 = arith.mulf %13, %11 : vector<2x16xf32>
    %15 = math.exp %14 : vector<2x16xf32>
    %16 = arith.mulf %12, %15 : vector<2x16xf32>
    %17 = arith.addf %6, %16 : vector<2x16xf32>
    %18 = arith.truncf %17 : vector<2x16xf32> to vector<2x16xbf16>
    %c0_13 = arith.constant 0 : index
    %c0_14 = arith.constant 0 : index
    %19 = vector.load %arg6[%c0_13, %c0_14] : memref<16x128xbf16, #tpu.memory_space<vmem>>, vector<16x128xbf16>
    %cst_15 = arith.constant dense<0.000000e+00> : vector<2x128xf32>
    %20 = tpu.matmul %18, %19, %cst_15 {dimension_numbers = #tpu.dot_dimension_numbers<[1], [0], [0], [1], [0, 0, 1, 1], [], []>} : vector<2x16xbf16>, vector<16x128xbf16>, vector<2x128xf32> -> vector<2x128xf32>
    %c0_16 = arith.constant 0 : index
    %c0_17 = arith.constant 0 : index
    %21 = vector.load %arg7[%c0_16, %c0_17] : memref<1x128xf32, #tpu.memory_space<vmem>>, vector<1x128xf32>
    %22 = vector.broadcast %21 : vector<1x128xf32> to vector<2x128xf32>
    %23 = arith.addf %20, %22 : vector<2x128xf32>
    %c0_18 = arith.constant 0 : index
    %c0_19 = arith.constant 0 : index
    %24 = vector.load %arg9[%c0_18, %c0_19] : memref<2x16xf32, #tpu.memory_space<vmem>>, vector<2x16xf32>
    tpu.vector_store %arg9[%c0_18, %c0_19], %6 {strides = array<i32>} : memref<2x16xf32, #tpu.memory_space<vmem>>, vector<2x16xf32>,
    %c0_20 = arith.constant 0 : index
    %c0_21 = arith.constant 0 : index
    %25 = vector.load %arg10[%c0_20, %c0_21] : memref<2x16xf32, #tpu.memory_space<vmem>>, vector<2x16xf32>
    tpu.vector_store %arg10[%c0_20, %c0_21], %11 {strides = array<i32>} : memref<2x16xf32, #tpu.memory_space<vmem>>, vector<2x16xf32>,
    %c0_22 = arith.constant 0 : index
    %c0_23 = arith.constant 0 : index
    %26 = vector.load %arg11[%c0_22, %c0_23] : memref<2x128xf32, #tpu.memory_space<vmem>>, vector<2x128xf32>
    tpu.vector_store %arg11[%c0_22, %c0_23], %23 {strides = array<i32>} : memref<2x128xf32, #tpu.memory_space<vmem>>, vector<2x128xf32>,
    return
  }
  func.func @transform_0(%arg0: i32) -> (i32, i32) {
    %c0_i32 = arith.constant 0 : i32
    %c0_i32_0 = arith.constant 0 : i32
    %c0_i32_1 = arith.constant 0 : i32
    return %c0_i32, %c0_i32_0 : i32, i32
  }
  func.func @transform_1(%arg0: i32) -> (i32, i32) {
    %c0_i32 = arith.constant 0 : i32
    %c0_i32_0 = arith.constant 0 : i32
    %c0_i32_1 = arith.constant 0 : i32
    return %c0_i32, %c0_i32_0 : i32, i32
  }
  func.func @transform_2(%arg0: i32) -> (i32, i32) {
    %c0_i32 = arith.constant 0 : i32
    %c0_i32_0 = arith.constant 0 : i32
    %c0_i32_1 = arith.constant 0 : i32
    return %c0_i32, %c0_i32_0 : i32, i32
  }
  func.func @transform_3(%arg0: i32) -> (i32, i32) {
    %c0_i32 = arith.constant 0 : i32
    %c0_i32_0 = arith.constant 0 : i32
    %c0_i32_1 = arith.constant 0 : i32
    return %c0_i32, %c0_i32_0 : i32, i32
  }
  func.func @transform_4(%arg0: i32) -> (i32, i32) {
    %c0_i32 = arith.constant 0 : i32
    %c0_i32_0 = arith.constant 0 : i32
    %c0_i32_1 = arith.constant 0 : i32
    return %c0_i32, %c0_i32_0 : i32, i32
  }
  func.func @transform_5(%arg0: i32) -> (i32, i32) {
    %c0_i32 = arith.constant 0 : i32
    %c0_i32_0 = arith.constant 0 : i32
    %c0_i32_1 = arith.constant 0 : i32
    return %c0_i32, %c0_i32_0 : i32, i32
  }
  func.func @transform_6(%arg0: i32) -> (i32, i32) {
    %c0_i32 = arith.constant 0 : i32
    %c0_i32_0 = arith.constant 0 : i32
    %c0_i32_1 = arith.constant 0 : i32
    return %c0_i32, %c0_i32_0 : i32, i32
  }
  func.func @transform_7(%arg0: i32) -> (i32, i32) {
    %c0_i32 = arith.constant 0 : i32
    %c0_i32_0 = arith.constant 0 : i32
    %c0_i32_1 = arith.constant 0 : i32
    return %c0_i32, %c0_i32_0 : i32, i32
  }
  func.func @transform_8(%arg0: i32) -> (i32, i32) {
    %c0_i32 = arith.constant 0 : i32
    %c0_i32_0 = arith.constant 0 : i32
    %c0_i32_1 = arith.constant 0 : i32
    return %c0_i32, %c0_i32_0 : i32, i32
  }
  func.func @transform_9(%arg0: i32) -> (i32, i32) {
    %c0_i32 = arith.constant 0 : i32
    %c0_i32_0 = arith.constant 0 : i32
    %c0_i32_1 = arith.constant 0 : i32
    return %c0_i32, %c0_i32_0 : i32, i32
  }
  func.func @transform_10(%arg0: i32) -> (i32, i32) {
    %c0_i32 = arith.constant 0 : i32
    %c0_i32_0 = arith.constant 0 : i32
    %c0_i32_1 = arith.constant 0 : i32
    return %c0_i32, %c0_i32_0 : i32, i32
  }
}

module attributes {stable_mosaic.version = 11 : i64} {
  func.func @kernel(%arg0: i32, %arg1: memref<1x6x32xf32, #tpu.memory_space<vmem>>, %arg2: memref<3x32x32xbf16, #tpu.memory_space<vmem>>, %arg3: memref<1x32xf32, #tpu.memory_space<vmem>>, %arg4: memref<1x4x32xf32, #tpu.memory_space<vmem>>) attributes {dimension_semantics = [#tpu.dimension_semantics<parallel>], iteration_bounds = array<i64: 2>, scalar_prefetch = 0 : i64, scratch_operands = 0 : i64, tpu.core_type = #tpu.core_type<tc>, window_params = [{transform_indices = @transform_0, window_bounds = array<i64: 1, 6, 32>}, {pipeline_mode = #tpu.pipeline_mode<synchronous>, transform_indices = @transform_1, window_bounds = array<i64: 3, 32, 32>}, {pipeline_mode = #tpu.pipeline_mode<synchronous>, transform_indices = @transform_2, window_bounds = array<i64: 1, 32>}, {transform_indices = @transform_3, window_bounds = array<i64: 1, 4, 32>}]} {
    %c0 = arith.constant 0 : index
    %c0_0 = arith.constant 0 : index
    %c0_1 = arith.constant 0 : index
    %0 = vector.load %arg1[%c0, %c0_0, %c0_1] : memref<1x6x32xf32, #tpu.memory_space<vmem>>, vector<1x6x32xf32>
    %1 = vector.shape_cast %0 : vector<1x6x32xf32> to vector<6x32xf32>
    %c0_2 = arith.constant 0 : index
    %c0_3 = arith.constant 0 : index
    %c0_4 = arith.constant 0 : index
    %2 = vector.load %arg2[%c0_2, %c0_3, %c0_4] : memref<3x32x32xbf16, #tpu.memory_space<vmem>>, vector<3x32x32xbf16>
    %3 = vector.extract_strided_slice %1 {offsets = [0, 0], sizes = [4, 32], strides = [1, 1]} : vector<6x32xf32> to vector<4x32xf32>
    %4 = arith.truncf %3 : vector<4x32xf32> to vector<4x32xbf16>
    %5 = vector.extract_strided_slice %2 {offsets = [0, 0, 0], sizes = [1, 32, 32], strides = [1, 1, 1]} : vector<3x32x32xbf16> to vector<1x32x32xbf16>
    %6 = vector.shape_cast %5 : vector<1x32x32xbf16> to vector<32x32xbf16>
    %cst = arith.constant dense<0.000000e+00> : vector<4x32xf32>
    %7 = tpu.matmul %4, %6, %cst {dimension_numbers = #tpu.dot_dimension_numbers<[1], [0], [0], [1], [0, 0, 1, 1], [], []>} : vector<4x32xbf16>, vector<32x32xbf16>, vector<4x32xf32> -> vector<4x32xf32>
    %8 = vector.extract_strided_slice %1 {offsets = [1, 0], sizes = [4, 32], strides = [1, 1]} : vector<6x32xf32> to vector<4x32xf32>
    %9 = arith.truncf %8 : vector<4x32xf32> to vector<4x32xbf16>
    %10 = vector.extract_strided_slice %2 {offsets = [1, 0, 0], sizes = [1, 32, 32], strides = [1, 1, 1]} : vector<3x32x32xbf16> to vector<1x32x32xbf16>
    %11 = vector.shape_cast %10 : vector<1x32x32xbf16> to vector<32x32xbf16>
    %cst_5 = arith.constant dense<0.000000e+00> : vector<4x32xf32>
    %12 = tpu.matmul %9, %11, %cst_5 {dimension_numbers = #tpu.dot_dimension_numbers<[1], [0], [0], [1], [0, 0, 1, 1], [], []>} : vector<4x32xbf16>, vector<32x32xbf16>, vector<4x32xf32> -> vector<4x32xf32>
    %13 = arith.addf %7, %12 : vector<4x32xf32>
    %14 = vector.extract_strided_slice %1 {offsets = [2, 0], sizes = [4, 32], strides = [1, 1]} : vector<6x32xf32> to vector<4x32xf32>
    %15 = arith.truncf %14 : vector<4x32xf32> to vector<4x32xbf16>
    %16 = vector.extract_strided_slice %2 {offsets = [2, 0, 0], sizes = [1, 32, 32], strides = [1, 1, 1]} : vector<3x32x32xbf16> to vector<1x32x32xbf16>
    %17 = vector.shape_cast %16 : vector<1x32x32xbf16> to vector<32x32xbf16>
    %cst_6 = arith.constant dense<0.000000e+00> : vector<4x32xf32>
    %18 = tpu.matmul %15, %17, %cst_6 {dimension_numbers = #tpu.dot_dimension_numbers<[1], [0], [0], [1], [0, 0, 1, 1], [], []>} : vector<4x32xbf16>, vector<32x32xbf16>, vector<4x32xf32> -> vector<4x32xf32>
    %19 = arith.addf %13, %18 : vector<4x32xf32>
    %c0_7 = arith.constant 0 : index
    %c0_8 = arith.constant 0 : index
    %20 = vector.load %arg3[%c0_7, %c0_8] : memref<1x32xf32, #tpu.memory_space<vmem>>, vector<1x32xf32>
    %21 = vector.broadcast %20 : vector<1x32xf32> to vector<4x32xf32>
    %22 = arith.addf %19, %21 : vector<4x32xf32>
    %cst_9 = arith.constant 0.000000e+00 : f32
    %23 = vector.broadcast %cst_9 : f32 to vector<4x32xf32>
    %24 = arith.maximumf %22, %23 : vector<4x32xf32>
    %25 = vector.shape_cast %24 : vector<4x32xf32> to vector<1x4x32xf32>
    %c0_10 = arith.constant 0 : index
    %c0_11 = arith.constant 0 : index
    %c0_12 = arith.constant 0 : index
    %26 = vector.load %arg4[%c0_10, %c0_11, %c0_12] : memref<1x4x32xf32, #tpu.memory_space<vmem>>, vector<1x4x32xf32>
    tpu.vector_store %arg4[%c0_10, %c0_11, %c0_12], %25 {strides = array<i32>} : memref<1x4x32xf32, #tpu.memory_space<vmem>>, vector<1x4x32xf32>,
    return
  }
  func.func @transform_0(%arg0: i32) -> (i32, i32, i32) {
    %c0_i32 = arith.constant 0 : i32
    %c0_i32_0 = arith.constant 0 : i32
    %c0_i32_1 = arith.constant 0 : i32
    return %arg0, %c0_i32, %c0_i32_0 : i32, i32, i32
  }
  func.func @transform_1(%arg0: i32) -> (i32, i32, i32) {
    %c0_i32 = arith.constant 0 : i32
    %c0_i32_0 = arith.constant 0 : i32
    %c0_i32_1 = arith.constant 0 : i32
    %c0_i32_2 = arith.constant 0 : i32
    return %c0_i32, %c0_i32_0, %c0_i32_1 : i32, i32, i32
  }
  func.func @transform_2(%arg0: i32) -> (i32, i32) {
    %c0_i32 = arith.constant 0 : i32
    %c0_i32_0 = arith.constant 0 : i32
    %c0_i32_1 = arith.constant 0 : i32
    return %c0_i32, %c0_i32_0 : i32, i32
  }
  func.func @transform_3(%arg0: i32) -> (i32, i32, i32) {
    %c0_i32 = arith.constant 0 : i32
    %c0_i32_0 = arith.constant 0 : i32
    %c0_i32_1 = arith.constant 0 : i32
    return %arg0, %c0_i32, %c0_i32_0 : i32, i32, i32
  }
}

module attributes {stable_mosaic.version = 11 : i64} {
  func.func @kernel(%arg0: i32, %arg1: memref<1x18x32xf32, #tpu.memory_space<vmem>>, %arg2: memref<3x32x32xbf16, #tpu.memory_space<vmem>>, %arg3: memref<1x32xf32, #tpu.memory_space<vmem>>, %arg4: memref<1x16x32xf32, #tpu.memory_space<vmem>>) attributes {dimension_semantics = [#tpu.dimension_semantics<parallel>], iteration_bounds = array<i64: 2>, scalar_prefetch = 0 : i64, scratch_operands = 0 : i64, tpu.core_type = #tpu.core_type<tc>, window_params = [{transform_indices = @transform_0, window_bounds = array<i64: 1, 18, 32>}, {pipeline_mode = #tpu.pipeline_mode<synchronous>, transform_indices = @transform_1, window_bounds = array<i64: 3, 32, 32>}, {pipeline_mode = #tpu.pipeline_mode<synchronous>, transform_indices = @transform_2, window_bounds = array<i64: 1, 32>}, {transform_indices = @transform_3, window_bounds = array<i64: 1, 16, 32>}]} {
    %c0 = arith.constant 0 : index
    %c0_0 = arith.constant 0 : index
    %c0_1 = arith.constant 0 : index
    %0 = vector.load %arg1[%c0, %c0_0, %c0_1] : memref<1x18x32xf32, #tpu.memory_space<vmem>>, vector<1x18x32xf32>
    %1 = vector.shape_cast %0 : vector<1x18x32xf32> to vector<18x32xf32>
    %c0_2 = arith.constant 0 : index
    %c0_3 = arith.constant 0 : index
    %c0_4 = arith.constant 0 : index
    %2 = vector.load %arg2[%c0_2, %c0_3, %c0_4] : memref<3x32x32xbf16, #tpu.memory_space<vmem>>, vector<3x32x32xbf16>
    %3 = vector.extract_strided_slice %1 {offsets = [0, 0], sizes = [16, 32], strides = [1, 1]} : vector<18x32xf32> to vector<16x32xf32>
    %4 = arith.truncf %3 : vector<16x32xf32> to vector<16x32xbf16>
    %5 = vector.extract_strided_slice %2 {offsets = [0, 0, 0], sizes = [1, 32, 32], strides = [1, 1, 1]} : vector<3x32x32xbf16> to vector<1x32x32xbf16>
    %6 = vector.shape_cast %5 : vector<1x32x32xbf16> to vector<32x32xbf16>
    %cst = arith.constant dense<0.000000e+00> : vector<16x32xf32>
    %7 = tpu.matmul %4, %6, %cst {dimension_numbers = #tpu.dot_dimension_numbers<[1], [0], [0], [1], [0, 0, 1, 1], [], []>} : vector<16x32xbf16>, vector<32x32xbf16>, vector<16x32xf32> -> vector<16x32xf32>
    %8 = vector.extract_strided_slice %1 {offsets = [1, 0], sizes = [16, 32], strides = [1, 1]} : vector<18x32xf32> to vector<16x32xf32>
    %9 = arith.truncf %8 : vector<16x32xf32> to vector<16x32xbf16>
    %10 = vector.extract_strided_slice %2 {offsets = [1, 0, 0], sizes = [1, 32, 32], strides = [1, 1, 1]} : vector<3x32x32xbf16> to vector<1x32x32xbf16>
    %11 = vector.shape_cast %10 : vector<1x32x32xbf16> to vector<32x32xbf16>
    %cst_5 = arith.constant dense<0.000000e+00> : vector<16x32xf32>
    %12 = tpu.matmul %9, %11, %cst_5 {dimension_numbers = #tpu.dot_dimension_numbers<[1], [0], [0], [1], [0, 0, 1, 1], [], []>} : vector<16x32xbf16>, vector<32x32xbf16>, vector<16x32xf32> -> vector<16x32xf32>
    %13 = arith.addf %7, %12 : vector<16x32xf32>
    %14 = vector.extract_strided_slice %1 {offsets = [2, 0], sizes = [16, 32], strides = [1, 1]} : vector<18x32xf32> to vector<16x32xf32>
    %15 = arith.truncf %14 : vector<16x32xf32> to vector<16x32xbf16>
    %16 = vector.extract_strided_slice %2 {offsets = [2, 0, 0], sizes = [1, 32, 32], strides = [1, 1, 1]} : vector<3x32x32xbf16> to vector<1x32x32xbf16>
    %17 = vector.shape_cast %16 : vector<1x32x32xbf16> to vector<32x32xbf16>
    %cst_6 = arith.constant dense<0.000000e+00> : vector<16x32xf32>
    %18 = tpu.matmul %15, %17, %cst_6 {dimension_numbers = #tpu.dot_dimension_numbers<[1], [0], [0], [1], [0, 0, 1, 1], [], []>} : vector<16x32xbf16>, vector<32x32xbf16>, vector<16x32xf32> -> vector<16x32xf32>
    %19 = arith.addf %13, %18 : vector<16x32xf32>
    %c0_7 = arith.constant 0 : index
    %c0_8 = arith.constant 0 : index
    %20 = vector.load %arg3[%c0_7, %c0_8] : memref<1x32xf32, #tpu.memory_space<vmem>>, vector<1x32xf32>
    %21 = vector.broadcast %20 : vector<1x32xf32> to vector<16x32xf32>
    %22 = arith.addf %19, %21 : vector<16x32xf32>
    %cst_9 = arith.constant 0.000000e+00 : f32
    %23 = vector.broadcast %cst_9 : f32 to vector<16x32xf32>
    %24 = arith.maximumf %22, %23 : vector<16x32xf32>
    %25 = vector.shape_cast %24 : vector<16x32xf32> to vector<1x16x32xf32>
    %c0_10 = arith.constant 0 : index
    %c0_11 = arith.constant 0 : index
    %c0_12 = arith.constant 0 : index
    %26 = vector.load %arg4[%c0_10, %c0_11, %c0_12] : memref<1x16x32xf32, #tpu.memory_space<vmem>>, vector<1x16x32xf32>
    tpu.vector_store %arg4[%c0_10, %c0_11, %c0_12], %25 {strides = array<i32>} : memref<1x16x32xf32, #tpu.memory_space<vmem>>, vector<1x16x32xf32>,
    return
  }
  func.func @transform_0(%arg0: i32) -> (i32, i32, i32) {
    %c0_i32 = arith.constant 0 : i32
    %c0_i32_0 = arith.constant 0 : i32
    %c0_i32_1 = arith.constant 0 : i32
    return %arg0, %c0_i32, %c0_i32_0 : i32, i32, i32
  }
  func.func @transform_1(%arg0: i32) -> (i32, i32, i32) {
    %c0_i32 = arith.constant 0 : i32
    %c0_i32_0 = arith.constant 0 : i32
    %c0_i32_1 = arith.constant 0 : i32
    %c0_i32_2 = arith.constant 0 : i32
    return %c0_i32, %c0_i32_0, %c0_i32_1 : i32, i32, i32
  }
  func.func @transform_2(%arg0: i32) -> (i32, i32) {
    %c0_i32 = arith.constant 0 : i32
    %c0_i32_0 = arith.constant 0 : i32
    %c0_i32_1 = arith.constant 0 : i32
    return %c0_i32, %c0_i32_0 : i32, i32
  }
  func.func @transform_3(%arg0: i32) -> (i32, i32, i32) {
    %c0_i32 = arith.constant 0 : i32
    %c0_i32_0 = arith.constant 0 : i32
    %c0_i32_1 = arith.constant 0 : i32
    return %arg0, %c0_i32, %c0_i32_0 : i32, i32, i32
  }
}

module attributes {stable_mosaic.version = 11 : i64} {
  func.func @kernel(%arg0: i32, %arg1: memref<1x18x32xf32, #tpu.memory_space<vmem>>, %arg2: memref<3x32x8xbf16, #tpu.memory_space<vmem>>, %arg3: memref<1x8xf32, #tpu.memory_space<vmem>>, %arg4: memref<1x16x8xf32, #tpu.memory_space<vmem>>) attributes {dimension_semantics = [#tpu.dimension_semantics<parallel>], iteration_bounds = array<i64: 2>, scalar_prefetch = 0 : i64, scratch_operands = 0 : i64, tpu.core_type = #tpu.core_type<tc>, window_params = [{transform_indices = @transform_0, window_bounds = array<i64: 1, 18, 32>}, {pipeline_mode = #tpu.pipeline_mode<synchronous>, transform_indices = @transform_1, window_bounds = array<i64: 3, 32, 8>}, {pipeline_mode = #tpu.pipeline_mode<synchronous>, transform_indices = @transform_2, window_bounds = array<i64: 1, 8>}, {transform_indices = @transform_3, window_bounds = array<i64: 1, 16, 8>}]} {
    %c0 = arith.constant 0 : index
    %c0_0 = arith.constant 0 : index
    %c0_1 = arith.constant 0 : index
    %0 = vector.load %arg1[%c0, %c0_0, %c0_1] : memref<1x18x32xf32, #tpu.memory_space<vmem>>, vector<1x18x32xf32>
    %1 = vector.shape_cast %0 : vector<1x18x32xf32> to vector<18x32xf32>
    %c0_2 = arith.constant 0 : index
    %c0_3 = arith.constant 0 : index
    %c0_4 = arith.constant 0 : index
    %2 = vector.load %arg2[%c0_2, %c0_3, %c0_4] : memref<3x32x8xbf16, #tpu.memory_space<vmem>>, vector<3x32x8xbf16>
    %3 = vector.extract_strided_slice %1 {offsets = [0, 0], sizes = [16, 32], strides = [1, 1]} : vector<18x32xf32> to vector<16x32xf32>
    %4 = arith.truncf %3 : vector<16x32xf32> to vector<16x32xbf16>
    %5 = vector.extract_strided_slice %2 {offsets = [0, 0, 0], sizes = [1, 32, 8], strides = [1, 1, 1]} : vector<3x32x8xbf16> to vector<1x32x8xbf16>
    %6 = vector.shape_cast %5 : vector<1x32x8xbf16> to vector<32x8xbf16>
    %cst = arith.constant dense<0.000000e+00> : vector<16x8xf32>
    %7 = tpu.matmul %4, %6, %cst {dimension_numbers = #tpu.dot_dimension_numbers<[1], [0], [0], [1], [0, 0, 1, 1], [], []>} : vector<16x32xbf16>, vector<32x8xbf16>, vector<16x8xf32> -> vector<16x8xf32>
    %8 = vector.extract_strided_slice %1 {offsets = [1, 0], sizes = [16, 32], strides = [1, 1]} : vector<18x32xf32> to vector<16x32xf32>
    %9 = arith.truncf %8 : vector<16x32xf32> to vector<16x32xbf16>
    %10 = vector.extract_strided_slice %2 {offsets = [1, 0, 0], sizes = [1, 32, 8], strides = [1, 1, 1]} : vector<3x32x8xbf16> to vector<1x32x8xbf16>
    %11 = vector.shape_cast %10 : vector<1x32x8xbf16> to vector<32x8xbf16>
    %cst_5 = arith.constant dense<0.000000e+00> : vector<16x8xf32>
    %12 = tpu.matmul %9, %11, %cst_5 {dimension_numbers = #tpu.dot_dimension_numbers<[1], [0], [0], [1], [0, 0, 1, 1], [], []>} : vector<16x32xbf16>, vector<32x8xbf16>, vector<16x8xf32> -> vector<16x8xf32>
    %13 = arith.addf %7, %12 : vector<16x8xf32>
    %14 = vector.extract_strided_slice %1 {offsets = [2, 0], sizes = [16, 32], strides = [1, 1]} : vector<18x32xf32> to vector<16x32xf32>
    %15 = arith.truncf %14 : vector<16x32xf32> to vector<16x32xbf16>
    %16 = vector.extract_strided_slice %2 {offsets = [2, 0, 0], sizes = [1, 32, 8], strides = [1, 1, 1]} : vector<3x32x8xbf16> to vector<1x32x8xbf16>
    %17 = vector.shape_cast %16 : vector<1x32x8xbf16> to vector<32x8xbf16>
    %cst_6 = arith.constant dense<0.000000e+00> : vector<16x8xf32>
    %18 = tpu.matmul %15, %17, %cst_6 {dimension_numbers = #tpu.dot_dimension_numbers<[1], [0], [0], [1], [0, 0, 1, 1], [], []>} : vector<16x32xbf16>, vector<32x8xbf16>, vector<16x8xf32> -> vector<16x8xf32>
    %19 = arith.addf %13, %18 : vector<16x8xf32>
    %c0_7 = arith.constant 0 : index
    %c0_8 = arith.constant 0 : index
    %20 = vector.load %arg3[%c0_7, %c0_8] : memref<1x8xf32, #tpu.memory_space<vmem>>, vector<1x8xf32>
    %21 = vector.broadcast %20 : vector<1x8xf32> to vector<16x8xf32>
    %22 = arith.addf %19, %21 : vector<16x8xf32>
    %23 = vector.shape_cast %22 : vector<16x8xf32> to vector<1x16x8xf32>
    %c0_9 = arith.constant 0 : index
    %c0_10 = arith.constant 0 : index
    %c0_11 = arith.constant 0 : index
    %24 = vector.load %arg4[%c0_9, %c0_10, %c0_11] : memref<1x16x8xf32, #tpu.memory_space<vmem>>, vector<1x16x8xf32>
    tpu.vector_store %arg4[%c0_9, %c0_10, %c0_11], %23 {strides = array<i32>} : memref<1x16x8xf32, #tpu.memory_space<vmem>>, vector<1x16x8xf32>,
    return
  }
  func.func @transform_0(%arg0: i32) -> (i32, i32, i32) {
    %c0_i32 = arith.constant 0 : i32
    %c0_i32_0 = arith.constant 0 : i32
    %c0_i32_1 = arith.constant 0 : i32
    return %arg0, %c0_i32, %c0_i32_0 : i32, i32, i32
  }
  func.func @transform_1(%arg0: i32) -> (i32, i32, i32) {
    %c0_i32 = arith.constant 0 : i32
    %c0_i32_0 = arith.constant 0 : i32
    %c0_i32_1 = arith.constant 0 : i32
    %c0_i32_2 = arith.constant 0 : i32
    return %c0_i32, %c0_i32_0, %c0_i32_1 : i32, i32, i32
  }
  func.func @transform_2(%arg0: i32) -> (i32, i32) {
    %c0_i32 = arith.constant 0 : i32
    %c0_i32_0 = arith.constant 0 : i32
    %c0_i32_1 = arith.constant 0 : i32
    return %c0_i32, %c0_i32_0 : i32, i32
  }
  func.func @transform_3(%arg0: i32) -> (i32, i32, i32) {
    %c0_i32 = arith.constant 0 : i32
    %c0_i32_0 = arith.constant 0 : i32
    %c0_i32_1 = arith.constant 0 : i32
    return %arg0, %c0_i32, %c0_i32_0 : i32, i32, i32
  }
}

</mosaic_0001>

<bundles_post_ra>
// kernel: _lambda_.12
= control target key start
LH: loop header
LB: loop body
LE: loop exit
PB: predicated region body
PF: predicated region fallthrough
CT: control target
= control target key end

     0   :  { %s492_s12 = smov 0   ;;  %s534_s0 = inlined_call_operand.vmem [shape: f32[2,18,8], index: 0, kind: input, shape index: {}]   ;;  %s535_s1 = inlined_call_operand.vmem [shape: bf16[3,8,32], index: 1, kind: input, shape index: {}]   ;;  %s536_s2 = inlined_call_operand.vmem [shape: f32[1,32], index: 2, kind: input, shape index: {}]   ;;  %s537_s3 = inlined_call_operand.vmem [shape: f32[2,16,32], index: 3, kind: output, shape index: {}]  }
   0x1 LB: > { %s412_s13 = sadd.s32 4294967295, %s468_s12   ;;  %p416_p0 = scmp.ge.s32.totalorder %s468_s12, 1  ;;  %s468_s12 = sphi %s492_s12, %s13_s12  }
   0x2   : > { %p137_p1 = scmp.lt.s32.totalorder %s468_s12, 3 }
   0x4   : > { %p138_p2 = pnand %p416_p0, %p137_p1 }
   0x5   : > { %v176_v0 = vld [vmem:[%s535_s1 + $0x4] sm:$0xf] (!%p138_p2)  ;;  %vm197_vm0 = vcmask (!%p138_p2), 1043456   ;;  %v175_v1 = vld [vmem:[%s535_s1] sm:$0xf] (!%p138_p2)  ;;  %v470_v2 = vmov (!%p138_p2), 0.0  }
   0x6   : > { %141 = sbr.rel (%p138_p2) target bundleno = 256 (0x100), region = 32  ;;  %433 = vmatprep.subr.bf16.mxu0 (!%p138_p2), %v470_v2  ;;  %v199_v3 = vsel (!%p138_p2), %vm197_vm0, %v176_v0, 0  ;;  %439 = vmatprep.subr.bf16.mxu1 (!%p138_p2), %v470_v2  ;;  %v245_v4 = vsel (!%p138_p2), %vm197_vm0, %v175_v1, 0  ;;  %p161_p3 = scmp.lt.s32.totalorder (!%p138_p2), %s412_s13, 1  ;;  %vm471_vm1 = vmmov (!%p138_p2), 0   ;;  %vm193_vm2 = vcmask (!%p138_p2), 64512  }
   0x7   : > { %434 = vmatpush3.bf16.msra.mxu0 (!%p138_p2), %v199_v3  ;;  %440 = vmatpush3.bf16.msra.mxu1 (!%p138_p2), %v245_v4  ;;  %v177_v15 = vld [vmem:[%s535_s1 + $0x8] sm:$0xf] (!%p138_p2)  ;;  %vm180_vm3 = vsmask.f32 (!%p138_p2), 7424  ;;  %vm290_vm4 = vcmask (!%p138_p2), 1046528   ;;  %vm354_vm5 = vcmask (!%p138_p2), 261120  }
   0x8   : > { %435 = vmatprep.mubr.msk.bf16.mxu0 (!%p138_p2), %vm471_vm1, %v470_v2  ;;  %441 = vmatprep.mubr.msk.bf16.mxu1 (!%p138_p2), %vm471_vm1, %v470_v2  ;;  %v298_v17 = vsel (!%p138_p2), %vm197_vm0, %v177_v15, 0  ;;  %v423_v33 = vld [vmem:[%s536_s2] ss:$0 sm:$0xff] (!%p138_p2) }
   0x9   : > { %445 = vmatprep.subr.bf16.mxu0 (!%p138_p2), %v470_v2 }
   0xd   : > { %s539_s13 = smov (!%p161_p3, %s412_s13), 1 }
   0xe   : > { %s451_s18 = smul.u32 24, %s539_s13  ;;  %s426_s26 = sshll.u32 %s539_s13, 4 }
   0xf   : > { %s170_s29 = scalar_lea.vmem %s537_s3, %s426_s26 }
  0x10   : > { %s165_s21 = scalar_lea.vmem %s534_s0, %s451_s18 }
  0x11   : > { %v172_v5 = vld [vmem:[%s165_s21] sm:$0xff]  ;;  %v173_v6 = vld [vmem:[%s165_s21 + $0x8] sm:$0xff]  ;;  %v174_v7 = vld [vmem:[%s165_s21 + $0x10] sm:$0x3] }
  0x12   : > { %v178_v8 = vpack.c.bf16 %v173_v6, %v172_v5  ;;  %v179_v9 = vpack.c.bf16 %v174_v7, %v174_v7 }
  0x14   : > { %v182_v10 = vshrl.u32 %v178_v8, 16  ;;  %v184_v11 = vshll.u32 %v178_v8, 16  ;;  %v189_v12 = vshll.u32 %v179_v9, 16  ;;  %442 = vmatmul.mubr.msk.bf16.vlgmr.msra.gmra.mrb[0].mxu1 %vm193_vm2, %v178_v8  ;;  %v291_v19 = vrot.slane %v178_v8, 1 }
  0x15   : > { %v292_v20 = vrot.slane %v179_v9, 1 }
  0x16   : > { %v186_v13 = vrot.slane %v184_v11, 1  ;;  %v191_v14 = vrot.slane %v189_v12, 1 }
  0x17   : > { %v293_v21 = vsel %vm290_vm4, %v291_v19, %v292_v20 }
  0x18   : > { %v187_v16 = vor.u32 %v186_v13, %v182_v10 }
  0x1a   : > { %v192_v18 = vsel %vm180_vm3, %v187_v16, %v191_v14 }
  0x1b   : > { %436 = vmatmul.mubr.msk.bf16.vlgmr.msra.gmra.mrb[0].mxu0 %vm193_vm2, %v192_v18 }
  0x1c   : > { %446 = vmatpush3.bf16.msra.mxu0 %v298_v17  ;;  %447 = vmatprep.mubr.msk.bf16.mxu0 %vm471_vm1, %v470_v2 }
  0x23   : > { %448 = vmatmul.mubr.msk.bf16.vlgmr.msra.gmra.mrb[4].mxu0 %vm193_vm2, %v293_v21 }
  0xe7   : > { %v281_v22 = vpop.f32.mrb[0].mxu1 }
  0xe8   : > { %v443_v23 = vpop.f32.mrb[1].mxu1 }
  0xe9   : > { %v284_v24 = vpop.f32.mrb[2].mxu1 }
  0xea   : > { %v444_v25 = vpop.f32.mrb[3].mxu1 }
  0xee   : > { %v235_v26 = vpop.f32.mrb[0].mxu0 }
  0xef   : > { %v282_v27 = vadd.f32 %v281_v22, %v235_v26  ;;  %v437_v28 = vpop.f32.mrb[1].mxu0 }
  0xf0   : > { %v238_v29 = vpop.f32.mrb[2].mxu0 }
  0xf1   : > { %v285_v30 = vadd.f32 %v284_v24, %v238_v29  ;;  %v438_v31 = vpop.f32.mrb[3].mxu0 }
  0xf6   : > { %v334_v32 = vpop.f32.mrb[4].mxu0 }
  0xf7   : > { %v341_v34 = vadd.f32 %v334_v32, %v282_v27  ;;  %v449_v35 = vpop.f32.mrb[5].mxu0 }
  0xf8   : > { %v337_v36 = vpop.f32.mrb[6].mxu0 }
  0xf9   : > { %v350_v37 = vadd.f32 %v423_v33, %v341_v34  ;;  %v342_v38 = vadd.f32 %v337_v36, %v285_v30  ;;  %v450_v39 = vpop.f32.mrb[7].mxu0 }
  0xfb   : > { %v352_v40 = vmax.f32 %v350_v37, 0.0  ;;  %v351_v41 = vadd.f32 %v423_v33, %v342_v38 }
  0xfd   : > { %355 = vst.msk [vmem:[%s170_s29] sm:$0xff] %vm354_vm5, %v352_v40  ;;  %v353_v42 = vmax.f32 %v351_v41, 0.0 }
  0xff   : > { %356 = vst.msk [vmem:[%s170_s29 + $0x8] sm:$0xff] %vm354_vm5, %v353_v42 }
 0x100 PF: > { %s13_s12 = sadd.s32 1, %s468_s12  }
 0x101   : > { %p10_p4 = scmp.ge.s32.totalorder %s13_s12, 4  }
 0x103   :  { %12 = sbr.rel (!%p10_p4) target bundleno = 1 (0x1), region = 62 }

// kernel: _lambda_.15
= control target key start
LH: loop header
LB: loop body
LE: loop exit
PB: predicated region body
PF: predicated region fallthrough
CT: control target
= control target key end

     0   :  { %s491_s12 = smov 0   ;;  %s539_s0 = inlined_call_operand.vmem [shape: f32[2,5,64], index: 0, kind: input, shape index: {}]   ;;  %s540_s1 = inlined_call_operand.vmem [shape: bf16[2,64,32], index: 1, kind: input, shape index: {}]   ;;  %s541_s2 = inlined_call_operand.vmem [shape: f32[1,32], index: 2, kind: input, shape index: {}]   ;;  %s542_s3 = inlined_call_operand.vmem [shape: f32[2,4,32], index: 3, kind: output, shape index: {}]  }
   0x1 LB: > { %s389_s13 = sadd.s32 4294967295, %s467_s12   ;;  %p393_p0 = scmp.ge.s32.totalorder %s467_s12, 1  ;;  %s467_s12 = sphi %s491_s12, %s13_s12  }
   0x2   : > { %p136_p1 = scmp.lt.s32.totalorder %s467_s12, 3 }
   0x4   : > { %p137_p2 = pnand %p393_p0, %p136_p1 }
   0x5   : > { %v453_v0 = vld [vmem:[%s540_s1 + $0x20] sm:$0xff] (!%p137_p2)   ;;  %v469_v1 = vmov (!%p137_p2), 0.0   ;;  %v455_v3 = vld [vmem:[%s540_s1 + $0x28] sm:$0xff] (!%p137_p2)   ;;  %vm470_vm0 = vmmov (!%p137_p2), 0   ;;  %p158_p3 = scmp.lt.s32.totalorder (!%p137_p2), %s389_s13, 1  ;;  %v457_v5 = vld [vmem:[%s540_s1 + $0x30] sm:$0xff] (!%p137_p2)  }
   0x6   : > { %140 = sbr.rel (%p137_p2) target bundleno = 242 (0xf2), region = 32  ;;  %419 = vmatprep.subr.bf16.mxu0 (!%p137_p2), %v469_v1  ;;  %431 = vmatprep.subr.bf16.mxu1 (!%p137_p2), %v469_v1  ;;  %v454_v2 = vld [vmem:[%s540_s1] sm:$0xff] (!%p137_p2)   ;;  %v456_v4 = vld [vmem:[%s540_s1 + $0x8] sm:$0xff] (!%p137_p2)   ;;  %v458_v6 = vld [vmem:[%s540_s1 + $0x10] sm:$0xff] (!%p137_p2)   ;;  %vm216_vm1 = vcmask (!%p137_p2), 523264   ;;  %vm334_vm2 = vcmask (!%p137_p2), 257024  }
   0x7   : > { %420 = vmatpush3.bf16.msra.mxu0 (!%p137_p2), %v453_v0  ;;  %427 = vmatprep.mubr.msk.bf16.mxu0 (!%p137_p2), %vm470_vm0, %v469_v1  ;;  %v459_v9 = vld [vmem:[%s540_s1 + $0x38] sm:$0xff] (!%p137_p2)   ;;  %v406_v17 = vld [vmem:[%s541_s2] ss:$0 sm:$0xff] (!%p137_p2) }
   0x8   : > { %432 = vmatpush3.bf16.msra.mxu1 (!%p137_p2), %v454_v2  ;;  %421 = vmatprep.subr.bf16.mxu0 (!%p137_p2), %v469_v1  ;;  %v460_v10 = vld [vmem:[%s540_s1 + $0x18] sm:$0xff] (!%p137_p2)  }
   0x9   : > { %433 = vmatprep.subr.bf16.mxu1 (!%p137_p2), %v469_v1  ;;  %439 = vmatprep.mubr.msk.bf16.mxu1 (!%p137_p2), %vm470_vm0, %v469_v1 }
   0xb   : > { %422 = vmatpush3.bf16.msra.mxu0 (!%p137_p2), %v455_v3 }
   0xc   : > { %434 = vmatpush3.bf16.msra.mxu1 (!%p137_p2), %v456_v4  ;;  %423 = vmatprep.subr.bf16.mxu0 (!%p137_p2), %v469_v1 }
   0xd   : > { %s544_s13 = smov (!%p158_p3, %s389_s13), 1  ;;  %435 = vmatprep.subr.bf16.mxu1 %v469_v1 }
   0xe   : > { %s394_s24 = sshll.u32 %s544_s13, 3  ;;  %s395_s7 = sshll.u32 %s544_s13, 2 }
   0xf   : > { %s161_s29 = scalar_lea.vmem %s539_s0, %s394_s24  ;;  %424 = vmatpush3.bf16.msra.mxu0 %v457_v5  ;;  %s165_s14 = scalar_lea.vmem %s542_s3, %s395_s7 }
  0x10   : > { %v167_v7 = vld [vmem:[%s161_s29] sm:$0x1f]  ;;  %436 = vmatpush3.bf16.msra.mxu1 %v458_v6  ;;  %425 = vmatprep.subr.bf16.mxu0 %v469_v1 }
  0x11   : > { %v184_v8 = vpack.c.bf16 %v167_v7, %v167_v7  ;;  %437 = vmatprep.subr.bf16.mxu1 %v469_v1 }
  0x13   : > { %v186_v11 = vshrl.u32 %v184_v8, 16  ;;  %v188_v12 = vshll.u32 %v184_v8, 16  ;;  %426 = vmatpush3.bf16.msra.mxu0 %v459_v9 }
  0x14   : > { %438 = vmatpush3.bf16.msra.mxu1 %v460_v10 }
  0x15   : > { %v190_v13 = vrot.slane %v188_v12, 1 }
  0x17   : > { %v191_v14 = vor.u32 %v190_v13, %v186_v11  ;;  %440 = vmatmul.mubr.msk.bf16.vlgmr.msra.gmra.mrb[0].mxu1 %vm216_vm1, %v184_v8 }
  0x19   : > { %428 = vmatmul.mubr.msk.bf16.vlgmr.msra.gmra.mrb[0].mxu0 %vm216_vm1, %v191_v14 }
  0xea   : > { %v320_v16 = vpop.f32.mrb[0].mxu1 }
  0xeb   : > { %v441_v20 = vpop.f32.mrb[1].mxu1 }
  0xec   : > { %v254_v15 = vpop.f32.mrb[0].mxu0  ;;  %v323_v22 = vpop.f32.mrb[2].mxu1 }
  0xed   : > { %v429_v18 = vpop.f32.mrb[1].mxu0  ;;  %v321_v19 = vadd.f32 %v320_v16, %v254_v15  ;;  %v442_v25 = vpop.f32.mrb[3].mxu1 }
  0xee   : > { %v257_v21 = vpop.f32.mrb[2].mxu0 }
  0xef   : > { %v430_v23 = vpop.f32.mrb[3].mxu0  ;;  %v333_v24 = vadd.f32 %v406_v17, %v321_v19 }
  0xf1   : > { %335 = vst.msk [vmem:[%s165_s14] sm:$0xf] %vm334_vm2, %v333_v24 }
  0xf2 PF: > { %s13_s12 = sadd.s32 1, %s467_s12  }
  0xf3   : > { %p10_p4 = scmp.ge.s32.totalorder %s13_s12, 4  }
  0xf5   :  { %12 = sbr.rel (!%p10_p4) target bundleno = 1 (0x1), region = 62 }

// kernel: _lambda_.13
= control target key start
LH: loop header
LB: loop body
LE: loop exit
PB: predicated region body
PF: predicated region fallthrough
CT: control target
= control target key end

     0   :  { %s499_s12 = smov 0   ;;  %s547_s0 = inlined_call_operand.vmem [shape: f32[2,9,64], index: 0, kind: input, shape index: {}]   ;;  %s548_s1 = inlined_call_operand.vmem [shape: bf16[2,64,32], index: 1, kind: input, shape index: {}]   ;;  %s549_s2 = inlined_call_operand.vmem [shape: f32[1,32], index: 2, kind: input, shape index: {}]   ;;  %s550_s3 = inlined_call_operand.vmem [shape: f32[2,8,32], index: 3, kind: output, shape index: {}]  }
   0x1 LB: > { %s395_s13 = sadd.s32 4294967295, %s475_s12   ;;  %p399_p0 = scmp.ge.s32.totalorder %s475_s12, 1  ;;  %s475_s12 = sphi %s499_s12, %s13_s12  }
   0x2   : > { %p137_p1 = scmp.lt.s32.totalorder %s475_s12, 3 }
   0x4   : > { %p138_p2 = pnand %p399_p0, %p137_p1 }
   0x5   : > { %v461_v0 = vld [vmem:[%s548_s1 + $0x20] sm:$0xff] (!%p138_p2)   ;;  %v477_v1 = vmov (!%p138_p2), 0.0   ;;  %v463_v3 = vld [vmem:[%s548_s1 + $0x28] sm:$0xff] (!%p138_p2)   ;;  %vm478_vm0 = vmmov (!%p138_p2), 0   ;;  %p160_p3 = scmp.lt.s32.totalorder (!%p138_p2), %s395_s13, 1  ;;  %v465_v5 = vld [vmem:[%s548_s1 + $0x30] sm:$0xff] (!%p138_p2)  }
   0x6   : > { %141 = sbr.rel (%p138_p2) target bundleno = 242 (0xf2), region = 32  ;;  %427 = vmatprep.subr.bf16.mxu0 (!%p138_p2), %v477_v1  ;;  %439 = vmatprep.subr.bf16.mxu1 (!%p138_p2), %v477_v1  ;;  %v462_v2 = vld [vmem:[%s548_s1] sm:$0xff] (!%p138_p2)   ;;  %v464_v4 = vld [vmem:[%s548_s1 + $0x8] sm:$0xff] (!%p138_p2)   ;;  %v466_v6 = vld [vmem:[%s548_s1 + $0x10] sm:$0xff] (!%p138_p2)   ;;  %vm221_vm1 = vcmask (!%p138_p2), 523264   ;;  %vm340_vm2 = vcmask (!%p138_p2), 261120  }
   0x7   : > { %428 = vmatpush3.bf16.msra.mxu0 (!%p138_p2), %v461_v0  ;;  %435 = vmatprep.mubr.msk.bf16.mxu0 (!%p138_p2), %vm478_vm0, %v477_v1  ;;  %v467_v10 = vld [vmem:[%s548_s1 + $0x38] sm:$0xff] (!%p138_p2)   ;;  %v413_v19 = vld [vmem:[%s549_s2] ss:$0 sm:$0xff] (!%p138_p2) }
   0x8   : > { %440 = vmatpush3.bf16.msra.mxu1 (!%p138_p2), %v462_v2  ;;  %429 = vmatprep.subr.bf16.mxu0 (!%p138_p2), %v477_v1  ;;  %v468_v11 = vld [vmem:[%s548_s1 + $0x18] sm:$0xff] (!%p138_p2)  }
   0x9   : > { %441 = vmatprep.subr.bf16.mxu1 (!%p138_p2), %v477_v1  ;;  %447 = vmatprep.mubr.msk.bf16.mxu1 (!%p138_p2), %vm478_vm0, %v477_v1 }
   0xb   : > { %430 = vmatpush3.bf16.msra.mxu0 (!%p138_p2), %v463_v3 }
   0xc   : > { %442 = vmatpush3.bf16.msra.mxu1 (!%p138_p2), %v464_v4  ;;  %431 = vmatprep.subr.bf16.mxu0 (!%p138_p2), %v477_v1 }
   0xd   : > { %s552_s13 = smov (!%p160_p3, %s395_s13), 1  ;;  %443 = vmatprep.subr.bf16.mxu1 %v477_v1 }
   0xe   : > { %s416_s24 = sshll.u32 %s552_s13, 4  ;;  %s402_s7 = sshll.u32 %s552_s13, 3 }
   0xf   : > { %s164_s29 = scalar_lea.vmem %s547_s0, %s416_s24  ;;  %432 = vmatpush3.bf16.msra.mxu0 %v465_v5  ;;  %s168_s14 = scalar_lea.vmem %s550_s3, %s402_s7 }
  0x10   : > { %v170_v7 = vld [vmem:[%s164_s29] sm:$0xff]  ;;  %v171_v8 = vld [vmem:[%s164_s29 + $0x8] sm:$0x1]  ;;  %444 = vmatpush3.bf16.msra.mxu1 %v466_v6  ;;  %433 = vmatprep.subr.bf16.mxu0 %v477_v1 }
  0x11   : > { %v189_v9 = vpack.c.bf16 %v171_v8, %v170_v7  ;;  %445 = vmatprep.subr.bf16.mxu1 %v477_v1  ;;  %v188_v15 = vpack.c.bf16 %v170_v7, %v170_v7 }
  0x13   : > { %v191_v12 = vshrl.u32 %v189_v9, 16  ;;  %v193_v13 = vshll.u32 %v189_v9, 16  ;;  %434 = vmatpush3.bf16.msra.mxu0 %v467_v10 }
  0x14   : > { %446 = vmatpush3.bf16.msra.mxu1 %v468_v11 }
  0x15   : > { %v195_v14 = vrot.slane %v193_v13, 1 }
  0x17   : > { %v196_v16 = vor.u32 %v195_v14, %v191_v12  ;;  %448 = vmatmul.mubr.msk.bf16.vlgmr.msra.gmra.mrb[0].mxu1 %vm221_vm1, %v188_v15 }
  0x19   : > { %436 = vmatmul.mubr.msk.bf16.vlgmr.msra.gmra.mrb[0].mxu0 %vm221_vm1, %v196_v16 }
  0xea   : > { %v326_v18 = vpop.f32.mrb[0].mxu1 }
  0xeb   : > { %v449_v22 = vpop.f32.mrb[1].mxu1 }
  0xec   : > { %v259_v17 = vpop.f32.mrb[0].mxu0  ;;  %v329_v24 = vpop.f32.mrb[2].mxu1 }
  0xed   : > { %v437_v20 = vpop.f32.mrb[1].mxu0  ;;  %v327_v21 = vadd.f32 %v326_v18, %v259_v17  ;;  %v450_v27 = vpop.f32.mrb[3].mxu1 }
  0xee   : > { %v262_v23 = vpop.f32.mrb[2].mxu0 }
  0xef   : > { %v438_v25 = vpop.f32.mrb[3].mxu0  ;;  %v339_v26 = vadd.f32 %v413_v19, %v327_v21 }
  0xf1   : > { %341 = vst.msk [vmem:[%s168_s14] sm:$0xff] %vm340_vm2, %v339_v26 }
  0xf2 PF: > { %s13_s12 = sadd.s32 1, %s475_s12  }
  0xf3   : > { %p10_p4 = scmp.ge.s32.totalorder %s13_s12, 4  }
  0xf5   :  { %12 = sbr.rel (!%p10_p4) target bundleno = 1 (0x1), region = 62 }

// kernel: _lambda_.14
= control target key start
LH: loop header
LB: loop body
LE: loop exit
PB: predicated region body
PF: predicated region fallthrough
CT: control target
= control target key end

     0   :  { %s885_s30 = smov 0   ;;  %s981_s0 = inlined_call_operand.vmem [shape: f32[2,14,32], index: 0, kind: input, shape index: {}]   ;;  %s982_s1 = inlined_call_operand.vmem [shape: f32[7,32], index: 1, kind: input, shape index: {}]   ;;  %s983_s2 = inlined_call_operand.vmem [shape: f32[1,32], index: 2, kind: input, shape index: {}]   ;;  %s984_s3 = inlined_call_operand.vmem [shape: f32[1,32], index: 3, kind: input, shape index: {}]   ;;  %s985_s4 = inlined_call_operand.vmem [shape: f32[1,32], index: 4, kind: input, shape index: {}]   ;;  %s986_s5 = inlined_call_operand.vmem [shape: bf16[32,128], index: 5, kind: input, shape index: {}]   ;;  %s987_s6 = inlined_call_operand.vmem [shape: f32[1,128], index: 6, kind: input, shape index: {}]   ;;  %s988_s7 = inlined_call_operand.vmem [shape: bf16[128,32], index: 7, kind: input, shape index: {}]   ;;  %s989_s8 = inlined_call_operand.vmem [shape: f32[1,32], index: 8, kind: input, shape index: {}]   ;;  %s990_s9 = inlined_call_operand.vmem [shape: f32[2,8,32], index: 9, kind: output, shape index: {}]  }
   0x1 LB: > { %s730_s10 = sadd.s32 4294967295, %s831_s30   ;;  %p734_p0 = scmp.ge.s32.totalorder %s831_s30, 1  ;;  %s831_s30 = sphi %s885_s30, %s19_s30  }
   0x2   : > { %p287_p1 = scmp.lt.s32.totalorder %s831_s30, 3 }
   0x4   : > { %p288_p2 = pnand %p734_p0, %p287_p1 }
   0x5   : > { %p322_p3 = scmp.lt.s32.totalorder (!%p288_p2), %s730_s10, 1  ;;  %v335_v0 = vlaneseq (!%p288_p2)  ;;  %v334_v1 = vld [vmem:[%s982_s1] sm:$0x7f] (!%p288_p2)  ;;  %vm348_vm0 = vcmask (!%p288_p2), 1046528   ;;  %vm362_vm1 = vcmask (!%p288_p2), 1045504   ;;  %vm376_vm2 = vcmask (!%p288_p2), 1044480  }
   0x6   : > { %291 = sbr.rel (%p288_p2) target bundleno = 832 (0x340), region = 56  ;;  %vm390_vm3 = vcmask (!%p288_p2), 1043456   ;;  %vm404_vm4 = vcmask (!%p288_p2), 1042432   ;;  %vm418_vm5 = vcmask (!%p288_p2), 1041408   ;;  %v738_v55 = vld [vmem:[%s983_s2] ss:$0 sm:$0xff] (!%p288_p2) }
   0x7   : > { %v336_v2 = vshrl.u32 (!%p288_p2), %v335_v0, 7  ;;  %vm432_vm6 = vcmask (!%p288_p2), 261120   ;;  %v809_v0 = vld [vmem:[%s986_s5] sm:$0xff] (!%p288_p2)   ;;  %vm834_vm7 = vmmov (!%p288_p2), 0  }
   0x9   : > { %v337_v3 = vsub.s32 (!%p288_p2), 0, %v336_v2  ;;  %v342_v4 = vsub.s32 (!%p288_p2), 1, %v336_v2  ;;  %v356_v5 = vsub.s32 (!%p288_p2), 2, %v336_v2  ;;  %v370_v6 = vsub.s32 (!%p288_p2), 3, %v336_v2 }
   0xa   : > { %v384_v7 = vsub.s32 (!%p288_p2), 4, %v336_v2  ;;  %v398_v8 = vsub.s32 (!%p288_p2), 5, %v336_v2  ;;  %v412_v9 = vsub.s32 (!%p288_p2), 6, %v336_v2  ;;  %v810_v2 = vld [vmem:[%s986_s5 + $0x8] sm:$0xff] (!%p288_p2)  }
   0xb   : > { %v338_v12 = vrot.slane (!%p288_p2), %v334_v1, %v337_v3  ;;  %v343_v13 = vrot.slane (!%p288_p2), %v334_v1, %v342_v4  ;;  %v357_v14 = vrot.slane (!%p288_p2), %v334_v1, %v356_v5  ;;  %v371_v15 = vrot.slane (!%p288_p2), %v334_v1, %v370_v6 }
   0xc   : > { %v385_v16 = vrot.slane (!%p288_p2), %v334_v1, %v384_v7  ;;  %v399_v17 = vrot.slane (!%p288_p2), %v334_v1, %v398_v8  ;;  %v413_v18 = vrot.slane (!%p288_p2), %v334_v1, %v412_v9  ;;  %v833_v1 = vmov (!%p288_p2), 0.0   ;;  %v739_v7 = vld [vmem:[%s984_s3] ss:$0 sm:$0xff] (!%p288_p2) }
   0xd   : > { %s992_s10 = smov (!%p322_p3, %s730_s10), 1  ;;  %771 = vmatprep.subr.bf16.mxu0 %v833_v1  ;;  %779 = vmatprep.subr.bf16.mxu1 %v833_v1  ;;  %v740_v9 = vld [vmem:[%s985_s4] ss:$0 sm:$0xff] }
   0xe   : > { %s758_s13 = sshll.u32 %s992_s10, 4  ;;  %772 = vmatpush3.bf16.msra.mxu0 %v809_v0  ;;  %775 = vmatprep.mubr.msk.bf16.mxu0 %vm834_vm7, %v833_v1  ;;  %s737_s28 = sshll.u32 %s992_s10, 3 }
   0xf   : > { %s326_s16 = scalar_lea.vmem %s981_s0, %s758_s13  ;;  %773 = vmatprep.subr.bf16.mxu0 %v833_v1  ;;  %795 = vmatprep.mubr.msk.bf16.mxu1 %vm834_vm7, %v833_v1  ;;  %s330_s12 = scalar_lea.vmem %s990_s9, %s737_s28 }
  0x10   : > { %v902_v10 = vld [vmem:[%s326_s16] sm:$0xff]  ;;  %v904_v11 = vld [vmem:[%s326_s16 + $0x8] sm:$0x3f] }
  0x11   : > { %v339_v19 = vmul.f32 %v338_v12, %v902_v10  ;;  %v344_v20 = vmul.f32 %v343_v13, %v902_v10  ;;  %v345_v21 = vmul.f32 %v343_v13, %v904_v11  ;;  %v358_v22 = vmul.f32 %v357_v14, %v902_v10 }
  0x12   : > { %v359_v23 = vmul.f32 %v357_v14, %v904_v11  ;;  %v372_v24 = vmul.f32 %v371_v15, %v902_v10  ;;  %v373_v25 = vmul.f32 %v371_v15, %v904_v11  ;;  %v386_v26 = vmul.f32 %v385_v16, %v902_v10  ;;  %774 = vmatpush3.bf16.msra.mxu0 %v810_v2  ;;  %v811_v15 = vld [vmem:[%s988_s7] sm:$0xff]  }
  0x13   : > { %v349_v27 = vrot.slane %v344_v20, 1  ;;  %v350_v28 = vrot.slane %v345_v21, 1  ;;  %v363_v29 = vrot.slane %v358_v22, 2  ;;  %v387_v30 = vmul.f32 %v385_v16, %v904_v11  ;;  %780 = vmatpush3.bf16.msra.mxu1 %v811_v15  ;;  %v812_v16 = vld [vmem:[%s988_s7 + $0x8] sm:$0xff]   ;;  %v817_v21 = vld [vmem:[%s988_s7 + $0x30] sm:$0xff]   ;;  %v818_v22 = vld [vmem:[%s988_s7 + $0x38] sm:$0xff]  }
  0x14   : > { %v364_v31 = vrot.slane %v359_v23, 2  ;;  %v377_v32 = vrot.slane %v372_v24, 3  ;;  %v378_v33 = vrot.slane %v373_v25, 3  ;;  %v391_v34 = vrot.slane %v386_v26, 4  ;;  %781 = vmatprep.subr.bf16.mxu1 %v833_v1  ;;  %v816_v20 = vld [vmem:[%s988_s7 + $0x28] sm:$0xff]  }
  0x15   : > { %v351_v35 = vsel %vm348_vm0, %v349_v27, %v350_v28  ;;  %v392_v36 = vrot.slane %v387_v30, 4  ;;  %v400_v37 = vmul.f32 %v399_v17, %v902_v10  ;;  %v401_v38 = vmul.f32 %v399_v17, %v904_v11  ;;  %v813_v17 = vld [vmem:[%s988_s7 + $0x10] sm:$0xff]   ;;  %v741_v23 = vld [vmem:[%s987_s6] ss:$0 sm:$0xff] }
  0x16   : > { %v353_v39 = vadd.f32 %v351_v35, %v339_v19  ;;  %v365_v40 = vsel %vm362_vm1, %v363_v29, %v364_v31  ;;  %v414_v41 = vmul.f32 %v413_v18, %v902_v10  ;;  %v379_v42 = vsel %vm376_vm2, %v377_v32, %v378_v33  ;;  %v815_v19 = vld [vmem:[%s988_s7 + $0x20] sm:$0xff]  }
  0x17   : > { %v405_v43 = vrot.slane %v400_v37, 5  ;;  %v406_v44 = vrot.slane %v401_v38, 5  ;;  %v415_v45 = vmul.f32 %v413_v18, %v904_v11  ;;  %v393_v47 = vsel %vm390_vm3, %v391_v34, %v392_v36  ;;  %782 = vmatpush3.bf16.msra.mxu1 %v812_v16  ;;  %v814_v18 = vld [vmem:[%s988_s7 + $0x18] sm:$0xff]  }
  0x18   : > { %v367_v46 = vadd.f32 %v365_v40, %v353_v39  ;;  %v419_v48 = vrot.slane %v414_v41, 6  ;;  %783 = vmatprep.subr.bf16.mxu1 %v833_v1 }
  0x19   : > { %v420_v49 = vrot.slane %v415_v45, 6  ;;  %v407_v51 = vsel %vm404_vm4, %v405_v43, %v406_v44 }
  0x1a   : > { %v381_v50 = vadd.f32 %v379_v42, %v367_v46 }
  0x1b   : > { %v421_v53 = vsel %vm418_vm5, %v419_v48, %v420_v49  ;;  %784 = vmatpush3.bf16.msra.mxu1 %v813_v17 }
  0x1c   : > { %v395_v52 = vadd.f32 %v393_v47, %v381_v50  ;;  %785 = vmatprep.subr.bf16.mxu1 %v833_v1 }
  0x1e   : > { %v409_v54 = vadd.f32 %v407_v51, %v395_v52 }
  0x1f   : > { %786 = vmatpush3.bf16.msra.mxu1 %v814_v18 }
  0x20   : > { %v423_v56 = vadd.f32 %v421_v53, %v409_v54  ;;  %787 = vmatprep.subr.bf16.mxu1 %v833_v1 }
  0x22   : > { %v431_v57 = vadd.f32 %v738_v55, %v423_v56  ;;  %v671_v55 = vrot.slane %v902_v10, 3  ;;  %v672_v56 = vrot.slane %v904_v11, 3 }
  0x23   : > { %788 = vmatpush3.bf16.msra.mxu1 %v815_v19 }
  0x24   : > { %v433_v58 = vsel %vm432_vm6, %v431_v57, 0.0  ;;  %789 = vmatprep.subr.bf16.mxu1 %v833_v1 }
  0x25   : > { %434 = vadd.xlane.f32.xlu0 %v433_v58 }
  0x27   : > { %790 = vmatpush3.bf16.msra.mxu1 %v816_v20 }
  0x28   : > { %791 = vmatprep.subr.bf16.mxu1 %v833_v1 }
  0x2b   : > { %792 = vmatpush3.bf16.msra.mxu1 %v817_v21 }
  0x2c   : > { %793 = vmatprep.subr.bf16.mxu1 %v833_v1 }
  0x2f   : > { %794 = vmatpush3.bf16.msra.mxu1 %v818_v22 }
  0xb2   : > { %v435_v59 = vpop.xlane.xlu0 %434 }
  0xb3   : > { %v437_v60 = vmul.f32 0.03125, %v435_v59  ;;  %v673_v59 = vsel %vm376_vm2, %v671_v55, %v672_v56 }
  0xb5   : > { %v438_v61 = vsub.f32 %v431_v57, %v437_v60  ;;  %v747_v57 = vld [vmem:[%s989_s8] ss:$0 sm:$0xff] }
  0xb7   : > { %v439_v62 = vmul.f32 %v438_v61, %v438_v61 }
  0xb9   : > { %v440_v63 = vsel %vm432_vm6, %v439_v62, 0.0 }
  0xba   : > { %441 = vadd.xlane.f32.xlu0 %v440_v63 }
 0x147   : > { %v442_v3 = vpop.xlane.xlu0 %441 }
 0x148   : > { %v443_v4 = vmul.f32 0.03125, %v442_v3 }
 0x14a   : > { %v444_v5 = vadd.f32 1e-05, %v443_v4 }
 0x14c   : > { %819 = vrsqrt.f32 %v444_v5 }
 0x156   : > { %v820_v6 = vpop.eup %819 }
 0x157   : > { %v446_v8 = vmul.f32 %v820_v6, %v438_v61 }
 0x159   : > { %v454_v12 = vmul.f32 %v739_v7, %v446_v8 }
 0x15b   : > { %v462_v13 = vadd.f32 %v740_v9, %v454_v12 }
 0x15d   : > { %v463_v14 = vpack.c.bf16 %v462_v13, %v462_v13 }
 0x15f   : > { %776 = vmatmul.mubr.msk.bf16.vlgmr.msra.gmra.mrb[0].mxu0 %vm432_vm6, %v463_v14 }
 0x232   : > { %v524_v24 = vpop.f32.mrb[0].mxu0 }
 0x233   : > { %v525_v25 = vadd.f32 %v741_v23, %v524_v24  ;;  %v777_v26 = vpop.f32.mrb[1].mxu0 }
 0x234   : > { %v527_v27 = vpop.f32.mrb[2].mxu0 }
 0x235   : > { %v530_v28 = vmul.f32 0.70710677, %v525_v25  ;;  %v778_v29 = vpop.f32.mrb[3].mxu0  ;;  %v554_v51 = vmul.f32 0.5, %v525_v25 }
 0x237   : > { %v531_v30 = vand.u32 2147483647, %v530_v28  ;;  %vm551_vm8 = vcmp.ge.f32.partialorder %v530_v28, 0.0 }
 0x239   : > { %v532_v31 = vmul.f32 0.3275911, %v531_v30  ;;  %v545_v33 = vsub.f32 0.0, %v531_v30 }
 0x23b   : > { %v533_v32 = vadd.f32 1.0, %v532_v31  ;;  %v546_v35 = vmul.f32 %v545_v33, %v531_v30 }
 0x23d   : > { %821 = vrcp.f32 %v533_v32  ;;  %v547_v38 = vmul.f32 1.442695, %v546_v35 }
 0x23f   : > { %823 = vpow2.f32 %v547_v38 }
 0x247   : > { %v822_v34 = vpop.eup %821 }
 0x248   : > { %v536_v36 = vmul.f32 1.0614054, %v822_v34 }
 0x249   : > { %v824_v46 = vpop.eup %823 }
 0x24a   : > { %v745_v37 = vadd.f32 -1.4531521, %v536_v36 }
 0x24c   : > { %v538_v39 = vmul.f32 %v822_v34, %v745_v37 }
 0x24e   : > { %v539_v40 = vadd.f32 1.4214138, %v538_v39 }
 0x250   : > { %v540_v41 = vmul.f32 %v822_v34, %v539_v40 }
 0x252   : > { %v746_v42 = vadd.f32 -0.28449672, %v540_v41 }
 0x254   : > { %v542_v43 = vmul.f32 %v822_v34, %v746_v42 }
 0x256   : > { %v543_v44 = vadd.f32 0.2548296, %v542_v43 }
 0x258   : > { %v544_v45 = vmul.f32 %v822_v34, %v543_v44 }
 0x25a   : > { %v549_v47 = vmul.f32 %v824_v46, %v544_v45 }
 0x25c   : > { %v550_v48 = vsub.f32 1.0, %v549_v47 }
 0x25e   : > { %v552_v49 = vsub.f32 0.0, %v550_v48 }
 0x260   : > { %v553_v50 = vsel %vm551_vm8, %v550_v48, %v552_v49 }
 0x261   : > { %v555_v52 = vadd.f32 1.0, %v553_v50 }
 0x263   : > { %v556_v53 = vmul.f32 %v555_v52, %v554_v51 }
 0x265   : > { %v557_v54 = vpack.c.bf16 %v556_v53, %v556_v53 }
 0x267   : > { %796 = vmatmul.mubr.bf16.vlgmr.msra.gmra.mrb[0].mxu1 %v557_v54 }
 0x33a   : > { %v663_v58 = vpop.f32.mrb[0].mxu1 }
 0x33b   : > { %v664_v60 = vadd.f32 %v747_v57, %v663_v58  ;;  %v797_v61 = vpop.f32.mrb[1].mxu1 }
 0x33c   : > { %v666_v62 = vpop.f32.mrb[2].mxu1 }
 0x33d   : > { %v675_v63 = vadd.f32 %v673_v59, %v664_v60  ;;  %v798_v0 = vpop.f32.mrb[3].mxu1 }
 0x33f   : > { %676 = vst.msk [vmem:[%s330_s12] sm:$0xff] %vm432_vm6, %v675_v63 }
 0x340 PF: > { %s19_s30 = sadd.s32 1, %s831_s30  }
 0x341   : > { %p16_p4 = scmp.ge.s32.totalorder %s19_s30, 4  }
 0x343   :  { %18 = sbr.rel (!%p16_p4) target bundleno = 1 (0x1), region = 86 }

// kernel: _lambda_.16
= control target key start
LH: loop header
LB: loop body
LE: loop exit
PB: predicated region body
PF: predicated region fallthrough
CT: control target
= control target key end

     0   :  { %s863_s30 = smov 0   ;;  %s945_s0 = inlined_call_operand.vmem [shape: f32[2,10,32], index: 0, kind: input, shape index: {}]   ;;  %s946_s1 = inlined_call_operand.vmem [shape: f32[7,32], index: 1, kind: input, shape index: {}]   ;;  %s947_s2 = inlined_call_operand.vmem [shape: f32[1,32], index: 2, kind: input, shape index: {}]   ;;  %s948_s3 = inlined_call_operand.vmem [shape: f32[1,32], index: 3, kind: input, shape index: {}]   ;;  %s949_s4 = inlined_call_operand.vmem [shape: f32[1,32], index: 4, kind: input, shape index: {}]   ;;  %s950_s5 = inlined_call_operand.vmem [shape: bf16[32,128], index: 5, kind: input, shape index: {}]   ;;  %s951_s6 = inlined_call_operand.vmem [shape: f32[1,128], index: 6, kind: input, shape index: {}]   ;;  %s952_s7 = inlined_call_operand.vmem [shape: bf16[128,32], index: 7, kind: input, shape index: {}]   ;;  %s953_s8 = inlined_call_operand.vmem [shape: f32[1,32], index: 8, kind: input, shape index: {}]   ;;  %s954_s9 = inlined_call_operand.vmem [shape: f32[2,4,32], index: 9, kind: output, shape index: {}]  }
   0x1 LB: > { %s708_s10 = sadd.s32 4294967295, %s809_s30   ;;  %p712_p0 = scmp.ge.s32.totalorder %s809_s30, 1  ;;  %s809_s30 = sphi %s863_s30, %s19_s30  }
   0x2   : > { %p287_p1 = scmp.lt.s32.totalorder %s809_s30, 3 }
   0x4   : > { %p288_p2 = pnand %p712_p0, %p287_p1 }
   0x5   : > { %p322_p3 = scmp.lt.s32.totalorder (!%p288_p2), %s708_s10, 1  ;;  %v335_v0 = vlaneseq (!%p288_p2)  ;;  %v334_v1 = vld [vmem:[%s946_s1] sm:$0x7f] (!%p288_p2)  ;;  %vm384_vm0 = vcmask (!%p288_p2), 1042432   ;;  %vm398_vm1 = vcmask (!%p288_p2), 1041408   ;;  %vm412_vm2 = vcmask (!%p288_p2), 257024  }
   0x6   : > { %291 = sbr.rel (%p288_p2) target bundleno = 831 (0x33f), region = 56  ;;  %v716_v43 = vld [vmem:[%s947_s2] ss:$0 sm:$0xff] (!%p288_p2)  ;;  %v811_v53 = vmov (!%p288_p2), 0.0   ;;  %v788_v54 = vld [vmem:[%s950_s5 + $0x8] sm:$0xff] (!%p288_p2)   ;;  %vm812_vm3 = vmmov (!%p288_p2), 0  }
   0x7   : > { %v336_v2 = vshrl.u32 (!%p288_p2), %v335_v0, 7  ;;  %v787_v52 = vld [vmem:[%s950_s5] sm:$0xff] (!%p288_p2)   ;;  %749 = vmatprep.subr.bf16.mxu0 (!%p288_p2), %v811_v53  ;;  %757 = vmatprep.subr.bf16.mxu1 (!%p288_p2), %v811_v53  ;;  %vm467_vm4 = vcmask (!%p288_p2), 261120  }
   0x8   : > { %750 = vmatpush3.bf16.msra.mxu0 (!%p288_p2), %v787_v52  ;;  %753 = vmatprep.mubr.msk.bf16.mxu0 (!%p288_p2), %vm812_vm3, %v811_v53  ;;  %v717_v59 = vld [vmem:[%s948_s3] ss:$0 sm:$0xff] (!%p288_p2) }
   0x9   : > { %v337_v3 = vsub.s32 (!%p288_p2), 0, %v336_v2  ;;  %v342_v4 = vsub.s32 (!%p288_p2), 1, %v336_v2  ;;  %v351_v5 = vsub.s32 (!%p288_p2), 2, %v336_v2  ;;  %v360_v6 = vsub.s32 (!%p288_p2), 3, %v336_v2  ;;  %751 = vmatprep.subr.bf16.mxu0 (!%p288_p2), %v811_v53  ;;  %773 = vmatprep.mubr.msk.bf16.mxu1 (!%p288_p2), %vm812_vm3, %v811_v53  ;;  %v718_v61 = vld [vmem:[%s949_s4] ss:$0 sm:$0xff] (!%p288_p2) }
   0xa   : > { %v369_v7 = vsub.s32 (!%p288_p2), 4, %v336_v2  ;;  %v378_v8 = vsub.s32 (!%p288_p2), 5, %v336_v2  ;;  %v392_v9 = vsub.s32 (!%p288_p2), 6, %v336_v2  ;;  %v790_v2 = vld [vmem:[%s952_s7 + $0x8] sm:$0xff] (!%p288_p2)  }
   0xb   : > { %v338_v12 = vrot.slane (!%p288_p2), %v334_v1, %v337_v3  ;;  %v343_v13 = vrot.slane (!%p288_p2), %v334_v1, %v342_v4  ;;  %v352_v14 = vrot.slane (!%p288_p2), %v334_v1, %v351_v5  ;;  %v361_v15 = vrot.slane (!%p288_p2), %v334_v1, %v360_v6  ;;  %v791_v3 = vld [vmem:[%s952_s7 + $0x10] sm:$0xff] (!%p288_p2)   ;;  %v792_v4 = vld [vmem:[%s952_s7 + $0x18] sm:$0xff] (!%p288_p2)   ;;  %v793_v5 = vld [vmem:[%s952_s7 + $0x20] sm:$0xff] (!%p288_p2)  }
   0xc   : > { %v370_v16 = vrot.slane (!%p288_p2), %v334_v1, %v369_v7  ;;  %v379_v17 = vrot.slane (!%p288_p2), %v334_v1, %v378_v8  ;;  %v393_v18 = vrot.slane (!%p288_p2), %v334_v1, %v392_v9  ;;  %752 = vmatpush3.bf16.msra.mxu0 (!%p288_p2), %v788_v54  ;;  %v789_v1 = vld [vmem:[%s952_s7] sm:$0xff] (!%p288_p2)   ;;  %v794_v6 = vld [vmem:[%s952_s7 + $0x28] sm:$0xff] (!%p288_p2)   ;;  %v795_v7 = vld [vmem:[%s952_s7 + $0x30] sm:$0xff] (!%p288_p2)  }
   0xd   : > { %s956_s10 = smov (!%p322_p3, %s708_s10), 1  ;;  %758 = vmatpush3.bf16.msra.mxu1 %v789_v1  ;;  %v796_v8 = vld [vmem:[%s952_s7 + $0x38] sm:$0xff]   ;;  %v719_v9 = vld [vmem:[%s951_s6] ss:$0 sm:$0xff] }
   0xe   : > { %s736_s13 = sshll.u32 %s956_s10, 4  ;;  %759 = vmatprep.subr.bf16.mxu1 %v811_v53  ;;  %s715_s28 = sshll.u32 %s956_s10, 2 }
   0xf   : > { %s326_s16 = scalar_lea.vmem %s945_s0, %s736_s13  ;;  %s330_s12 = scalar_lea.vmem %s954_s9, %s715_s28 }
  0x10   : > { %v880_v10 = vld [vmem:[%s326_s16] sm:$0xff]  ;;  %v333_v11 = vld [vmem:[%s326_s16 + $0x8] sm:$0x3] }
  0x11   : > { %v339_v19 = vmul.f32 %v338_v12, %v880_v10  ;;  %v344_v20 = vmul.f32 %v343_v13, %v880_v10  ;;  %v353_v21 = vmul.f32 %v352_v14, %v880_v10  ;;  %v362_v22 = vmul.f32 %v361_v15, %v880_v10  ;;  %760 = vmatpush3.bf16.msra.mxu1 %v790_v2 }
  0x12   : > { %v380_v23 = vmul.f32 %v379_v17, %v880_v10  ;;  %v381_v24 = vmul.f32 %v379_v17, %v333_v11  ;;  %v371_v27 = vmul.f32 %v370_v16, %v880_v10  ;;  %v394_v28 = vmul.f32 %v393_v18, %v880_v10  ;;  %761 = vmatprep.subr.bf16.mxu1 %v811_v53 }
  0x13   : > { %v346_v25 = vrot.slane %v344_v20, 1  ;;  %v355_v26 = vrot.slane %v353_v21, 2  ;;  %v395_v29 = vmul.f32 %v393_v18, %v333_v11  ;;  %v364_v31 = vrot.slane %v362_v22, 3 }
  0x14   : > { %v385_v32 = vrot.slane %v380_v23, 5  ;;  %v386_v33 = vrot.slane %v381_v24, 5  ;;  %v373_v35 = vrot.slane %v371_v27, 4  ;;  %v399_v36 = vrot.slane %v394_v28, 6 }
  0x15   : > { %v348_v30 = vadd.f32 %v346_v25, %v339_v19  ;;  %v400_v37 = vrot.slane %v395_v29, 6  ;;  %762 = vmatpush3.bf16.msra.mxu1 %v791_v3 }
  0x16   : > { %v387_v39 = vsel %vm384_vm0, %v385_v32, %v386_v33  ;;  %763 = vmatprep.subr.bf16.mxu1 %v811_v53 }
  0x17   : > { %v357_v34 = vadd.f32 %v355_v26, %v348_v30  ;;  %v401_v41 = vsel %vm398_vm1, %v399_v36, %v400_v37 }
  0x19   : > { %v366_v38 = vadd.f32 %v364_v31, %v357_v34  ;;  %764 = vmatpush3.bf16.msra.mxu1 %v792_v4 }
  0x1a   : > { %765 = vmatprep.subr.bf16.mxu1 %v811_v53 }
  0x1b   : > { %v375_v40 = vadd.f32 %v373_v35, %v366_v38 }
  0x1d   : > { %v389_v42 = vadd.f32 %v387_v39, %v375_v40  ;;  %766 = vmatpush3.bf16.msra.mxu1 %v793_v5 }
  0x1e   : > { %767 = vmatprep.subr.bf16.mxu1 %v811_v53 }
  0x1f   : > { %v403_v44 = vadd.f32 %v401_v41, %v389_v42  ;;  %v725_v42 = vld [vmem:[%s953_s8] ss:$0 sm:$0xff] }
  0x21   : > { %v411_v45 = vadd.f32 %v716_v43, %v403_v44  ;;  %768 = vmatpush3.bf16.msra.mxu1 %v794_v6  ;;  %v651_v43 = vrot.slane %v880_v10, 3 }
  0x22   : > { %769 = vmatprep.subr.bf16.mxu1 %v811_v53 }
  0x23   : > { %v413_v46 = vsel %vm412_vm2, %v411_v45, 0.0 }
  0x24   : > { %414 = vadd.xlane.f32.xlu0 %v413_v46 }
  0x25   : > { %770 = vmatpush3.bf16.msra.mxu1 %v795_v7 }
  0x26   : > { %771 = vmatprep.subr.bf16.mxu1 %v811_v53 }
  0x29   : > { %772 = vmatpush3.bf16.msra.mxu1 %v796_v8 }
  0xb1   : > { %v415_v47 = vpop.xlane.xlu0 %414 }
  0xb2   : > { %v417_v48 = vmul.f32 0.03125, %v415_v47 }
  0xb4   : > { %v418_v49 = vsub.f32 %v411_v45, %v417_v48 }
  0xb6   : > { %v419_v50 = vmul.f32 %v418_v49, %v418_v49 }
  0xb8   : > { %v420_v51 = vsel %vm412_vm2, %v419_v50, 0.0 }
  0xb9   : > { %421 = vadd.xlane.f32.xlu0 %v420_v51 }
 0x146   : > { %v422_v55 = vpop.xlane.xlu0 %421 }
 0x147   : > { %v423_v56 = vmul.f32 0.03125, %v422_v55 }
 0x149   : > { %v424_v57 = vadd.f32 1e-05, %v423_v56 }
 0x14b   : > { %797 = vrsqrt.f32 %v424_v57 }
 0x155   : > { %v798_v58 = vpop.eup %797 }
 0x156   : > { %v426_v60 = vmul.f32 %v798_v58, %v418_v49 }
 0x158   : > { %v434_v62 = vmul.f32 %v717_v59, %v426_v60 }
 0x15a   : > { %v442_v63 = vadd.f32 %v718_v61, %v434_v62 }
 0x15c   : > { %v443_v0 = vpack.c.bf16 %v442_v63, %v442_v63 }
 0x15e   : > { %754 = vmatmul.mubr.msk.bf16.vlgmr.msra.gmra.mrb[0].mxu0 %vm467_vm4, %v443_v0 }
 0x231   : > { %v505_v11 = vpop.f32.mrb[0].mxu0 }
 0x232   : > { %v506_v12 = vadd.f32 %v719_v9, %v505_v11  ;;  %v755_v13 = vpop.f32.mrb[1].mxu0 }
 0x233   : > { %v508_v14 = vpop.f32.mrb[2].mxu0 }
 0x234   : > { %v511_v15 = vmul.f32 0.70710677, %v506_v12  ;;  %v756_v16 = vpop.f32.mrb[3].mxu0  ;;  %v535_v38 = vmul.f32 0.5, %v506_v12 }
 0x236   : > { %v512_v17 = vand.u32 2147483647, %v511_v15  ;;  %vm532_vm5 = vcmp.ge.f32.partialorder %v511_v15, 0.0 }
 0x238   : > { %v513_v18 = vmul.f32 0.3275911, %v512_v17  ;;  %v526_v20 = vsub.f32 0.0, %v512_v17 }
 0x23a   : > { %v514_v19 = vadd.f32 1.0, %v513_v18  ;;  %v527_v22 = vmul.f32 %v526_v20, %v512_v17 }
 0x23c   : > { %799 = vrcp.f32 %v514_v19  ;;  %v528_v25 = vmul.f32 1.442695, %v527_v22 }
 0x23e   : > { %801 = vpow2.f32 %v528_v25 }
 0x246   : > { %v800_v21 = vpop.eup %799 }
 0x247   : > { %v517_v23 = vmul.f32 1.0614054, %v800_v21 }
 0x248   : > { %v802_v33 = vpop.eup %801 }
 0x249   : > { %v723_v24 = vadd.f32 -1.4531521, %v517_v23 }
 0x24b   : > { %v519_v26 = vmul.f32 %v800_v21, %v723_v24 }
 0x24d   : > { %v520_v27 = vadd.f32 1.4214138, %v519_v26 }
 0x24f   : > { %v521_v28 = vmul.f32 %v800_v21, %v520_v27 }
 0x251   : > { %v724_v29 = vadd.f32 -0.28449672, %v521_v28 }
 0x253   : > { %v523_v30 = vmul.f32 %v800_v21, %v724_v29 }
 0x255   : > { %v524_v31 = vadd.f32 0.2548296, %v523_v30 }
 0x257   : > { %v525_v32 = vmul.f32 %v800_v21, %v524_v31 }
 0x259   : > { %v530_v34 = vmul.f32 %v802_v33, %v525_v32 }
 0x25b   : > { %v531_v35 = vsub.f32 1.0, %v530_v34 }
 0x25d   : > { %v533_v36 = vsub.f32 0.0, %v531_v35 }
 0x25f   : > { %v534_v37 = vsel %vm532_vm5, %v531_v35, %v533_v36 }
 0x260   : > { %v536_v39 = vadd.f32 1.0, %v534_v37 }
 0x262   : > { %v537_v40 = vmul.f32 %v536_v39, %v535_v38 }
 0x264   : > { %v538_v41 = vpack.c.bf16 %v537_v40, %v537_v40 }
 0x266   : > { %774 = vmatmul.mubr.bf16.vlgmr.msra.gmra.mrb[0].mxu1 %v538_v41 }
 0x339   : > { %v644_v44 = vpop.f32.mrb[0].mxu1 }
 0x33a   : > { %v645_v45 = vadd.f32 %v725_v42, %v644_v44  ;;  %v775_v46 = vpop.f32.mrb[1].mxu1 }
 0x33b   : > { %v647_v47 = vpop.f32.mrb[2].mxu1 }
 0x33c   : > { %v653_v48 = vadd.f32 %v651_v43, %v645_v45  ;;  %v776_v49 = vpop.f32.mrb[3].mxu1 }
 0x33e   : > { %654 = vst.msk [vmem:[%s330_s12] sm:$0xf] %vm412_vm2, %v653_v48 }
 0x33f PF: > { %s19_s30 = sadd.s32 1, %s809_s30  }
 0x340   : > { %p16_p4 = scmp.ge.s32.totalorder %s19_s30, 4  }
 0x342   :  { %18 = sbr.rel (!%p16_p4) target bundleno = 1 (0x1), region = 86 }

// kernel: _lambda_.17
= control target key start
LH: loop header
LB: loop body
LE: loop exit
PB: predicated region body
PF: predicated region fallthrough
CT: control target
= control target key end

     0   :  { %s517_s12 = smov 0   ;;  %s562_s0 = inlined_call_operand.vmem [shape: f32[2,6,32], index: 0, kind: input, shape index: {}]   ;;  %s563_s1 = inlined_call_operand.vmem [shape: bf16[3,32,32], index: 1, kind: input, shape index: {}]   ;;  %s564_s2 = inlined_call_operand.vmem [shape: f32[1,32], index: 2, kind: input, shape index: {}]   ;;  %s565_s3 = inlined_call_operand.vmem [shape: f32[2,4,32], index: 3, kind: output, shape index: {}]  }
   0x1 LB: > { %s419_s13 = sadd.s32 4294967295, %s493_s12   ;;  %p423_p0 = scmp.ge.s32.totalorder %s493_s12, 1  ;;  %s493_s12 = sphi %s517_s12, %s13_s12  }
   0x2   : > { %p136_p1 = scmp.lt.s32.totalorder %s493_s12, 3 }
   0x4   : > { %p137_p2 = pnand %p423_p0, %p136_p1 }
   0x5   : > { %v481_v0 = vld [vmem:[%s563_s1 + $0x10] sm:$0xff] (!%p137_p2)   ;;  %v495_v1 = vmov (!%p137_p2), 0.0   ;;  %v482_v2 = vld [vmem:[%s563_s1] sm:$0xff] (!%p137_p2)   ;;  %v483_v3 = vld [vmem:[%s563_s1 + $0x18] sm:$0xff] (!%p137_p2)   ;;  %vm496_vm0 = vmmov (!%p137_p2), 0   ;;  %p158_p3 = scmp.lt.s32.totalorder (!%p137_p2), %s419_s13, 1 }
   0x6   : > { %140 = sbr.rel (%p137_p2) target bundleno = 250 (0xfa), region = 32  ;;  %447 = vmatprep.subr.bf16.mxu0 (!%p137_p2), %v495_v1  ;;  %455 = vmatprep.subr.bf16.mxu1 (!%p137_p2), %v495_v1  ;;  %v484_v4 = vld [vmem:[%s563_s1 + $0x8] sm:$0xff] (!%p137_p2)   ;;  %vm200_vm1 = vcmask (!%p137_p2), 261120   ;;  %v485_v10 = vld [vmem:[%s563_s1 + $0x20] sm:$0xff] (!%p137_p2)   ;;  %vm364_vm2 = vcmask (!%p137_p2), 257024  }
   0x7   : > { %448 = vmatpush3.bf16.msra.mxu0 (!%p137_p2), %v481_v0  ;;  %451 = vmatprep.mubr.msk.bf16.mxu0 (!%p137_p2), %vm496_vm0, %v495_v1  ;;  %v486_v12 = vld [vmem:[%s563_s1 + $0x28] sm:$0xff] (!%p137_p2)   ;;  %v435_v24 = vld [vmem:[%s564_s2] ss:$0 sm:$0xff] (!%p137_p2) }
   0x8   : > { %456 = vmatpush3.bf16.msra.mxu1 (!%p137_p2), %v482_v2  ;;  %449 = vmatprep.subr.bf16.mxu0 (!%p137_p2), %v495_v1 }
   0x9   : > { %457 = vmatprep.subr.bf16.mxu1 (!%p137_p2), %v495_v1  ;;  %459 = vmatprep.mubr.msk.bf16.mxu1 (!%p137_p2), %vm496_vm0, %v495_v1 }
   0xb   : > { %450 = vmatpush3.bf16.msra.mxu0 (!%p137_p2), %v483_v3 }
   0xc   : > { %458 = vmatpush3.bf16.msra.mxu1 (!%p137_p2), %v484_v4  ;;  %463 = vmatprep.subr.bf16.mxu0 (!%p137_p2), %v495_v1 }
   0xd   : > { %s567_s13 = smov (!%p158_p3, %s419_s13), 1 }
   0xe   : > { %s424_s22 = sshll.u32 %s567_s13, 3  ;;  %s425_s30 = sshll.u32 %s567_s13, 2 }
   0xf   : > { %s161_s25 = scalar_lea.vmem %s562_s0, %s424_s22  ;;  %s165_s8 = scalar_lea.vmem %s565_s3, %s425_s30 }
  0x10   : > { %v167_v5 = vld [vmem:[%s161_s25] sm:$0x3f] }
  0x11   : > { %v180_v6 = vpack.c.bf16 %v167_v5, %v167_v5 }
  0x13   : > { %v182_v7 = vshrl.u32 %v180_v6, 16  ;;  %v184_v8 = vshll.u32 %v180_v6, 16  ;;  %460 = vmatmul.mubr.msk.bf16.vlgmr.msra.gmra.mrb[0].mxu1 %vm200_vm1, %v180_v6  ;;  %v299_v13 = vrot.slane %v180_v6, 1 }
  0x15   : > { %v186_v9 = vrot.slane %v184_v8, 1 }
  0x17   : > { %v187_v11 = vor.u32 %v186_v9, %v182_v7 }
  0x19   : > { %452 = vmatmul.mubr.msk.bf16.vlgmr.msra.gmra.mrb[0].mxu0 %vm200_vm1, %v187_v11 }
  0x1a   : > { %464 = vmatpush3.bf16.msra.mxu0 %v485_v10  ;;  %467 = vmatprep.mubr.msk.bf16.mxu0 %vm496_vm0, %v495_v1 }
  0x1b   : > { %465 = vmatprep.subr.bf16.mxu0 %v495_v1 }
  0x1e   : > { %466 = vmatpush3.bf16.msra.mxu0 %v486_v12 }
  0x21   : > { %468 = vmatmul.mubr.msk.bf16.vlgmr.msra.gmra.mrb[4].mxu0 %vm200_vm1, %v299_v13 }
  0xe6   : > { %v292_v14 = vpop.f32.mrb[0].mxu1 }
  0xe7   : > { %v461_v15 = vpop.f32.mrb[1].mxu1 }
  0xe8   : > { %v295_v16 = vpop.f32.mrb[2].mxu1 }
  0xe9   : > { %v462_v17 = vpop.f32.mrb[3].mxu1 }
  0xec   : > { %v238_v18 = vpop.f32.mrb[0].mxu0 }
  0xed   : > { %v293_v19 = vadd.f32 %v292_v14, %v238_v18  ;;  %v453_v20 = vpop.f32.mrb[1].mxu0 }
  0xee   : > { %v241_v21 = vpop.f32.mrb[2].mxu0 }
  0xef   : > { %v454_v22 = vpop.f32.mrb[3].mxu0 }
  0xf4   : > { %v349_v23 = vpop.f32.mrb[4].mxu0 }
  0xf5   : > { %v355_v25 = vadd.f32 %v349_v23, %v293_v19  ;;  %v469_v26 = vpop.f32.mrb[5].mxu0 }
  0xf6   : > { %v352_v27 = vpop.f32.mrb[6].mxu0 }
  0xf7   : > { %v363_v28 = vadd.f32 %v435_v24, %v355_v25  ;;  %v470_v29 = vpop.f32.mrb[7].mxu0 }
  0xf9   : > { %365 = vst.msk [vmem:[%s165_s8] sm:$0xf] %vm364_vm2, %v363_v28 }
  0xfa PF: > { %s13_s12 = sadd.s32 1, %s493_s12  }
  0xfb   : > { %p10_p4 = scmp.ge.s32.totalorder %s13_s12, 4  }
  0xfd   :  { %12 = sbr.rel (!%p10_p4) target bundleno = 1 (0x1), region = 62 }

// kernel: _lambda_.18
= control target key start
LH: loop header
LB: loop body
LE: loop exit
PB: predicated region body
PF: predicated region fallthrough
CT: control target
= control target key end

     0   :  { %16 = vsyncpa [#allocation3], 0  ;;  %v519_v1 = vmov 0.0   ;;  %vm520_vm0 = vmmov 0   ;;  %s674_s0 = inlined_call_operand.vmem [shape: f32[2,128], index: 0, kind: input, shape index: {}]   ;;  %s675_s1 = inlined_call_operand.vmem [shape: bf16[128,16], index: 1, kind: input, shape index: {}]   ;;  %s676_s2 = inlined_call_operand.vmem [shape: f32[1,16], index: 2, kind: input, shape index: {}]   ;;  %s677_s3 = inlined_call_operand.vmem [shape: bf16[128,16], index: 3, kind: input, shape index: {}]   ;;  %s678_s4 = inlined_call_operand.vmem [shape: f32[1,16], index: 4, kind: input, shape index: {}]   ;;  %s679_s5 = inlined_call_operand.vmem [shape: bf16[16,128], index: 5, kind: input, shape index: {}]   ;;  %s680_s6 = inlined_call_operand.vmem [shape: f32[1,128], index: 6, kind: input, shape index: {}]   ;;  %s681_s7 = inlined_call_operand.vmem [shape: f32[2,16], index: 7, kind: input, shape index: {}]   ;;  %s682_s8 = inlined_call_operand.hbm [shape: f32[2,16], index: 8, kind: output, shape index: {0}]   ;;  %s683_s9 = inlined_call_operand.hbm [shape: f32[2,16], index: 9, kind: output, shape index: {1}]   ;;  %s684_s10 = inlined_call_operand.vmem [shape: f32[2,128], index: 10, kind: output, shape index: {2}]  }
   0x1   :  { %v452_v0 = vld [vmem:[%s677_s3] sm:$0xff]   ;;  %422 = vmatprep.subr.bf16.mxu1 %v519_v1  ;;  %402 = vmatprep.subr.bf16.mxu0 %v519_v1  ;;  %v453_v2 = vld [vmem:[%s677_s3 + $0x8] sm:$0xff]   ;;  %v454_v4 = vld [vmem:[%s677_s3 + $0x10] sm:$0xff]  }
   0x2   :  { %423 = vmatpush3.bf16.msra.mxu1 %v452_v0  ;;  %438 = vmatprep.mubr.msk.bf16.mxu1 %vm520_vm0, %v519_v1  ;;  %v456_v3 = vld [vmem:[%s675_s1] sm:$0xff]   ;;  %v458_v5 = vld [vmem:[%s675_s1 + $0x8] sm:$0xff]   ;;  %v455_v6 = vld [vmem:[%s677_s3 + $0x18] sm:$0xff]  }
   0x3   :  { %424 = vmatprep.subr.bf16.mxu1 %v519_v1  ;;  %418 = vmatprep.mubr.msk.bf16.mxu0 %vm520_vm0, %v519_v1  ;;  %v460_v7 = vld [vmem:[%s675_s1 + $0x10] sm:$0xff]   ;;  %v457_v8 = vld [vmem:[%s677_s3 + $0x20] sm:$0xff]   ;;  %v462_v9 = vld [vmem:[%s675_s1 + $0x18] sm:$0xff]  }
   0x4   :  { %403 = vmatpush3.bf16.msra.mxu0 %v456_v3 }
   0x5   :  { %404 = vmatprep.subr.bf16.mxu0 %v519_v1 }
   0x6   :  { %425 = vmatpush3.bf16.msra.mxu1 %v453_v2 }
   0x7   :  { %426 = vmatprep.subr.bf16.mxu1 %v519_v1 }
   0x8   :  { %405 = vmatpush3.bf16.msra.mxu0 %v458_v5 }
   0x9   :  { %406 = vmatprep.subr.bf16.mxu0 %v519_v1 }
   0xa   :  { %427 = vmatpush3.bf16.msra.mxu1 %v454_v4 }
   0xb   :  { %428 = vmatprep.subr.bf16.mxu1 %v519_v1 }
   0xc   :  { %407 = vmatpush3.bf16.msra.mxu0 %v460_v7 }
   0xd   :  { %408 = vmatprep.subr.bf16.mxu0 %v519_v1 }
   0xe   :  { %429 = vmatpush3.bf16.msra.mxu1 %v455_v6 }
   0xf   :  { %430 = vmatprep.subr.bf16.mxu1 %v519_v1 }
  0x10   :  { %17 = vsyncpa [#allocation5], 0  ;;  %v459_v10 = vld [vmem:[%s677_s3 + $0x28] sm:$0xff]   ;;  %409 = vmatpush3.bf16.msra.mxu0 %v462_v9  ;;  %v464_v11 = vld [vmem:[%s675_s1 + $0x20] sm:$0xff]   ;;  %vm325_vm1 = vcmask 123904   ;;  %vm281_vm2 = vcmask 130048  }
  0x11   :  { %410 = vmatprep.subr.bf16.mxu0 %v519_v1  ;;  %v461_v12 = vld [vmem:[%s677_s3 + $0x30] sm:$0xff]   ;;  %v465_v13 = vld [vmem:[%s675_s1 + $0x28] sm:$0xff]   ;;  %v463_v14 = vld [vmem:[%s677_s3 + $0x38] sm:$0xff]   ;;  %s522_s11 = smov [#allocation4]  }
  0x12   :  { %431 = vmatpush3.bf16.msra.mxu1 %v457_v8  ;;  %v35_v15 = vld [vmem:[%s674_s0] sm:$0x3]  ;;  %v466_v16 = vld [vmem:[%s675_s1 + $0x30] sm:$0xff]   ;;  %v467_v18 = vld [vmem:[%s675_s1 + $0x38] sm:$0xff]   ;;  %s345_s12 = sshll.u32 %s522_s11, 4  ;;  %s346_s12 = int_to_ptr.vmem [resolvable:$true] %s345_s12 }
  0x13   :  { %432 = vmatprep.subr.bf16.mxu1 %v519_v1  ;;  %v36_v17 = vpack.c.bf16 %v35_v15, %v35_v15  ;;  %v468_v19 = vld [vmem:[%s679_s5] sm:$0xff]  }
  0x14   :  { %411 = vmatpush3.bf16.msra.mxu0 %v464_v11  ;;  %v370_v20 = vld [vmem:[%s678_s4] ss:$0 sm:$0xff] }
  0x15   :  { %412 = vmatprep.subr.bf16.mxu0 %v519_v1  ;;  %v361_v25 = vld [vmem:[%s676_s2] ss:$0 sm:$0xff]  ;;  %s521_s2 = smov [#allocation2]  }
  0x16   :  { %433 = vmatpush3.bf16.msra.mxu1 %v459_v10  ;;  %v259_v34 = vld [vmem:[%s681_s7] sm:$0x3]  ;;  %s335_s30 = sshll.u32 %s521_s2, 4  ;;  %s336_s30 = int_to_ptr.vmem [resolvable:$true] %s335_s30 }
  0x17   :  { %434 = vmatprep.subr.bf16.mxu1 %v519_v1  ;;  %s471_s13 = scalar_lea.vmem %s336_s30, 32  ;;  %p476_p1 = scmp.lt.s32.totalorder %s336_s30, %s336_s30 }
  0x18   :  { %413 = vmatpush3.bf16.msra.mxu0 %v465_v13  ;;  %p472_p0 = scmp.ne.s32.totalorder %s336_s30, %s471_s13  ;;  %p477_p2 = scmp.lt.s32.totalorder %s471_s13, %s471_s13 }
  0x19   :  { %414 = vmatprep.subr.bf16.mxu0 %v519_v1 }
  0x1a   :  { %435 = vmatpush3.bf16.msra.mxu1 %v461_v12  ;;  %p478_p3 = por %p477_p2, %p476_p1 }
  0x1b   :  { %436 = vmatprep.subr.bf16.mxu1 %v519_v1 }
  0x1c   :  { %415 = vmatpush3.bf16.msra.mxu0 %v466_v16  ;;  %p479_p4 = pnand %p478_p3, %p472_p0 }
  0x1d   :  { %416 = vmatprep.subr.bf16.mxu0 %v519_v1 }
  0x1e   :  { %437 = vmatpush3.bf16.msra.mxu1 %v463_v14 }
  0x20   :  { %417 = vmatpush3.bf16.msra.mxu0 %v467_v18 }
  0x21   :  { %439 = vmatmul.mubr.bf16.vlgmr.msra.gmra.mrb[0].mxu1 %v36_v17  ;;  %442 = vmatprep.subr.bf16.mxu0 %v519_v1 }
  0x23   :  { %419 = vmatmul.mubr.bf16.vlgmr.msra.gmra.mrb[0].mxu0 %v36_v17 }
  0x24   :  { %444 = vmatprep.mubr.msk.bf16.mxu0 %vm520_vm0, %v519_v1  ;;  %443 = vmatpush3.bf16.msra.mxu0 %v468_v19 }
  0xf4   :  { %v253_v21 = vpop.f32.mrb[0].mxu1 }
  0xf5   :  { %v254_v22 = vadd.f32 %v370_v20, %v253_v21  ;;  %v440_v23 = vpop.f32.mrb[1].mxu1 }
  0xf6   :  { %v256_v24 = vpop.f32.mrb[2].mxu1  ;;  %v142_v28 = vpop.f32.mrb[0].mxu0 }
  0xf7   :  { %v260_v26 = vmul.f32 0.5, %v254_v22  ;;  %v441_v27 = vpop.f32.mrb[3].mxu1  ;;  %327 = vst.msk [vmem:[#allocation4] sm:$0x3] %vm325_vm1, %v254_v22  ;;  %v143_v30 = vadd.f32 %v361_v25, %v142_v28  ;;  %v420_v31 = vpop.f32.mrb[1].mxu0 }
  0xf8   :  { %v145_v32 = vpop.f32.mrb[2].mxu0 }
  0xf9   :  { %v261_v29 = vmul.f32 1.442695, %v260_v26  ;;  %v421_v33 = vpop.f32.mrb[3].mxu0  ;;  %326 = vst.msk [vmem:[#allocation2] sm:$0x3] %vm325_vm1, %v143_v30 }
  0xfb   :  { %469 = vpow2.f32 %v261_v29 }
 0x105   :  { %v470_v35 = vpop.eup %469 }
 0x106   :  { %v263_v36 = vmul.f32 %v470_v35, %v259_v34 }
 0x108   :  { %v264_v37 = vadd.f32 %v263_v36, %v143_v30 }
 0x10a   :  { %v265_v38 = vpack.c.bf16 %v264_v37, %v264_v37 }
 0x10c   :  { %445 = vmatmul.mubr.msk.bf16.vlgmr.msra.gmra.mrb[4].mxu0 %vm281_vm2, %v265_v38 }
 0x10d   :  { %482 = shalt.err (!%p479_p4)
}
 0x10e   :  { %s483_s15 = scalar_lea.hbm %s682_s8, 32 }
 0x10f   :  { %p484_p5 = scmp.ne.s32.totalorder %s682_s8, %s483_s15  ;;  %p487_p6 = scmp.lt.u32.totalorder %s483_s15, %s682_s8 }
 0x111   :  { %p489_p7 = pnand %p487_p6, %p484_p5 }
 0x113   :  { %492 = shalt.err (!%p489_p7)
}
 0x114   :  { %338 = dma.vmem_to_hbm [thread:$0]  %s336_s30, 32, %s682_s8, [#allocation3]  }
 0x115   :  { %s493_s22 = scalar_lea.vmem %s346_s12, 32  ;;  %p498_p9 = scmp.lt.s32.totalorder %s346_s12, %s346_s12 }
 0x116   :  { %p494_p8 = scmp.ne.s32.totalorder %s346_s12, %s493_s22  ;;  %p499_p10 = scmp.lt.s32.totalorder %s493_s22, %s493_s22 }
 0x118   :  { %p500_p11 = por %p499_p10, %p498_p9 }
 0x11a   :  { %p501_p12 = pnand %p500_p11, %p494_p8 }
 0x11c   :  { %504 = shalt.err (!%p501_p12)
}
 0x11d   :  { %s505_s25 = scalar_lea.hbm %s683_s9, 32 }
 0x11e   :  { %p506_p13 = scmp.ne.s32.totalorder %s683_s9, %s505_s25  ;;  %p509_p0 = scmp.lt.u32.totalorder %s505_s25, %s683_s9 }
 0x120   :  { %p511_p1 = pnand %p509_p0, %p506_p13 }
 0x122   :  { %514 = shalt.err (!%p511_p1)
}
 0x123   :  { %348 = dma.vmem_to_hbm [thread:$0]  %s346_s12, 32, %s683_s9, [#allocation5]   ;;  %v379_v39 = vld [vmem:[%s680_s6] ss:$0 sm:$0xff] }
 0x1df   :  { %v319_v40 = vpop.f32.mrb[4].mxu0 }
 0x1e0   :  { %v320_v41 = vadd.f32 %v379_v39, %v319_v40  ;;  %v446_v42 = vpop.f32.mrb[5].mxu0 }
 0x1e1   :  { %v322_v43 = vpop.f32.mrb[6].mxu0 }
 0x1e2   :  { %328 = vst [vmem:[%s684_s10] sm:$0x3] %v320_v41  ;;  %v447_v44 = vpop.f32.mrb[7].mxu0 }
 0x1e3   :  { %515 = dma.done.wait [#allocation3], 32  }
 0x1e4   :  { %516 = vsyncadd [#allocation3], 4294967264 }
 0x1e5   :  { %517 = dma.done.wait [#allocation5], 32  }
 0x1e6   :  { %518 = vsyncadd [#allocation5], 4294967264 }
 0x1e7   :  { %359 = vsyncpa [#allocation3], 1 }
 0x1e8   :  { %360 = vsyncpa [#allocation5], 1 }

// kernel: _lambda_.19
= control target key start
LH: loop header
LB: loop body
LE: loop exit
PB: predicated region body
PF: predicated region fallthrough
CT: control target
= control target key end

     0   :  { %s518_s12 = smov 0   ;;  %s563_s0 = inlined_call_operand.vmem [shape: f32[2,6,32], index: 0, kind: input, shape index: {}]   ;;  %s564_s1 = inlined_call_operand.vmem [shape: bf16[3,32,32], index: 1, kind: input, shape index: {}]   ;;  %s565_s2 = inlined_call_operand.vmem [shape: f32[1,32], index: 2, kind: input, shape index: {}]   ;;  %s566_s3 = inlined_call_operand.vmem [shape: f32[2,4,32], index: 3, kind: output, shape index: {}]  }
   0x1 LB: > { %s420_s13 = sadd.s32 4294967295, %s494_s12   ;;  %p424_p0 = scmp.ge.s32.totalorder %s494_s12, 1  ;;  %s494_s12 = sphi %s518_s12, %s13_s12  }
   0x2   : > { %p136_p1 = scmp.lt.s32.totalorder %s494_s12, 3 }
   0x4   : > { %p137_p2 = pnand %p424_p0, %p136_p1 }
   0x5   : > { %v482_v0 = vld [vmem:[%s564_s1 + $0x10] sm:$0xff] (!%p137_p2)   ;;  %v496_v1 = vmov (!%p137_p2), 0.0   ;;  %v483_v2 = vld [vmem:[%s564_s1] sm:$0xff] (!%p137_p2)   ;;  %v484_v3 = vld [vmem:[%s564_s1 + $0x18] sm:$0xff] (!%p137_p2)   ;;  %vm497_vm0 = vmmov (!%p137_p2), 0   ;;  %p158_p3 = scmp.lt.s32.totalorder (!%p137_p2), %s420_s13, 1 }
   0x6   : > { %140 = sbr.rel (%p137_p2) target bundleno = 252 (0xfc), region = 32  ;;  %448 = vmatprep.subr.bf16.mxu0 (!%p137_p2), %v496_v1  ;;  %456 = vmatprep.subr.bf16.mxu1 (!%p137_p2), %v496_v1  ;;  %v485_v4 = vld [vmem:[%s564_s1 + $0x8] sm:$0xff] (!%p137_p2)   ;;  %vm200_vm1 = vcmask (!%p137_p2), 261120   ;;  %v486_v10 = vld [vmem:[%s564_s1 + $0x20] sm:$0xff] (!%p137_p2)   ;;  %vm365_vm2 = vcmask (!%p137_p2), 257024  }
   0x7   : > { %449 = vmatpush3.bf16.msra.mxu0 (!%p137_p2), %v482_v0  ;;  %452 = vmatprep.mubr.msk.bf16.mxu0 (!%p137_p2), %vm497_vm0, %v496_v1  ;;  %v487_v12 = vld [vmem:[%s564_s1 + $0x28] sm:$0xff] (!%p137_p2)   ;;  %v436_v24 = vld [vmem:[%s565_s2] ss:$0 sm:$0xff] (!%p137_p2) }
   0x8   : > { %457 = vmatpush3.bf16.msra.mxu1 (!%p137_p2), %v483_v2  ;;  %450 = vmatprep.subr.bf16.mxu0 (!%p137_p2), %v496_v1 }
   0x9   : > { %458 = vmatprep.subr.bf16.mxu1 (!%p137_p2), %v496_v1  ;;  %460 = vmatprep.mubr.msk.bf16.mxu1 (!%p137_p2), %vm497_vm0, %v496_v1 }
   0xb   : > { %451 = vmatpush3.bf16.msra.mxu0 (!%p137_p2), %v484_v3 }
   0xc   : > { %459 = vmatpush3.bf16.msra.mxu1 (!%p137_p2), %v485_v4  ;;  %464 = vmatprep.subr.bf16.mxu0 (!%p137_p2), %v496_v1 }
   0xd   : > { %s568_s13 = smov (!%p158_p3, %s420_s13), 1 }
   0xe   : > { %s425_s22 = sshll.u32 %s568_s13, 3  ;;  %s426_s5 = sshll.u32 %s568_s13, 2 }
   0xf   : > { %s161_s25 = scalar_lea.vmem %s563_s0, %s425_s22  ;;  %s165_s8 = scalar_lea.vmem %s566_s3, %s426_s5 }
  0x10   : > { %v167_v5 = vld [vmem:[%s161_s25] sm:$0x3f] }
  0x11   : > { %v180_v6 = vpack.c.bf16 %v167_v5, %v167_v5 }
  0x13   : > { %v182_v7 = vshrl.u32 %v180_v6, 16  ;;  %v184_v8 = vshll.u32 %v180_v6, 16  ;;  %461 = vmatmul.mubr.msk.bf16.vlgmr.msra.gmra.mrb[0].mxu1 %vm200_vm1, %v180_v6  ;;  %v299_v13 = vrot.slane %v180_v6, 1 }
  0x15   : > { %v186_v9 = vrot.slane %v184_v8, 1 }
  0x17   : > { %v187_v11 = vor.u32 %v186_v9, %v182_v7 }
  0x19   : > { %453 = vmatmul.mubr.msk.bf16.vlgmr.msra.gmra.mrb[0].mxu0 %vm200_vm1, %v187_v11 }
  0x1a   : > { %465 = vmatpush3.bf16.msra.mxu0 %v486_v10  ;;  %468 = vmatprep.mubr.msk.bf16.mxu0 %vm497_vm0, %v496_v1 }
  0x1b   : > { %466 = vmatprep.subr.bf16.mxu0 %v496_v1 }
  0x1e   : > { %467 = vmatpush3.bf16.msra.mxu0 %v487_v12 }
  0x21   : > { %469 = vmatmul.mubr.msk.bf16.vlgmr.msra.gmra.mrb[4].mxu0 %vm200_vm1, %v299_v13 }
  0xe6   : > { %v292_v14 = vpop.f32.mrb[0].mxu1 }
  0xe7   : > { %v462_v15 = vpop.f32.mrb[1].mxu1 }
  0xe8   : > { %v295_v16 = vpop.f32.mrb[2].mxu1 }
  0xe9   : > { %v463_v17 = vpop.f32.mrb[3].mxu1 }
  0xec   : > { %v238_v18 = vpop.f32.mrb[0].mxu0 }
  0xed   : > { %v293_v19 = vadd.f32 %v292_v14, %v238_v18  ;;  %v454_v20 = vpop.f32.mrb[1].mxu0 }
  0xee   : > { %v241_v21 = vpop.f32.mrb[2].mxu0 }
  0xef   : > { %v455_v22 = vpop.f32.mrb[3].mxu0 }
  0xf4   : > { %v349_v23 = vpop.f32.mrb[4].mxu0 }
  0xf5   : > { %v355_v25 = vadd.f32 %v349_v23, %v293_v19  ;;  %v470_v26 = vpop.f32.mrb[5].mxu0 }
  0xf6   : > { %v352_v27 = vpop.f32.mrb[6].mxu0 }
  0xf7   : > { %v363_v28 = vadd.f32 %v436_v24, %v355_v25  ;;  %v471_v29 = vpop.f32.mrb[7].mxu0 }
  0xf9   : > { %v364_v30 = vmax.f32 %v363_v28, 0.0 }
  0xfb   : > { %366 = vst.msk [vmem:[%s165_s8] sm:$0xf] %vm365_vm2, %v364_v30 }
  0xfc PF: > { %s13_s12 = sadd.s32 1, %s494_s12  }
  0xfd   : > { %p10_p4 = scmp.ge.s32.totalorder %s13_s12, 4  }
  0xff   :  { %12 = sbr.rel (!%p10_p4) target bundleno = 1 (0x1), region = 62 }

// kernel: _lambda_.22
= control target key start
LH: loop header
LB: loop body
LE: loop exit
PB: predicated region body
PF: predicated region fallthrough
CT: control target
= control target key end

     0   :  { %s547_s12 = smov 0   ;;  %s597_s0 = inlined_call_operand.vmem [shape: f32[2,18,32], index: 0, kind: input, shape index: {}]   ;;  %s598_s1 = inlined_call_operand.vmem [shape: bf16[3,32,32], index: 1, kind: input, shape index: {}]   ;;  %s599_s2 = inlined_call_operand.vmem [shape: f32[1,32], index: 2, kind: input, shape index: {}]   ;;  %s600_s3 = inlined_call_operand.vmem [shape: f32[2,16,32], index: 3, kind: output, shape index: {}]  }
   0x1 LB: > { %s446_s13 = sadd.s32 4294967295, %s523_s12   ;;  %p450_p0 = scmp.ge.s32.totalorder %s523_s12, 1  ;;  %s523_s12 = sphi %s547_s12, %s13_s12  }
   0x2   : > { %p137_p1 = scmp.lt.s32.totalorder %s523_s12, 3 }
   0x4   : > { %p138_p2 = pnand %p450_p0, %p137_p1 }
   0x5   : > { %v511_v0 = vld [vmem:[%s598_s1 + $0x10] sm:$0xff] (!%p138_p2)   ;;  %v525_v1 = vmov (!%p138_p2), 0.0   ;;  %v512_v2 = vld [vmem:[%s598_s1] sm:$0xff] (!%p138_p2)   ;;  %v513_v3 = vld [vmem:[%s598_s1 + $0x18] sm:$0xff] (!%p138_p2)   ;;  %vm526_vm0 = vmmov (!%p138_p2), 0   ;;  %p161_p3 = scmp.lt.s32.totalorder (!%p138_p2), %s446_s13, 1 }
   0x6   : > { %141 = sbr.rel (%p138_p2) target bundleno = 256 (0x100), region = 32  ;;  %476 = vmatprep.subr.bf16.mxu0 (!%p138_p2), %v525_v1  ;;  %484 = vmatprep.subr.bf16.mxu1 (!%p138_p2), %v525_v1  ;;  %v514_v4 = vld [vmem:[%s598_s1 + $0x8] sm:$0xff] (!%p138_p2)   ;;  %vm214_vm1 = vcmask (!%p138_p2), 261120   ;;  %vm189_vm2 = vsmask.f32 (!%p138_p2), 7424  ;;  %v515_v16 = vld [vmem:[%s598_s1 + $0x20] sm:$0xff] (!%p138_p2)  }
   0x7   : > { %477 = vmatpush3.bf16.msra.mxu0 (!%p138_p2), %v511_v0  ;;  %480 = vmatprep.mubr.msk.bf16.mxu0 (!%p138_p2), %vm526_vm0, %v525_v1  ;;  %v516_v18 = vld [vmem:[%s598_s1 + $0x28] sm:$0xff] (!%p138_p2)   ;;  %vm316_vm3 = vcmask (!%p138_p2), 1046528   ;;  %v463_v33 = vld [vmem:[%s599_s2] ss:$0 sm:$0xff] (!%p138_p2) }
   0x8   : > { %485 = vmatpush3.bf16.msra.mxu1 (!%p138_p2), %v512_v2  ;;  %478 = vmatprep.subr.bf16.mxu0 (!%p138_p2), %v525_v1 }
   0x9   : > { %486 = vmatprep.subr.bf16.mxu1 (!%p138_p2), %v525_v1  ;;  %488 = vmatprep.mubr.msk.bf16.mxu1 (!%p138_p2), %vm526_vm0, %v525_v1 }
   0xb   : > { %479 = vmatpush3.bf16.msra.mxu0 (!%p138_p2), %v513_v3 }
   0xc   : > { %487 = vmatpush3.bf16.msra.mxu1 (!%p138_p2), %v514_v4  ;;  %492 = vmatprep.subr.bf16.mxu0 (!%p138_p2), %v525_v1 }
   0xd   : > { %s602_s13 = smov (!%p161_p3, %s446_s13), 1 }
   0xe   : > { %s500_s22 = smul.u32 24, %s602_s13  ;;  %s466_s5 = sshll.u32 %s602_s13, 4 }
   0xf   : > { %s170_s8 = scalar_lea.vmem %s600_s3, %s466_s5 }
  0x10   : > { %s165_s25 = scalar_lea.vmem %s597_s0, %s500_s22 }
  0x11   : > { %v172_v5 = vld [vmem:[%s165_s25] sm:$0xff]  ;;  %v173_v6 = vld [vmem:[%s165_s25 + $0x8] sm:$0xff]  ;;  %v174_v7 = vld [vmem:[%s165_s25 + $0x10] sm:$0x3] }
  0x12   : > { %v187_v8 = vpack.c.bf16 %v173_v6, %v172_v5  ;;  %v188_v9 = vpack.c.bf16 %v174_v7, %v174_v7 }
  0x14   : > { %v191_v10 = vshrl.u32 %v187_v8, 16  ;;  %v193_v11 = vshll.u32 %v187_v8, 16  ;;  %v198_v12 = vshll.u32 %v188_v9, 16  ;;  %489 = vmatmul.mubr.msk.bf16.vlgmr.msra.gmra.mrb[0].mxu1 %vm214_vm1, %v187_v8  ;;  %v317_v19 = vrot.slane %v187_v8, 1 }
  0x15   : > { %v318_v20 = vrot.slane %v188_v9, 1 }
  0x16   : > { %v195_v13 = vrot.slane %v193_v11, 1  ;;  %v200_v14 = vrot.slane %v198_v12, 1 }
  0x17   : > { %v319_v21 = vsel %vm316_vm3, %v317_v19, %v318_v20 }
  0x18   : > { %v196_v15 = vor.u32 %v195_v13, %v191_v10 }
  0x1a   : > { %v201_v17 = vsel %vm189_vm2, %v196_v15, %v200_v14 }
  0x1b   : > { %481 = vmatmul.mubr.msk.bf16.vlgmr.msra.gmra.mrb[0].mxu0 %vm214_vm1, %v201_v17 }
  0x1c   : > { %493 = vmatpush3.bf16.msra.mxu0 %v515_v16  ;;  %496 = vmatprep.mubr.msk.bf16.mxu0 %vm526_vm0, %v525_v1 }
  0x1d   : > { %494 = vmatprep.subr.bf16.mxu0 %v525_v1 }
  0x20   : > { %495 = vmatpush3.bf16.msra.mxu0 %v516_v18 }
  0x23   : > { %497 = vmatmul.mubr.msk.bf16.vlgmr.msra.gmra.mrb[4].mxu0 %vm214_vm1, %v319_v21 }
  0xe7   : > { %v307_v22 = vpop.f32.mrb[0].mxu1 }
  0xe8   : > { %v490_v23 = vpop.f32.mrb[1].mxu1 }
  0xe9   : > { %v310_v24 = vpop.f32.mrb[2].mxu1 }
  0xea   : > { %v491_v25 = vpop.f32.mrb[3].mxu1 }
  0xee   : > { %v252_v26 = vpop.f32.mrb[0].mxu0 }
  0xef   : > { %v308_v27 = vadd.f32 %v307_v22, %v252_v26  ;;  %v482_v28 = vpop.f32.mrb[1].mxu0 }
  0xf0   : > { %v255_v29 = vpop.f32.mrb[2].mxu0 }
  0xf1   : > { %v311_v30 = vadd.f32 %v310_v24, %v255_v29  ;;  %v483_v31 = vpop.f32.mrb[3].mxu0 }
  0xf6   : > { %v369_v32 = vpop.f32.mrb[4].mxu0 }
  0xf7   : > { %v376_v34 = vadd.f32 %v369_v32, %v308_v27  ;;  %v498_v35 = vpop.f32.mrb[5].mxu0 }
  0xf8   : > { %v372_v36 = vpop.f32.mrb[6].mxu0 }
  0xf9   : > { %v385_v37 = vadd.f32 %v463_v33, %v376_v34  ;;  %v377_v38 = vadd.f32 %v372_v36, %v311_v30  ;;  %v499_v39 = vpop.f32.mrb[7].mxu0 }
  0xfb   : > { %v387_v40 = vmax.f32 %v385_v37, 0.0  ;;  %v386_v41 = vadd.f32 %v463_v33, %v377_v38 }
  0xfd   : > { %389 = vst.msk [vmem:[%s170_s8] sm:$0xff] %vm214_vm1, %v387_v40  ;;  %v388_v42 = vmax.f32 %v386_v41, 0.0 }
  0xff   : > { %390 = vst.msk [vmem:[%s170_s8 + $0x8] sm:$0xff] %vm214_vm1, %v388_v42 }
 0x100 PF: > { %s13_s12 = sadd.s32 1, %s523_s12  }
 0x101   : > { %p10_p4 = scmp.ge.s32.totalorder %s13_s12, 4  }
 0x103   :  { %12 = sbr.rel (!%p10_p4) target bundleno = 1 (0x1), region = 62 }

// kernel: _lambda_.23
= control target key start
LH: loop header
LB: loop body
LE: loop exit
PB: predicated region body
PF: predicated region fallthrough
CT: control target
= control target key end

     0   :  { %s546_s12 = smov 0   ;;  %s594_s0 = inlined_call_operand.vmem [shape: f32[2,18,32], index: 0, kind: input, shape index: {}]   ;;  %s595_s1 = inlined_call_operand.vmem [shape: bf16[3,32,8], index: 1, kind: input, shape index: {}]   ;;  %s596_s2 = inlined_call_operand.vmem [shape: f32[1,8], index: 2, kind: input, shape index: {}]   ;;  %s597_s3 = inlined_call_operand.vmem [shape: f32[2,16,8], index: 3, kind: output, shape index: {}]  }
   0x1 LB: > { %s445_s13 = sadd.s32 4294967295, %s522_s12   ;;  %p449_p0 = scmp.ge.s32.totalorder %s522_s12, 1  ;;  %s522_s12 = sphi %s546_s12, %s13_s12  }
   0x2   : > { %p137_p1 = scmp.lt.s32.totalorder %s522_s12, 3 }
   0x4   : > { %p138_p2 = pnand %p449_p0, %p137_p1 }
   0x5   : > { %v510_v0 = vld [vmem:[%s595_s1 + $0x10] sm:$0xff] (!%p138_p2)   ;;  %v524_v1 = vmov (!%p138_p2), 0.0   ;;  %v511_v2 = vld [vmem:[%s595_s1] sm:$0xff] (!%p138_p2)   ;;  %v512_v3 = vld [vmem:[%s595_s1 + $0x18] sm:$0xff] (!%p138_p2)   ;;  %vm525_vm0 = vmmov (!%p138_p2), 0   ;;  %p161_p3 = scmp.lt.s32.totalorder (!%p138_p2), %s445_s13, 1 }
   0x6   : > { %141 = sbr.rel (%p138_p2) target bundleno = 254 (0xfe), region = 32  ;;  %475 = vmatprep.subr.bf16.mxu0 (!%p138_p2), %v524_v1  ;;  %483 = vmatprep.subr.bf16.mxu1 (!%p138_p2), %v524_v1  ;;  %v513_v4 = vld [vmem:[%s595_s1 + $0x8] sm:$0xff] (!%p138_p2)   ;;  %vm214_vm1 = vcmask (!%p138_p2), 261120   ;;  %vm189_vm2 = vsmask.f32 (!%p138_p2), 7424  ;;  %v514_v16 = vld [vmem:[%s595_s1 + $0x20] sm:$0xff] (!%p138_p2)  }
   0x7   : > { %476 = vmatpush3.bf16.msra.mxu0 (!%p138_p2), %v510_v0  ;;  %479 = vmatprep.mubr.msk.bf16.mxu0 (!%p138_p2), %vm525_vm0, %v524_v1  ;;  %v515_v18 = vld [vmem:[%s595_s1 + $0x28] sm:$0xff] (!%p138_p2)   ;;  %vm316_vm3 = vcmask (!%p138_p2), 1046528   ;;  %v462_v33 = vld [vmem:[%s596_s2] ss:$0 sm:$0xff] (!%p138_p2)  ;;  %vm387_vm4 = vcmask (!%p138_p2), 64512  }
   0x8   : > { %484 = vmatpush3.bf16.msra.mxu1 (!%p138_p2), %v511_v2  ;;  %477 = vmatprep.subr.bf16.mxu0 (!%p138_p2), %v524_v1 }
   0x9   : > { %485 = vmatprep.subr.bf16.mxu1 (!%p138_p2), %v524_v1  ;;  %487 = vmatprep.mubr.msk.bf16.mxu1 (!%p138_p2), %vm525_vm0, %v524_v1 }
   0xb   : > { %478 = vmatpush3.bf16.msra.mxu0 (!%p138_p2), %v512_v3 }
   0xc   : > { %486 = vmatpush3.bf16.msra.mxu1 (!%p138_p2), %v513_v4  ;;  %491 = vmatprep.subr.bf16.mxu0 (!%p138_p2), %v524_v1 }
   0xd   : > { %s599_s13 = smov (!%p161_p3, %s445_s13), 1 }
   0xe   : > { %s499_s22 = smul.u32 24, %s599_s13  ;;  %s465_s30 = sshll.u32 %s599_s13, 4 }
   0xf   : > { %s170_s8 = scalar_lea.vmem %s597_s3, %s465_s30 }
  0x10   : > { %s165_s25 = scalar_lea.vmem %s594_s0, %s499_s22 }
  0x11   : > { %v172_v5 = vld [vmem:[%s165_s25] sm:$0xff]  ;;  %v173_v6 = vld [vmem:[%s165_s25 + $0x8] sm:$0xff]  ;;  %v174_v7 = vld [vmem:[%s165_s25 + $0x10] sm:$0x3] }
  0x12   : > { %v187_v8 = vpack.c.bf16 %v173_v6, %v172_v5  ;;  %v188_v9 = vpack.c.bf16 %v174_v7, %v174_v7 }
  0x14   : > { %v191_v10 = vshrl.u32 %v187_v8, 16  ;;  %v193_v11 = vshll.u32 %v187_v8, 16  ;;  %v198_v12 = vshll.u32 %v188_v9, 16  ;;  %488 = vmatmul.mubr.msk.bf16.vlgmr.msra.gmra.mrb[0].mxu1 %vm214_vm1, %v187_v8  ;;  %v317_v19 = vrot.slane %v187_v8, 1 }
  0x15   : > { %v318_v20 = vrot.slane %v188_v9, 1 }
  0x16   : > { %v195_v13 = vrot.slane %v193_v11, 1  ;;  %v200_v14 = vrot.slane %v198_v12, 1 }
  0x17   : > { %v319_v21 = vsel %vm316_vm3, %v317_v19, %v318_v20 }
  0x18   : > { %v196_v15 = vor.u32 %v195_v13, %v191_v10 }
  0x1a   : > { %v201_v17 = vsel %vm189_vm2, %v196_v15, %v200_v14 }
  0x1b   : > { %480 = vmatmul.mubr.msk.bf16.vlgmr.msra.gmra.mrb[0].mxu0 %vm214_vm1, %v201_v17 }
  0x1c   : > { %492 = vmatpush3.bf16.msra.mxu0 %v514_v16  ;;  %495 = vmatprep.mubr.msk.bf16.mxu0 %vm525_vm0, %v524_v1 }
  0x1d   : > { %493 = vmatprep.subr.bf16.mxu0 %v524_v1 }
  0x20   : > { %494 = vmatpush3.bf16.msra.mxu0 %v515_v18 }
  0x23   : > { %496 = vmatmul.mubr.msk.bf16.vlgmr.msra.gmra.mrb[4].mxu0 %vm214_vm1, %v319_v21 }
  0xe7   : > { %v307_v22 = vpop.f32.mrb[0].mxu1 }
  0xe8   : > { %v489_v23 = vpop.f32.mrb[1].mxu1 }
  0xe9   : > { %v310_v24 = vpop.f32.mrb[2].mxu1 }
  0xea   : > { %v490_v25 = vpop.f32.mrb[3].mxu1 }
  0xee   : > { %v252_v26 = vpop.f32.mrb[0].mxu0 }
  0xef   : > { %v308_v27 = vadd.f32 %v307_v22, %v252_v26  ;;  %v481_v28 = vpop.f32.mrb[1].mxu0 }
  0xf0   : > { %v255_v29 = vpop.f32.mrb[2].mxu0 }
  0xf1   : > { %v311_v30 = vadd.f32 %v310_v24, %v255_v29  ;;  %v482_v31 = vpop.f32.mrb[3].mxu0 }
  0xf6   : > { %v369_v32 = vpop.f32.mrb[4].mxu0 }
  0xf7   : > { %v376_v34 = vadd.f32 %v369_v32, %v308_v27  ;;  %v497_v35 = vpop.f32.mrb[5].mxu0 }
  0xf8   : > { %v372_v36 = vpop.f32.mrb[6].mxu0 }
  0xf9   : > { %v385_v37 = vadd.f32 %v462_v33, %v376_v34  ;;  %v377_v38 = vadd.f32 %v372_v36, %v311_v30  ;;  %v498_v39 = vpop.f32.mrb[7].mxu0 }
  0xfb   : > { %388 = vst.msk [vmem:[%s170_s8] sm:$0xff] %vm387_vm4, %v385_v37  ;;  %v386_v40 = vadd.f32 %v462_v33, %v377_v38 }
  0xfd   : > { %389 = vst.msk [vmem:[%s170_s8 + $0x8] sm:$0xff] %vm387_vm4, %v386_v40 }
  0xfe PF: > { %s13_s12 = sadd.s32 1, %s522_s12  }
  0xff   : > { %p10_p4 = scmp.ge.s32.totalorder %s13_s12, 4  }
 0x101   :  { %12 = sbr.rel (!%p10_p4) target bundleno = 1 (0x1), region = 62 }

</bundles_post_ra>
